<compile_context>
chip_gen: v5e
topology: v5e:2x2
jax: 0.10.0
libtpu: 0.0.40
codegen_flags: <defaults>
</compile_context>

<pallas_src>
import functools
import numpy as np
import jax
import jax.numpy as jnp
from jax.experimental import pallas as pl
from jax.experimental.pallas import tpu as pltpu

_EPS = 1e-6        # every LayerNorm in the reference uses eps=1e-06
_NEG_INF = -1e9    # reference masked_fill_ value


# --------------------------------------------------------------------------- #
# small shared helpers
# --------------------------------------------------------------------------- #
def _layer_norm(y, gamma, beta, eps=_EPS):
    """PyTorch-style LayerNorm over the last axis (biased variance)."""
    mean = jnp.mean(y, axis=-1, keepdims=True)
    var = jnp.mean(jnp.square(y - mean), axis=-1, keepdims=True)
    return (y - mean) * jax.lax.rsqrt(var + eps) * gamma + beta


def get_sinusoid_encoding_table(n_position, d_model):
    def cal_angle(position, hid_i):
        return position / np.power(10000, 2 * (hid_i // 2) / d_model)
    table = np.array([[cal_angle(pos, j) for j in range(d_model)]
                      for pos in range(n_position)])
    table[:, 0::2] = np.sin(table[:, 0::2])
    table[:, 1::2] = np.cos(table[:, 1::2])
    return jnp.asarray(table, dtype=jnp.float32)


def get_attn_pad_mask(seq_q, seq_k, padding_idx):
    bs, len_q = seq_q.shape
    len_k = seq_k.shape[1]
    pad = (seq_k == padding_idx)[:, None, :]
    return jnp.broadcast_to(pad, (bs, len_q, len_k))


def get_attn_subsequent_mask(seq):
    bs, L = seq.shape
    sub = jnp.triu(jnp.ones((L, L), jnp.int32), k=1)
    return jnp.broadcast_to(sub[None] > 0, (bs, L, L))


# --------------------------------------------------------------------------- #
# the single fused decoder kernel
# --------------------------------------------------------------------------- #
_WEIGHT_NAMES = (
    'sa_wq', 'sa_bq', 'sa_wk', 'sa_bk', 'sa_wv', 'sa_bv', 'sa_wo', 'sa_bo', 'sa_g', 'sa_b',
    'ea_wq', 'ea_bq', 'ea_wk', 'ea_bk', 'ea_wv', 'ea_bv', 'ea_wo', 'ea_bo', 'ea_g', 'ea_b',
    'ffn_w1', 'ffn_b1', 'ffn_w2', 'ffn_b2', 'ffn_g', 'ffn_b',
    'ln_g', 'ln_b',
)


def _decoder_kernel(dec_emb_ref, enc_out_ref, self_bias_ref, enc_bias_ref, *refs,
                    n_layers, n_heads, eps):
    w = dict(zip(_WEIGHT_NAMES, refs[:len(_WEIGHT_NAMES)]))
    out_ref, self_attn_ref, enc_attn_ref = refs[len(_WEIGHT_NAMES):]

    x = dec_emb_ref[0]            # (Sq, d_model)   current decoder state (VMEM resident)
    enc_out = enc_out_ref[0]      # (Sk, d_model)
    self_bias = self_bias_ref[0]  # (Sq, Sq)  additive mask bias (0 or -1e9)
    enc_bias = enc_bias_ref[0]    # (Sq, Sk)

    def mha(xq, xkv, mask_bias, p, l):
        """Fused MultiHeadAttention + residual + MHA-LN + DecoderLayer-LN."""
        acc = None
        attn_heads = []
        for h in range(n_heads):  # static unroll; per-head weights are full tiles
            q_h = jnp.dot(xq, w[p + '_wq'][l, h],
                          preferred_element_type=jnp.float32) + w[p + '_bq'][l, h]
            k_h = jnp.dot(xkv, w[p + '_wk'][l, h],
                          preferred_element_type=jnp.float32) + w[p + '_bk'][l, h]
            v_h = jnp.dot(xkv, w[p + '_wv'][l, h],
                          preferred_element_type=jnp.float32) + w[p + '_bv'][l, h]
            # contract over d_k directly (no explicit K^T); 1/sqrt(d_k) folded into wq/bq
            scores = jax.lax.dot_general(q_h, k_h, (((1,), (1,)), ((), ())),
                                         preferred_element_type=jnp.float32) + mask_bias
            smax = jnp.max(scores, axis=-1, keepdims=True)
            e = jnp.exp(scores - smax)
            attn_h = e / jnp.sum(e, axis=-1, keepdims=True)   # exact softmax
            attn_heads.append(attn_h)
            ctx_h = jnp.dot(attn_h, v_h, preferred_element_type=jnp.float32)
            # per-head output projection accumulation (no lane concat of contexts)
            head_out = jnp.dot(ctx_h, w[p + '_wo'][l, h],
                               preferred_element_type=jnp.float32)
            acc = head_out if acc is None else acc + head_out
        proj = acc + w[p + '_bo'][l]
        # TODO(synk): dropout treated as identity (inference mode).
        y = _layer_norm(proj + xq, w[p + '_g'][l], w[p + '_b'][l], eps)   # MHA-internal LN
        out = _layer_norm(y + xq, w['ln_g'][l], w['ln_b'][l], eps)        # DecoderLayer LN
        attn_slab = jnp.concatenate(attn_heads, axis=-1)                  # (Sq, H*Sk) lane-dense
        return out, attn_slab

    for l in range(n_layers):     # static unroll over layers — all in VMEM, no HBM hops
        # --- masked self-attention sub-block ---
        y1, sa_attn = mha(x, x, self_bias, 'sa', l)
        self_attn_ref[l, 0] = sa_attn
        # --- encoder-decoder attention sub-block ---
        y2, ea_attn = mha(y1, enc_out, enc_bias, 'ea', l)
        enc_attn_ref[l, 0] = ea_attn
        # --- position-wise FFN sub-block (Conv1d k=1 == Linear) ---
        h1 = jnp.dot(y2, w['ffn_w1'][l], preferred_element_type=jnp.float32) + w['ffn_b1'][l]
        h1 = jnp.maximum(h1, 0.0)
        f = jnp.dot(h1, w['ffn_w2'][l], preferred_element_type=jnp.float32) + w['ffn_b2'][l]
        # TODO(synk): dropout treated as identity (inference mode).
        y3 = _layer_norm(f + y2, w['ffn_g'][l], w['ffn_b'][l], eps)       # FFN-internal LN
        x = _layer_norm(y3 + y2, w['ln_g'][l], w['ln_b'][l], eps)         # DecoderLayer LN

    out_ref[0] = x


def pallas_decoder(dec_emb, enc_outputs, self_bias, enc_bias, fp, config):
    bs, Sq, dm = dec_emb.shape
    Sk = enc_outputs.shape[1]
    nl, H = config['n_layers'], config['n_heads']

    kernel = functools.partial(_decoder_kernel, n_layers=nl, n_heads=H, eps=_EPS)

    def const_spec(arr):
        nd = arr.ndim
        return pl.BlockSpec(arr.shape, lambda i, _nd=nd: (0,) * _nd)

    weight_args = [fp[name] for name in _WEIGHT_NAMES]

    in_specs = [
        pl.BlockSpec((1, Sq, dm), lambda i: (i, 0, 0)),   # dec embedding / residual seed
        pl.BlockSpec((1, Sk, dm), lambda i: (i, 0, 0)),   # encoder outputs
        pl.BlockSpec((1, Sq, Sq), lambda i: (i, 0, 0)),   # additive self-attn mask bias
        pl.BlockSpec((1, Sq, Sk), lambda i: (i, 0, 0)),   # additive enc-attn mask bias
    ] + [const_spec(a) for a in weight_args]

    out_shape = (
        jax.ShapeDtypeStruct((bs, Sq, dm), jnp.float32),
        jax.ShapeDtypeStruct((nl, bs, Sq, H * Sq), jnp.float32),   # self attn (lane-dense)
        jax.ShapeDtypeStruct((nl, bs, Sq, H * Sk), jnp.float32),   # enc  attn (lane-dense)
    )
    out_specs = (
        pl.BlockSpec((1, Sq, dm), lambda i: (i, 0, 0)),
        pl.BlockSpec((nl, 1, Sq, H * Sq), lambda i: (0, i, 0, 0)),
        pl.BlockSpec((nl, 1, Sq, H * Sk), lambda i: (0, i, 0, 0)),
    )

    dec_out, sa_raw, ea_raw = pl.pallas_call(
        kernel,
        out_shape=out_shape,
        grid=(bs,),
        in_specs=in_specs,
        out_specs=out_specs,
        compiler_params=pltpu.CompilerParams(
            dimension_semantics=("parallel",),        # v7x: one batch element per TC
            vmem_limit_bytes=32 * 1024 * 1024,
        ),
    )(dec_emb, enc_outputs, self_bias, enc_bias, *weight_args)

    # reshape lane-dense attention slabs back to the reference (bs, H, Sq, Sk) layout
    sa = sa_raw.reshape(nl, bs, Sq, H, Sq).transpose(0, 1, 3, 2, 4)
    ea = ea_raw.reshape(nl, bs, Sq, H, Sk).transpose(0, 1, 3, 2, 4)
    self_attns = [sa[l] for l in range(nl)]
    enc_attns = [ea[l] for l in range(nl)]
    return dec_out, self_attns, enc_attns


# --------------------------------------------------------------------------- #
# parameters
# --------------------------------------------------------------------------- #
def _lin_init(key, fan_in, fan_out):
    kw, kb = jax.random.split(key)
    bound = 1.0 / np.sqrt(fan_in)
    w = jax.random.uniform(kw, (fan_in, fan_out), jnp.float32, -bound, bound)
    b = jax.random.uniform(kb, (1, fan_out), jnp.float32, -bound, bound)
    return w, b


def init_params(key, config):
    dm, dk, dv = config['d_model'], config['d_k'], config['d_v']
    H, dff, nl = config['n_heads'], config['d_ff'], config['n_layers']
    keys = jax.random.split(key, 1 + nl)

    def mha_init(k):
        k1, k2, k3, k4 = jax.random.split(k, 4)
        wq, bq = _lin_init(k1, dm, H * dk)
        wk, bk = _lin_init(k2, dm, H * dk)
        wv, bv = _lin_init(k3, dm, H * dv)
        wo, bo = _lin_init(k4, H * dv, dm)
        return dict(wq=wq, bq=bq, wk=wk, bk=bk, wv=wv, bv=bv, wo=wo, bo=bo,
                    g=jnp.ones((1, dm), jnp.float32), b=jnp.zeros((1, dm), jnp.float32))

    layers = []
    for l in range(nl):
        lk = jax.random.split(keys[1 + l], 4)
        w1, b1 = _lin_init(lk[0], dm, dff)
        w2, b2 = _lin_init(lk[1], dff, dm)
        layers.append(dict(
            self_attn=mha_init(lk[2]),
            enc_attn=mha_init(lk[3]),
            ffn=dict(w1=w1, b1=b1, w2=w2, b2=b2,
                     g=jnp.ones((1, dm), jnp.float32), b=jnp.zeros((1, dm), jnp.float32)),
            ln_g=jnp.ones((1, dm), jnp.float32),   # DecoderLayer's shared LayerNorm
            ln_b=jnp.zeros((1, dm), jnp.float32),
        ))
    tgt_emb = jax.random.normal(keys[0], (config['tgt_vocab_size'], dm), jnp.float32)
    return dict(tgt_emb=tgt_emb, layers=layers)


def fuse_params(params, config):
    """One-time host-side fusion:
       - fold 1/sqrt(d_k) into W_Q / b_Q,
       - reshape projection weights into per-head full tiles (H, d_model, d_k|d_v),
       - reshape W_O into (H, d_v, d_model) for per-head accumulation,
       - stack everything along a leading n_layers axis (whole decoder = one kernel)."""
    dm, dk, dv = config['d_model'], config['d_k'], config['d_v']
    H = config['n_heads']
    scale = jnp.float32(1.0 / np.sqrt(dk))

    def per_head_in(wmat, bvec, d):
        # (d_model, H*d) -> (H, d_model, d);  (1, H*d) -> (H, 1, d)
        return (wmat.reshape(dm, H, d).transpose(1, 0, 2), bvec.reshape(H, 1, d))

    def fuse_mha(p):
        wq, bq = per_head_in(p['wq'] * scale, p['bq'] * scale, dk)
        wk, bk = per_head_in(p['wk'], p['bk'], dk)
        wv, bv = per_head_in(p['wv'], p['bv'], dv)
        return dict(wq=wq, bq=bq, wk=wk, bk=bk, wv=wv, bv=bv,
                    wo=p['wo'].reshape(H, dv, dm), bo=p['bo'], g=p['g'], b=p['b'])

    layers = params['layers']
    sa = [fuse_mha(L['self_attn']) for L in layers]
    ea = [fuse_mha(L['enc_attn']) for L in layers]

    fp = dict(tgt_emb=params['tgt_emb'])
    for prefix, mhas in (('sa', sa), ('ea', ea)):
        for name in ('wq', 'bq', 'wk', 'bk', 'wv', 'bv', 'wo', 'bo', 'g', 'b'):
            fp[f'{prefix}_{name}'] = jnp.stack([m[name] for m in mhas], axis=0)
    for name in ('w1', 'b1', 'w2', 'b2', 'g', 'b'):
        fp[f'ffn_{name}'] = jnp.stack([L['ffn'][name] for L in layers], axis=0)
    fp['ln_g'] = jnp.stack([L['ln_g'] for L in layers], axis=0)
    fp['ln_b'] = jnp.stack([L['ln_b'] for L in layers], axis=0)
    return fp


# --------------------------------------------------------------------------- #
# full Decoder forward
# --------------------------------------------------------------------------- #
def make_decoder_forward(config):
    pad = config['padding_idx']
    pos_table = get_sinusoid_encoding_table(config['max_tgt_seq_length'] + 1,
                                            config['d_model'])

    def forward(fp, dec_inputs, enc_inputs, enc_outputs):
        bs, tgt_len = dec_inputs.shape

        # Reference quirk: position zeroing uses the ENCODER pad mask
        # (positions.masked_fill_(enc_inputs.eq(pad), 0)); requires tgt_len == src_len.
        positions = jnp.broadcast_to(
            jnp.arange(1, tgt_len + 1, dtype=jnp.int32)[None, :], (bs, tgt_len))
        positions = jnp.where(enc_inputs == pad, 0, positions)

        # TODO(synk): embedding gathers are data-dependent; done with jnp.take (XLA), not Pallas.
        dec_emb = (jnp.take(fp['tgt_emb'], dec_inputs, axis=0)
                   + jnp.take(pos_table, positions, axis=0))

        self_pad = get_attn_pad_mask(dec_inputs, dec_inputs, pad)
        subseq = get_attn_subsequent_mask(dec_inputs)
        self_mask = (self_pad.astype(jnp.int32) + subseq.astype(jnp.int32)) > 0
        enc_mask = get_attn_pad_mask(dec_inputs, enc_inputs, pad)
        # additive mask bias (== masked_fill_(-1e9) after softmax)
        zero = jnp.float32(0.0)
        self_bias = jnp.where(self_mask, jnp.float32(_NEG_INF), zero)
        enc_bias = jnp.where(enc_mask, jnp.float32(_NEG_INF), zero)

        return pallas_decoder(dec_emb, enc_outputs, self_bias, enc_bias, fp, config)

    return jax.jit(forward)


# --------------------------------------------------------------------------- #
# main
# --------------------------------------------------------------------------- #
if __name__ == "__main__":
    config = dict(d_model=32, d_k=8, d_v=8, n_heads=4, d_ff=64, n_layers=2,
                  dropout=0.1, tgt_vocab_size=16, padding_idx=0, max_tgt_seq_length=16)
    bs, tgt_len, src_len = 2, 8, 8

    key = jax.random.PRNGKey(0)
    kp, kd, ke, ko = jax.random.split(key, 4)
    params = init_params(kp, config)
    fparams = fuse_params(params, config)

    dec_inputs = jax.random.randint(kd, (bs, tgt_len), 1, config['tgt_vocab_size'])
    dec_inputs = dec_inputs.at[1, tgt_len - 2:].set(config['padding_idx'])   # pad tail of batch 1
    enc_inputs = jax.random.randint(ke, (bs, src_len), 1, config['tgt_vocab_size'])
    enc_inputs = enc_inputs.at[1, src_len - 2:].set(config['padding_idx'])
    enc_outputs = jax.random.normal(ko, (bs, src_len, config['d_model']), jnp.float32)

    decoder_forward = make_decoder_forward(config)
    dec_out, self_attns, enc_attns = decoder_forward(fparams, dec_inputs, enc_inputs, enc_outputs)
    jax.block_until_ready((dec_out, self_attns, enc_attns))

    assert dec_out.shape == (bs, tgt_len, config['d_model'])
    assert len(self_attns) == config['n_layers'] and len(enc_attns) == config['n_layers']
    assert self_attns[0].shape == (bs, config['n_heads'], tgt_len, tgt_len)
    assert enc_attns[0].shape == (bs, config['n_heads'], tgt_len, src_len)
    assert bool(jnp.all(jnp.isfinite(dec_out)))
    for a in list(self_attns) + list(enc_attns):
        assert bool(jnp.all(jnp.isfinite(a)))
        # exact softmax: every attention row sums to 1 within f32 rounding
        assert bool(jnp.allclose(jnp.sum(a, axis=-1), 1.0, atol=1e-4))

    print("KERNEL_OK")
</pallas_src>

<mosaic_0001>
module attributes {stable_mosaic.version = 11 : i64} {
  func.func @_decoder_kernel(%arg0: i32, %arg1: memref<1x8x32xf32, #tpu.memory_space<vmem>>, %arg2: memref<1x8x32xf32, #tpu.memory_space<vmem>>, %arg3: memref<1x8x8xf32, #tpu.memory_space<vmem>>, %arg4: memref<1x8x8xf32, #tpu.memory_space<vmem>>, %arg5: memref<2x4x32x8xf32, #tpu.memory_space<vmem>>, %arg6: memref<2x4x1x8xf32, #tpu.memory_space<vmem>>, %arg7: memref<2x4x32x8xf32, #tpu.memory_space<vmem>>, %arg8: memref<2x4x1x8xf32, #tpu.memory_space<vmem>>, %arg9: memref<2x4x32x8xf32, #tpu.memory_space<vmem>>, %arg10: memref<2x4x1x8xf32, #tpu.memory_space<vmem>>, %arg11: memref<2x4x8x32xf32, #tpu.memory_space<vmem>>, %arg12: memref<2x1x32xf32, #tpu.memory_space<vmem>>, %arg13: memref<2x1x32xf32, #tpu.memory_space<vmem>>, %arg14: memref<2x1x32xf32, #tpu.memory_space<vmem>>, %arg15: memref<2x4x32x8xf32, #tpu.memory_space<vmem>>, %arg16: memref<2x4x1x8xf32, #tpu.memory_space<vmem>>, %arg17: memref<2x4x32x8xf32, #tpu.memory_space<vmem>>, %arg18: memref<2x4x1x8xf32, #tpu.memory_space<vmem>>, %arg19: memref<2x4x32x8xf32, #tpu.memory_space<vmem>>, %arg20: memref<2x4x1x8xf32, #tpu.memory_space<vmem>>, %arg21: memref<2x4x8x32xf32, #tpu.memory_space<vmem>>, %arg22: memref<2x1x32xf32, #tpu.memory_space<vmem>>, %arg23: memref<2x1x32xf32, #tpu.memory_space<vmem>>, %arg24: memref<2x1x32xf32, #tpu.memory_space<vmem>>, %arg25: memref<2x32x64xf32, #tpu.memory_space<vmem>>, %arg26: memref<2x1x64xf32, #tpu.memory_space<vmem>>, %arg27: memref<2x64x32xf32, #tpu.memory_space<vmem>>, %arg28: memref<2x1x32xf32, #tpu.memory_space<vmem>>, %arg29: memref<2x1x32xf32, #tpu.memory_space<vmem>>, %arg30: memref<2x1x32xf32, #tpu.memory_space<vmem>>, %arg31: memref<2x1x32xf32, #tpu.memory_space<vmem>>, %arg32: memref<2x1x32xf32, #tpu.memory_space<vmem>>, %arg33: memref<1x8x32xf32, #tpu.memory_space<vmem>>, %arg34: memref<2x1x8x32xf32, #tpu.memory_space<vmem>>, %arg35: memref<2x1x8x32xf32, #tpu.memory_space<vmem>>) attributes {dimension_semantics = [#tpu.dimension_semantics<parallel>], iteration_bounds = array<i64: 2>, scalar_prefetch = 0 : i64, scratch_operands = 0 : i64, tpu.core_type = #tpu.core_type<tc>, window_params = [{transform_indices = @transform_0, window_bounds = array<i64: 1, 8, 32>}, {transform_indices = @transform_1, window_bounds = array<i64: 1, 8, 32>}, {transform_indices = @transform_2, window_bounds = array<i64: 1, 8, 8>}, {transform_indices = @transform_3, window_bounds = array<i64: 1, 8, 8>}, {pipeline_mode = #tpu.pipeline_mode<synchronous>, transform_indices = @transform_4, window_bounds = array<i64: 2, 4, 32, 8>}, {pipeline_mode = #tpu.pipeline_mode<synchronous>, transform_indices = @transform_5, window_bounds = array<i64: 2, 4, 1, 8>}, {pipeline_mode = #tpu.pipeline_mode<synchronous>, transform_indices = @transform_6, window_bounds = array<i64: 2, 4, 32, 8>}, {pipeline_mode = #tpu.pipeline_mode<synchronous>, transform_indices = @transform_7, window_bounds = array<i64: 2, 4, 1, 8>}, {pipeline_mode = #tpu.pipeline_mode<synchronous>, transform_indices = @transform_8, window_bounds = array<i64: 2, 4, 32, 8>}, {pipeline_mode = #tpu.pipeline_mode<synchronous>, transform_indices = @transform_9, window_bounds = array<i64: 2, 4, 1, 8>}, {pipeline_mode = #tpu.pipeline_mode<synchronous>, transform_indices = @transform_10, window_bounds = array<i64: 2, 4, 8, 32>}, {pipeline_mode = #tpu.pipeline_mode<synchronous>, transform_indices = @transform_11, window_bounds = array<i64: 2, 1, 32>}, {pipeline_mode = #tpu.pipeline_mode<synchronous>, transform_indices = @transform_12, window_bounds = array<i64: 2, 1, 32>}, {pipeline_mode = #tpu.pipeline_mode<synchronous>, transform_indices = @transform_13, window_bounds = array<i64: 2, 1, 32>}, {pipeline_mode = #tpu.pipeline_mode<synchronous>, transform_indices = @transform_14, window_bounds = array<i64: 2, 4, 32, 8>}, {pipeline_mode = #tpu.pipeline_mode<synchronous>, transform_indices = @transform_15, window_bounds = array<i64: 2, 4, 1, 8>}, {pipeline_mode = #tpu.pipeline_mode<synchronous>, transform_indices = @transform_16, window_bounds = array<i64: 2, 4, 32, 8>}, {pipeline_mode = #tpu.pipeline_mode<synchronous>, transform_indices = @transform_17, window_bounds = array<i64: 2, 4, 1, 8>}, {pipeline_mode = #tpu.pipeline_mode<synchronous>, transform_indices = @transform_18, window_bounds = array<i64: 2, 4, 32, 8>}, {pipeline_mode = #tpu.pipeline_mode<synchronous>, transform_indices = @transform_19, window_bounds = array<i64: 2, 4, 1, 8>}, {pipeline_mode = #tpu.pipeline_mode<synchronous>, transform_indices = @transform_20, window_bounds = array<i64: 2, 4, 8, 32>}, {pipeline_mode = #tpu.pipeline_mode<synchronous>, transform_indices = @transform_21, window_bounds = array<i64: 2, 1, 32>}, {pipeline_mode = #tpu.pipeline_mode<synchronous>, transform_indices = @transform_22, window_bounds = array<i64: 2, 1, 32>}, {pipeline_mode = #tpu.pipeline_mode<synchronous>, transform_indices = @transform_23, window_bounds = array<i64: 2, 1, 32>}, {pipeline_mode = #tpu.pipeline_mode<synchronous>, transform_indices = @transform_24, window_bounds = array<i64: 2, 32, 64>}, {pipeline_mode = #tpu.pipeline_mode<synchronous>, transform_indices = @transform_25, window_bounds = array<i64: 2, 1, 64>}, {pipeline_mode = #tpu.pipeline_mode<synchronous>, transform_indices = @transform_26, window_bounds = array<i64: 2, 64, 32>}, {pipeline_mode = #tpu.pipeline_mode<synchronous>, transform_indices = @transform_27, window_bounds = array<i64: 2, 1, 32>}, {pipeline_mode = #tpu.pipeline_mode<synchronous>, transform_indices = @transform_28, window_bounds = array<i64: 2, 1, 32>}, {pipeline_mode = #tpu.pipeline_mode<synchronous>, transform_indices = @transform_29, window_bounds = array<i64: 2, 1, 32>}, {pipeline_mode = #tpu.pipeline_mode<synchronous>, transform_indices = @transform_30, window_bounds = array<i64: 2, 1, 32>}, {pipeline_mode = #tpu.pipeline_mode<synchronous>, transform_indices = @transform_31, window_bounds = array<i64: 2, 1, 32>}, {transform_indices = @transform_32, window_bounds = array<i64: 1, 8, 32>}, {transform_indices = @transform_33, window_bounds = array<i64: 2, 1, 8, 32>}, {transform_indices = @transform_34, window_bounds = array<i64: 2, 1, 8, 32>}]} {
    %c0 = arith.constant 0 : index
    %c0_0 = arith.constant 0 : index
    %c0_1 = arith.constant 0 : index
    %0 = vector.load %arg1[%c0, %c0_0, %c0_1] : memref<1x8x32xf32, #tpu.memory_space<vmem>>, vector<1x8x32xf32>
    %1 = vector.shape_cast %0 : vector<1x8x32xf32> to vector<8x32xf32>
    %c0_2 = arith.constant 0 : index
    %c0_3 = arith.constant 0 : index
    %c0_4 = arith.constant 0 : index
    %2 = vector.load %arg2[%c0_2, %c0_3, %c0_4] : memref<1x8x32xf32, #tpu.memory_space<vmem>>, vector<1x8x32xf32>
    %3 = vector.shape_cast %2 : vector<1x8x32xf32> to vector<8x32xf32>
    %c0_5 = arith.constant 0 : index
    %c0_6 = arith.constant 0 : index
    %c0_7 = arith.constant 0 : index
    %4 = vector.load %arg3[%c0_5, %c0_6, %c0_7] : memref<1x8x8xf32, #tpu.memory_space<vmem>>, vector<1x8x8xf32>
    %5 = vector.shape_cast %4 : vector<1x8x8xf32> to vector<8x8xf32>
    %c0_8 = arith.constant 0 : index
    %c0_9 = arith.constant 0 : index
    %c0_10 = arith.constant 0 : index
    %6 = vector.load %arg4[%c0_8, %c0_9, %c0_10] : memref<1x8x8xf32, #tpu.memory_space<vmem>>, vector<1x8x8xf32>
    %7 = vector.shape_cast %6 : vector<1x8x8xf32> to vector<8x8xf32>
    %c0_11 = arith.constant 0 : index
    %c0_12 = arith.constant 0 : index
    %c0_13 = arith.constant 0 : index
    %c0_14 = arith.constant 0 : index
    %8 = vector.load %arg5[%c0_11, %c0_12, %c0_13, %c0_14] : memref<2x4x32x8xf32, #tpu.memory_space<vmem>>, vector<1x1x32x8xf32>
    %9 = vector.shape_cast %8 : vector<1x1x32x8xf32> to vector<32x8xf32>
    %cst = arith.constant dense<0.000000e+00> : vector<8x8xf32>
    %10 = tpu.matmul %1, %9, %cst {dimension_numbers = #tpu.dot_dimension_numbers<[1], [0], [0], [1], [0, 0, 1, 1], [], []>} : vector<8x32xf32>, vector<32x8xf32>, vector<8x8xf32> -> vector<8x8xf32>
    %c0_15 = arith.constant 0 : index
    %c0_16 = arith.constant 0 : index
    %c0_17 = arith.constant 0 : index
    %c0_18 = arith.constant 0 : index
    %11 = vector.load %arg6[%c0_15, %c0_16, %c0_17, %c0_18] : memref<2x4x1x8xf32, #tpu.memory_space<vmem>>, vector<1x1x1x8xf32>
    %12 = vector.shape_cast %11 : vector<1x1x1x8xf32> to vector<1x8xf32>
    %13 = vector.broadcast %12 : vector<1x8xf32> to vector<8x8xf32>
    %14 = arith.addf %10, %13 : vector<8x8xf32>
    %c0_19 = arith.constant 0 : index
    %c0_20 = arith.constant 0 : index
    %c0_21 = arith.constant 0 : index
    %c0_22 = arith.constant 0 : index
    %15 = vector.load %arg7[%c0_19, %c0_20, %c0_21, %c0_22] : memref<2x4x32x8xf32, #tpu.memory_space<vmem>>, vector<1x1x32x8xf32>
    %16 = vector.shape_cast %15 : vector<1x1x32x8xf32> to vector<32x8xf32>
    %cst_23 = arith.constant dense<0.000000e+00> : vector<8x8xf32>
    %17 = tpu.matmul %1, %16, %cst_23 {dimension_numbers = #tpu.dot_dimension_numbers<[1], [0], [0], [1], [0, 0, 1, 1], [], []>} : vector<8x32xf32>, vector<32x8xf32>, vector<8x8xf32> -> vector<8x8xf32>
    %c0_24 = arith.constant 0 : index
    %c0_25 = arith.constant 0 : index
    %c0_26 = arith.constant 0 : index
    %c0_27 = arith.constant 0 : index
    %18 = vector.load %arg8[%c0_24, %c0_25, %c0_26, %c0_27] : memref<2x4x1x8xf32, #tpu.memory_space<vmem>>, vector<1x1x1x8xf32>
    %19 = vector.shape_cast %18 : vector<1x1x1x8xf32> to vector<1x8xf32>
    %20 = vector.broadcast %19 : vector<1x8xf32> to vector<8x8xf32>
    %21 = arith.addf %17, %20 : vector<8x8xf32>
    %c0_28 = arith.constant 0 : index
    %c0_29 = arith.constant 0 : index
    %c0_30 = arith.constant 0 : index
    %c0_31 = arith.constant 0 : index
    %22 = vector.load %arg9[%c0_28, %c0_29, %c0_30, %c0_31] : memref<2x4x32x8xf32, #tpu.memory_space<vmem>>, vector<1x1x32x8xf32>
    %23 = vector.shape_cast %22 : vector<1x1x32x8xf32> to vector<32x8xf32>
    %cst_32 = arith.constant dense<0.000000e+00> : vector<8x8xf32>
    %24 = tpu.matmul %1, %23, %cst_32 {dimension_numbers = #tpu.dot_dimension_numbers<[1], [0], [0], [1], [0, 0, 1, 1], [], []>} : vector<8x32xf32>, vector<32x8xf32>, vector<8x8xf32> -> vector<8x8xf32>
    %c0_33 = arith.constant 0 : index
    %c0_34 = arith.constant 0 : index
    %c0_35 = arith.constant 0 : index
    %c0_36 = arith.constant 0 : index
    %25 = vector.load %arg10[%c0_33, %c0_34, %c0_35, %c0_36] : memref<2x4x1x8xf32, #tpu.memory_space<vmem>>, vector<1x1x1x8xf32>
    %26 = vector.shape_cast %25 : vector<1x1x1x8xf32> to vector<1x8xf32>
    %27 = vector.broadcast %26 : vector<1x8xf32> to vector<8x8xf32>
    %28 = arith.addf %24, %27 : vector<8x8xf32>
    %cst_37 = arith.constant dense<0.000000e+00> : vector<8x8xf32>
    %29 = tpu.matmul %14, %21, %cst_37 {dimension_numbers = #tpu.dot_dimension_numbers<[1], [1], [0], [0], [0, 0, 1, 0], [], []>} : vector<8x8xf32>, vector<8x8xf32>, vector<8x8xf32> -> vector<8x8xf32>
    %30 = arith.addf %29, %5 : vector<8x8xf32>
    %cst_38 = arith.constant dense<0xFF800000> : vector<8xf32>
    %31 = vector.multi_reduction <maximumf>, %30, %cst_38 [1] : vector<8x8xf32> to vector<8xf32>
    %32 = vector.shape_cast %31 : vector<8xf32> to vector<8x1xf32>
    %33 = vector.broadcast %32 : vector<8x1xf32> to vector<8x8xf32>
    %34 = arith.subf %30, %33 : vector<8x8xf32>
    %35 = math.exp %34 : vector<8x8xf32>
    %cst_39 = arith.constant dense<0.000000e+00> : vector<8xf32>
    %36 = vector.multi_reduction <add>, %35, %cst_39 [1] : vector<8x8xf32> to vector<8xf32>
    %37 = vector.shape_cast %36 : vector<8xf32> to vector<8x1xf32>
    %38 = vector.broadcast %37 : vector<8x1xf32> to vector<8x8xf32>
    %39 = arith.divf %35, %38 : vector<8x8xf32>
    %cst_40 = arith.constant dense<0.000000e+00> : vector<8x8xf32>
    %40 = tpu.matmul %39, %28, %cst_40 {dimension_numbers = #tpu.dot_dimension_numbers<[1], [0], [0], [1], [0, 0, 1, 1], [], []>} : vector<8x8xf32>, vector<8x8xf32>, vector<8x8xf32> -> vector<8x8xf32>
    %c0_41 = arith.constant 0 : index
    %c0_42 = arith.constant 0 : index
    %c0_43 = arith.constant 0 : index
    %c0_44 = arith.constant 0 : index
    %41 = vector.load %arg11[%c0_41, %c0_42, %c0_43, %c0_44] : memref<2x4x8x32xf32, #tpu.memory_space<vmem>>, vector<1x1x8x32xf32>
    %42 = vector.shape_cast %41 : vector<1x1x8x32xf32> to vector<8x32xf32>
    %cst_45 = arith.constant dense<0.000000e+00> : vector<8x32xf32>
    %43 = tpu.matmul %40, %42, %cst_45 {dimension_numbers = #tpu.dot_dimension_numbers<[1], [0], [0], [1], [0, 0, 1, 1], [], []>} : vector<8x8xf32>, vector<8x32xf32>, vector<8x32xf32> -> vector<8x32xf32>
    %c0_46 = arith.constant 0 : index
    %c1 = arith.constant 1 : index
    %c0_47 = arith.constant 0 : index
    %c0_48 = arith.constant 0 : index
    %44 = vector.load %arg5[%c0_46, %c1, %c0_47, %c0_48] : memref<2x4x32x8xf32, #tpu.memory_space<vmem>>, vector<1x1x32x8xf32>
    %45 = vector.shape_cast %44 : vector<1x1x32x8xf32> to vector<32x8xf32>
    %cst_49 = arith.constant dense<0.000000e+00> : vector<8x8xf32>
    %46 = tpu.matmul %1, %45, %cst_49 {dimension_numbers = #tpu.dot_dimension_numbers<[1], [0], [0], [1], [0, 0, 1, 1], [], []>} : vector<8x32xf32>, vector<32x8xf32>, vector<8x8xf32> -> vector<8x8xf32>
    %c0_50 = arith.constant 0 : index
    %c1_51 = arith.constant 1 : index
    %c0_52 = arith.constant 0 : index
    %c0_53 = arith.constant 0 : index
    %47 = vector.load %arg6[%c0_50, %c1_51, %c0_52, %c0_53] : memref<2x4x1x8xf32, #tpu.memory_space<vmem>>, vector<1x1x1x8xf32>
    %48 = vector.shape_cast %47 : vector<1x1x1x8xf32> to vector<1x8xf32>
    %49 = vector.broadcast %48 : vector<1x8xf32> to vector<8x8xf32>
    %50 = arith.addf %46, %49 : vector<8x8xf32>
    %c0_54 = arith.constant 0 : index
    %c1_55 = arith.constant 1 : index
    %c0_56 = arith.constant 0 : index
    %c0_57 = arith.constant 0 : index
    %51 = vector.load %arg7[%c0_54, %c1_55, %c0_56, %c0_57] : memref<2x4x32x8xf32, #tpu.memory_space<vmem>>, vector<1x1x32x8xf32>
    %52 = vector.shape_cast %51 : vector<1x1x32x8xf32> to vector<32x8xf32>
    %cst_58 = arith.constant dense<0.000000e+00> : vector<8x8xf32>
    %53 = tpu.matmul %1, %52, %cst_58 {dimension_numbers = #tpu.dot_dimension_numbers<[1], [0], [0], [1], [0, 0, 1, 1], [], []>} : vector<8x32xf32>, vector<32x8xf32>, vector<8x8xf32> -> vector<8x8xf32>
    %c0_59 = arith.constant 0 : index
    %c1_60 = arith.constant 1 : index
    %c0_61 = arith.constant 0 : index
    %c0_62 = arith.constant 0 : index
    %54 = vector.load %arg8[%c0_59, %c1_60, %c0_61, %c0_62] : memref<2x4x1x8xf32, #tpu.memory_space<vmem>>, vector<1x1x1x8xf32>
    %55 = vector.shape_cast %54 : vector<1x1x1x8xf32> to vector<1x8xf32>
    %56 = vector.broadcast %55 : vector<1x8xf32> to vector<8x8xf32>
    %57 = arith.addf %53, %56 : vector<8x8xf32>
    %c0_63 = arith.constant 0 : index
    %c1_64 = arith.constant 1 : index
    %c0_65 = arith.constant 0 : index
    %c0_66 = arith.constant 0 : index
    %58 = vector.load %arg9[%c0_63, %c1_64, %c0_65, %c0_66] : memref<2x4x32x8xf32, #tpu.memory_space<vmem>>, vector<1x1x32x8xf32>
    %59 = vector.shape_cast %58 : vector<1x1x32x8xf32> to vector<32x8xf32>
    %cst_67 = arith.constant dense<0.000000e+00> : vector<8x8xf32>
    %60 = tpu.matmul %1, %59, %cst_67 {dimension_numbers = #tpu.dot_dimension_numbers<[1], [0], [0], [1], [0, 0, 1, 1], [], []>} : vector<8x32xf32>, vector<32x8xf32>, vector<8x8xf32> -> vector<8x8xf32>
    %c0_68 = arith.constant 0 : index
    %c1_69 = arith.constant 1 : index
    %c0_70 = arith.constant 0 : index
    %c0_71 = arith.constant 0 : index
    %61 = vector.load %arg10[%c0_68, %c1_69, %c0_70, %c0_71] : memref<2x4x1x8xf32, #tpu.memory_space<vmem>>, vector<1x1x1x8xf32>
    %62 = vector.shape_cast %61 : vector<1x1x1x8xf32> to vector<1x8xf32>
    %63 = vector.broadcast %62 : vector<1x8xf32> to vector<8x8xf32>
    %64 = arith.addf %60, %63 : vector<8x8xf32>
    %cst_72 = arith.constant dense<0.000000e+00> : vector<8x8xf32>
    %65 = tpu.matmul %50, %57, %cst_72 {dimension_numbers = #tpu.dot_dimension_numbers<[1], [1], [0], [0], [0, 0, 1, 0], [], []>} : vector<8x8xf32>, vector<8x8xf32>, vector<8x8xf32> -> vector<8x8xf32>
    %66 = arith.addf %65, %5 : vector<8x8xf32>
    %cst_73 = arith.constant dense<0xFF800000> : vector<8xf32>
    %67 = vector.multi_reduction <maximumf>, %66, %cst_73 [1] : vector<8x8xf32> to vector<8xf32>
    %68 = vector.shape_cast %67 : vector<8xf32> to vector<8x1xf32>
    %69 = vector.broadcast %68 : vector<8x1xf32> to vector<8x8xf32>
    %70 = arith.subf %66, %69 : vector<8x8xf32>
    %71 = math.exp %70 : vector<8x8xf32>
    %cst_74 = arith.constant dense<0.000000e+00> : vector<8xf32>
    %72 = vector.multi_reduction <add>, %71, %cst_74 [1] : vector<8x8xf32> to vector<8xf32>
    %73 = vector.shape_cast %72 : vector<8xf32> to vector<8x1xf32>
    %74 = vector.broadcast %73 : vector<8x1xf32> to vector<8x8xf32>
    %75 = arith.divf %71, %74 : vector<8x8xf32>
    %cst_75 = arith.constant dense<0.000000e+00> : vector<8x8xf32>
    %76 = tpu.matmul %75, %64, %cst_75 {dimension_numbers = #tpu.dot_dimension_numbers<[1], [0], [0], [1], [0, 0, 1, 1], [], []>} : vector<8x8xf32>, vector<8x8xf32>, vector<8x8xf32> -> vector<8x8xf32>
    %c0_76 = arith.constant 0 : index
    %c1_77 = arith.constant 1 : index
    %c0_78 = arith.constant 0 : index
    %c0_79 = arith.constant 0 : index
    %77 = vector.load %arg11[%c0_76, %c1_77, %c0_78, %c0_79] : memref<2x4x8x32xf32, #tpu.memory_space<vmem>>, vector<1x1x8x32xf32>
    %78 = vector.shape_cast %77 : vector<1x1x8x32xf32> to vector<8x32xf32>
    %cst_80 = arith.constant dense<0.000000e+00> : vector<8x32xf32>
    %79 = tpu.matmul %76, %78, %cst_80 {dimension_numbers = #tpu.dot_dimension_numbers<[1], [0], [0], [1], [0, 0, 1, 1], [], []>} : vector<8x8xf32>, vector<8x32xf32>, vector<8x32xf32> -> vector<8x32xf32>
    %80 = arith.addf %43, %79 : vector<8x32xf32>
    %c0_81 = arith.constant 0 : index
    %c2 = arith.constant 2 : index
    %c0_82 = arith.constant 0 : index
    %c0_83 = arith.constant 0 : index
    %81 = vector.load %arg5[%c0_81, %c2, %c0_82, %c0_83] : memref<2x4x32x8xf32, #tpu.memory_space<vmem>>, vector<1x1x32x8xf32>
    %82 = vector.shape_cast %81 : vector<1x1x32x8xf32> to vector<32x8xf32>
    %cst_84 = arith.constant dense<0.000000e+00> : vector<8x8xf32>
    %83 = tpu.matmul %1, %82, %cst_84 {dimension_numbers = #tpu.dot_dimension_numbers<[1], [0], [0], [1], [0, 0, 1, 1], [], []>} : vector<8x32xf32>, vector<32x8xf32>, vector<8x8xf32> -> vector<8x8xf32>
    %c0_85 = arith.constant 0 : index
    %c2_86 = arith.constant 2 : index
    %c0_87 = arith.constant 0 : index
    %c0_88 = arith.constant 0 : index
    %84 = vector.load %arg6[%c0_85, %c2_86, %c0_87, %c0_88] : memref<2x4x1x8xf32, #tpu.memory_space<vmem>>, vector<1x1x1x8xf32>
    %85 = vector.shape_cast %84 : vector<1x1x1x8xf32> to vector<1x8xf32>
    %86 = vector.broadcast %85 : vector<1x8xf32> to vector<8x8xf32>
    %87 = arith.addf %83, %86 : vector<8x8xf32>
    %c0_89 = arith.constant 0 : index
    %c2_90 = arith.constant 2 : index
    %c0_91 = arith.constant 0 : index
    %c0_92 = arith.constant 0 : index
    %88 = vector.load %arg7[%c0_89, %c2_90, %c0_91, %c0_92] : memref<2x4x32x8xf32, #tpu.memory_space<vmem>>, vector<1x1x32x8xf32>
    %89 = vector.shape_cast %88 : vector<1x1x32x8xf32> to vector<32x8xf32>
    %cst_93 = arith.constant dense<0.000000e+00> : vector<8x8xf32>
    %90 = tpu.matmul %1, %89, %cst_93 {dimension_numbers = #tpu.dot_dimension_numbers<[1], [0], [0], [1], [0, 0, 1, 1], [], []>} : vector<8x32xf32>, vector<32x8xf32>, vector<8x8xf32> -> vector<8x8xf32>
    %c0_94 = arith.constant 0 : index
    %c2_95 = arith.constant 2 : index
    %c0_96 = arith.constant 0 : index
    %c0_97 = arith.constant 0 : index
    %91 = vector.load %arg8[%c0_94, %c2_95, %c0_96, %c0_97] : memref<2x4x1x8xf32, #tpu.memory_space<vmem>>, vector<1x1x1x8xf32>
    %92 = vector.shape_cast %91 : vector<1x1x1x8xf32> to vector<1x8xf32>
    %93 = vector.broadcast %92 : vector<1x8xf32> to vector<8x8xf32>
    %94 = arith.addf %90, %93 : vector<8x8xf32>
    %c0_98 = arith.constant 0 : index
    %c2_99 = arith.constant 2 : index
    %c0_100 = arith.constant 0 : index
    %c0_101 = arith.constant 0 : index
    %95 = vector.load %arg9[%c0_98, %c2_99, %c0_100, %c0_101] : memref<2x4x32x8xf32, #tpu.memory_space<vmem>>, vector<1x1x32x8xf32>
    %96 = vector.shape_cast %95 : vector<1x1x32x8xf32> to vector<32x8xf32>
    %cst_102 = arith.constant dense<0.000000e+00> : vector<8x8xf32>
    %97 = tpu.matmul %1, %96, %cst_102 {dimension_numbers = #tpu.dot_dimension_numbers<[1], [0], [0], [1], [0, 0, 1, 1], [], []>} : vector<8x32xf32>, vector<32x8xf32>, vector<8x8xf32> -> vector<8x8xf32>
    %c0_103 = arith.constant 0 : index
    %c2_104 = arith.constant 2 : index
    %c0_105 = arith.constant 0 : index
    %c0_106 = arith.constant 0 : index
    %98 = vector.load %arg10[%c0_103, %c2_104, %c0_105, %c0_106] : memref<2x4x1x8xf32, #tpu.memory_space<vmem>>, vector<1x1x1x8xf32>
    %99 = vector.shape_cast %98 : vector<1x1x1x8xf32> to vector<1x8xf32>
    %100 = vector.broadcast %99 : vector<1x8xf32> to vector<8x8xf32>
    %101 = arith.addf %97, %100 : vector<8x8xf32>
    %cst_107 = arith.constant dense<0.000000e+00> : vector<8x8xf32>
    %102 = tpu.matmul %87, %94, %cst_107 {dimension_numbers = #tpu.dot_dimension_numbers<[1], [1], [0], [0], [0, 0, 1, 0], [], []>} : vector<8x8xf32>, vector<8x8xf32>, vector<8x8xf32> -> vector<8x8xf32>
    %103 = arith.addf %102, %5 : vector<8x8xf32>
    %cst_108 = arith.constant dense<0xFF800000> : vector<8xf32>
    %104 = vector.multi_reduction <maximumf>, %103, %cst_108 [1] : vector<8x8xf32> to vector<8xf32>
    %105 = vector.shape_cast %104 : vector<8xf32> to vector<8x1xf32>
    %106 = vector.broadcast %105 : vector<8x1xf32> to vector<8x8xf32>
    %107 = arith.subf %103, %106 : vector<8x8xf32>
    %108 = math.exp %107 : vector<8x8xf32>
    %cst_109 = arith.constant dense<0.000000e+00> : vector<8xf32>
    %109 = vector.multi_reduction <add>, %108, %cst_109 [1] : vector<8x8xf32> to vector<8xf32>
    %110 = vector.shape_cast %109 : vector<8xf32> to vector<8x1xf32>
    %111 = vector.broadcast %110 : vector<8x1xf32> to vector<8x8xf32>
    %112 = arith.divf %108, %111 : vector<8x8xf32>
    %cst_110 = arith.constant dense<0.000000e+00> : vector<8x8xf32>
    %113 = tpu.matmul %112, %101, %cst_110 {dimension_numbers = #tpu.dot_dimension_numbers<[1], [0], [0], [1], [0, 0, 1, 1], [], []>} : vector<8x8xf32>, vector<8x8xf32>, vector<8x8xf32> -> vector<8x8xf32>
    %c0_111 = arith.constant 0 : index
    %c2_112 = arith.constant 2 : index
    %c0_113 = arith.constant 0 : index
    %c0_114 = arith.constant 0 : index
    %114 = vector.load %arg11[%c0_111, %c2_112, %c0_113, %c0_114] : memref<2x4x8x32xf32, #tpu.memory_space<vmem>>, vector<1x1x8x32xf32>
    %115 = vector.shape_cast %114 : vector<1x1x8x32xf32> to vector<8x32xf32>
    %cst_115 = arith.constant dense<0.000000e+00> : vector<8x32xf32>
    %116 = tpu.matmul %113, %115, %cst_115 {dimension_numbers = #tpu.dot_dimension_numbers<[1], [0], [0], [1], [0, 0, 1, 1], [], []>} : vector<8x8xf32>, vector<8x32xf32>, vector<8x32xf32> -> vector<8x32xf32>
    %117 = arith.addf %80, %116 : vector<8x32xf32>
    %c0_116 = arith.constant 0 : index
    %c3 = arith.constant 3 : index
    %c0_117 = arith.constant 0 : index
    %c0_118 = arith.constant 0 : index
    %118 = vector.load %arg5[%c0_116, %c3, %c0_117, %c0_118] : memref<2x4x32x8xf32, #tpu.memory_space<vmem>>, vector<1x1x32x8xf32>
    %119 = vector.shape_cast %118 : vector<1x1x32x8xf32> to vector<32x8xf32>
    %cst_119 = arith.constant dense<0.000000e+00> : vector<8x8xf32>
    %120 = tpu.matmul %1, %119, %cst_119 {dimension_numbers = #tpu.dot_dimension_numbers<[1], [0], [0], [1], [0, 0, 1, 1], [], []>} : vector<8x32xf32>, vector<32x8xf32>, vector<8x8xf32> -> vector<8x8xf32>
    %c0_120 = arith.constant 0 : index
    %c3_121 = arith.constant 3 : index
    %c0_122 = arith.constant 0 : index
    %c0_123 = arith.constant 0 : index
    %121 = vector.load %arg6[%c0_120, %c3_121, %c0_122, %c0_123] : memref<2x4x1x8xf32, #tpu.memory_space<vmem>>, vector<1x1x1x8xf32>
    %122 = vector.shape_cast %121 : vector<1x1x1x8xf32> to vector<1x8xf32>
    %123 = vector.broadcast %122 : vector<1x8xf32> to vector<8x8xf32>
    %124 = arith.addf %120, %123 : vector<8x8xf32>
    %c0_124 = arith.constant 0 : index
    %c3_125 = arith.constant 3 : index
    %c0_126 = arith.constant 0 : index
    %c0_127 = arith.constant 0 : index
    %125 = vector.load %arg7[%c0_124, %c3_125, %c0_126, %c0_127] : memref<2x4x32x8xf32, #tpu.memory_space<vmem>>, vector<1x1x32x8xf32>
    %126 = vector.shape_cast %125 : vector<1x1x32x8xf32> to vector<32x8xf32>
    %cst_128 = arith.constant dense<0.000000e+00> : vector<8x8xf32>
    %127 = tpu.matmul %1, %126, %cst_128 {dimension_numbers = #tpu.dot_dimension_numbers<[1], [0], [0], [1], [0, 0, 1, 1], [], []>} : vector<8x32xf32>, vector<32x8xf32>, vector<8x8xf32> -> vector<8x8xf32>
    %c0_129 = arith.constant 0 : index
    %c3_130 = arith.constant 3 : index
    %c0_131 = arith.constant 0 : index
    %c0_132 = arith.constant 0 : index
    %128 = vector.load %arg8[%c0_129, %c3_130, %c0_131, %c0_132] : memref<2x4x1x8xf32, #tpu.memory_space<vmem>>, vector<1x1x1x8xf32>
    %129 = vector.shape_cast %128 : vector<1x1x1x8xf32> to vector<1x8xf32>
    %130 = vector.broadcast %129 : vector<1x8xf32> to vector<8x8xf32>
    %131 = arith.addf %127, %130 : vector<8x8xf32>
    %c0_133 = arith.constant 0 : index
    %c3_134 = arith.constant 3 : index
    %c0_135 = arith.constant 0 : index
    %c0_136 = arith.constant 0 : index
    %132 = vector.load %arg9[%c0_133, %c3_134, %c0_135, %c0_136] : memref<2x4x32x8xf32, #tpu.memory_space<vmem>>, vector<1x1x32x8xf32>
    %133 = vector.shape_cast %132 : vector<1x1x32x8xf32> to vector<32x8xf32>
    %cst_137 = arith.constant dense<0.000000e+00> : vector<8x8xf32>
    %134 = tpu.matmul %1, %133, %cst_137 {dimension_numbers = #tpu.dot_dimension_numbers<[1], [0], [0], [1], [0, 0, 1, 1], [], []>} : vector<8x32xf32>, vector<32x8xf32>, vector<8x8xf32> -> vector<8x8xf32>
    %c0_138 = arith.constant 0 : index
    %c3_139 = arith.constant 3 : index
    %c0_140 = arith.constant 0 : index
    %c0_141 = arith.constant 0 : index
    %135 = vector.load %arg10[%c0_138, %c3_139, %c0_140, %c0_141] : memref<2x4x1x8xf32, #tpu.memory_space<vmem>>, vector<1x1x1x8xf32>
    %136 = vector.shape_cast %135 : vector<1x1x1x8xf32> to vector<1x8xf32>
    %137 = vector.broadcast %136 : vector<1x8xf32> to vector<8x8xf32>
    %138 = arith.addf %134, %137 : vector<8x8xf32>
    %cst_142 = arith.constant dense<0.000000e+00> : vector<8x8xf32>
    %139 = tpu.matmul %124, %131, %cst_142 {dimension_numbers = #tpu.dot_dimension_numbers<[1], [1], [0], [0], [0, 0, 1, 0], [], []>} : vector<8x8xf32>, vector<8x8xf32>, vector<8x8xf32> -> vector<8x8xf32>
    %140 = arith.addf %139, %5 : vector<8x8xf32>
    %cst_143 = arith.constant dense<0xFF800000> : vector<8xf32>
    %141 = vector.multi_reduction <maximumf>, %140, %cst_143 [1] : vector<8x8xf32> to vector<8xf32>
    %142 = vector.shape_cast %141 : vector<8xf32> to vector<8x1xf32>
    %143 = vector.broadcast %142 : vector<8x1xf32> to vector<8x8xf32>
    %144 = arith.subf %140, %143 : vector<8x8xf32>
    %145 = math.exp %144 : vector<8x8xf32>
    %cst_144 = arith.constant dense<0.000000e+00> : vector<8xf32>
    %146 = vector.multi_reduction <add>, %145, %cst_144 [1] : vector<8x8xf32> to vector<8xf32>
    %147 = vector.shape_cast %146 : vector<8xf32> to vector<8x1xf32>
    %148 = vector.broadcast %147 : vector<8x1xf32> to vector<8x8xf32>
    %149 = arith.divf %145, %148 : vector<8x8xf32>
    %cst_145 = arith.constant dense<0.000000e+00> : vector<8x8xf32>
    %150 = tpu.matmul %149, %138, %cst_145 {dimension_numbers = #tpu.dot_dimension_numbers<[1], [0], [0], [1], [0, 0, 1, 1], [], []>} : vector<8x8xf32>, vector<8x8xf32>, vector<8x8xf32> -> vector<8x8xf32>
    %c0_146 = arith.constant 0 : index
    %c3_147 = arith.constant 3 : index
    %c0_148 = arith.constant 0 : index
    %c0_149 = arith.constant 0 : index
    %151 = vector.load %arg11[%c0_146, %c3_147, %c0_148, %c0_149] : memref<2x4x8x32xf32, #tpu.memory_space<vmem>>, vector<1x1x8x32xf32>
    %152 = vector.shape_cast %151 : vector<1x1x8x32xf32> to vector<8x32xf32>
    %cst_150 = arith.constant dense<0.000000e+00> : vector<8x32xf32>
    %153 = tpu.matmul %150, %152, %cst_150 {dimension_numbers = #tpu.dot_dimension_numbers<[1], [0], [0], [1], [0, 0, 1, 1], [], []>} : vector<8x8xf32>, vector<8x32xf32>, vector<8x32xf32> -> vector<8x32xf32>
    %154 = arith.addf %117, %153 : vector<8x32xf32>
    %c0_151 = arith.constant 0 : index
    %c0_152 = arith.constant 0 : index
    %c0_153 = arith.constant 0 : index
    %155 = vector.load %arg12[%c0_151, %c0_152, %c0_153] : memref<2x1x32xf32, #tpu.memory_space<vmem>>, vector<1x1x32xf32>
    %156 = vector.shape_cast %155 : vector<1x1x32xf32> to vector<1x32xf32>
    %157 = vector.broadcast %156 : vector<1x32xf32> to vector<8x32xf32>
    %158 = arith.addf %154, %157 : vector<8x32xf32>
    %159 = arith.addf %158, %1 : vector<8x32xf32>
    %c0_154 = arith.constant 0 : index
    %c0_155 = arith.constant 0 : index
    %c0_156 = arith.constant 0 : index
    %160 = vector.load %arg13[%c0_154, %c0_155, %c0_156] : memref<2x1x32xf32, #tpu.memory_space<vmem>>, vector<1x1x32xf32>
    %161 = vector.shape_cast %160 : vector<1x1x32xf32> to vector<1x32xf32>
    %c0_157 = arith.constant 0 : index
    %c0_158 = arith.constant 0 : index
    %c0_159 = arith.constant 0 : index
    %162 = vector.load %arg14[%c0_157, %c0_158, %c0_159] : memref<2x1x32xf32, #tpu.memory_space<vmem>>, vector<1x1x32xf32>
    %163 = vector.shape_cast %162 : vector<1x1x32xf32> to vector<1x32xf32>
    %cst_160 = arith.constant dense<0.000000e+00> : vector<8xf32>
    %164 = vector.multi_reduction <add>, %159, %cst_160 [1] : vector<8x32xf32> to vector<8xf32>
    %165 = vector.shape_cast %164 : vector<8xf32> to vector<8x1xf32>
    %cst_161 = arith.constant 3.200000e+01 : f32
    %166 = vector.broadcast %cst_161 : f32 to vector<8x1xf32>
    %167 = arith.divf %165, %166 : vector<8x1xf32>
    %168 = vector.broadcast %167 : vector<8x1xf32> to vector<8x32xf32>
    %169 = arith.subf %159, %168 : vector<8x32xf32>
    %170 = arith.mulf %169, %169 : vector<8x32xf32>
    %cst_162 = arith.constant dense<0.000000e+00> : vector<8xf32>
    %171 = vector.multi_reduction <add>, %170, %cst_162 [1] : vector<8x32xf32> to vector<8xf32>
    %172 = vector.shape_cast %171 : vector<8xf32> to vector<8x1xf32>
    %cst_163 = arith.constant 3.200000e+01 : f32
    %173 = vector.broadcast %cst_163 : f32 to vector<8x1xf32>
    %174 = arith.divf %172, %173 : vector<8x1xf32>
    %175 = vector.broadcast %167 : vector<8x1xf32> to vector<8x32xf32>
    %176 = arith.subf %159, %175 : vector<8x32xf32>
    %cst_164 = arith.constant 9.99999997E-7 : f32
    %177 = vector.broadcast %cst_164 : f32 to vector<8x1xf32>
    %178 = arith.addf %174, %177 : vector<8x1xf32>
    %179 = math.rsqrt %178 : vector<8x1xf32>
    %180 = vector.broadcast %179 : vector<8x1xf32> to vector<8x32xf32>
    %181 = arith.mulf %176, %180 : vector<8x32xf32>
    %182 = vector.broadcast %161 : vector<1x32xf32> to vector<8x32xf32>
    %183 = arith.mulf %181, %182 : vector<8x32xf32>
    %184 = vector.broadcast %163 : vector<1x32xf32> to vector<8x32xf32>
    %185 = arith.addf %183, %184 : vector<8x32xf32>
    %186 = arith.addf %185, %1 : vector<8x32xf32>
    %c0_165 = arith.constant 0 : index
    %c0_166 = arith.constant 0 : index
    %c0_167 = arith.constant 0 : index
    %187 = vector.load %arg31[%c0_165, %c0_166, %c0_167] : memref<2x1x32xf32, #tpu.memory_space<vmem>>, vector<1x1x32xf32>
    %188 = vector.shape_cast %187 : vector<1x1x32xf32> to vector<1x32xf32>
    %c0_168 = arith.constant 0 : index
    %c0_169 = arith.constant 0 : index
    %c0_170 = arith.constant 0 : index
    %189 = vector.load %arg32[%c0_168, %c0_169, %c0_170] : memref<2x1x32xf32, #tpu.memory_space<vmem>>, vector<1x1x32xf32>
    %190 = vector.shape_cast %189 : vector<1x1x32xf32> to vector<1x32xf32>
    %cst_171 = arith.constant dense<0.000000e+00> : vector<8xf32>
    %191 = vector.multi_reduction <add>, %186, %cst_171 [1] : vector<8x32xf32> to vector<8xf32>
    %192 = vector.shape_cast %191 : vector<8xf32> to vector<8x1xf32>
    %cst_172 = arith.constant 3.200000e+01 : f32
    %193 = vector.broadcast %cst_172 : f32 to vector<8x1xf32>
    %194 = arith.divf %192, %193 : vector<8x1xf32>
    %195 = vector.broadcast %194 : vector<8x1xf32> to vector<8x32xf32>
    %196 = arith.subf %186, %195 : vector<8x32xf32>
    %197 = arith.mulf %196, %196 : vector<8x32xf32>
    %cst_173 = arith.constant dense<0.000000e+00> : vector<8xf32>
    %198 = vector.multi_reduction <add>, %197, %cst_173 [1] : vector<8x32xf32> to vector<8xf32>
    %199 = vector.shape_cast %198 : vector<8xf32> to vector<8x1xf32>
    %cst_174 = arith.constant 3.200000e+01 : f32
    %200 = vector.broadcast %cst_174 : f32 to vector<8x1xf32>
    %201 = arith.divf %199, %200 : vector<8x1xf32>
    %202 = vector.broadcast %194 : vector<8x1xf32> to vector<8x32xf32>
    %203 = arith.subf %186, %202 : vector<8x32xf32>
    %cst_175 = arith.constant 9.99999997E-7 : f32
    %204 = vector.broadcast %cst_175 : f32 to vector<8x1xf32>
    %205 = arith.addf %201, %204 : vector<8x1xf32>
    %206 = math.rsqrt %205 : vector<8x1xf32>
    %207 = vector.broadcast %206 : vector<8x1xf32> to vector<8x32xf32>
    %208 = arith.mulf %203, %207 : vector<8x32xf32>
    %209 = vector.broadcast %188 : vector<1x32xf32> to vector<8x32xf32>
    %210 = arith.mulf %208, %209 : vector<8x32xf32>
    %211 = vector.broadcast %190 : vector<1x32xf32> to vector<8x32xf32>
    %212 = arith.addf %210, %211 : vector<8x32xf32>
    %213 = tpu.concatenate %39, %75, %112, %149 in 1 : vector<8x8xf32>, vector<8x8xf32>, vector<8x8xf32>, vector<8x8xf32> -> vector<8x32xf32>
    %c0_176 = arith.constant 0 : index
    %c0_177 = arith.constant 0 : index
    %c0_178 = arith.constant 0 : index
    %c0_179 = arith.constant 0 : index
    %214 = vector.load %arg34[%c0_176, %c0_177, %c0_178, %c0_179] : memref<2x1x8x32xf32, #tpu.memory_space<vmem>>, vector<1x1x8x32xf32>
    %215 = vector.shape_cast %214 : vector<1x1x8x32xf32> to vector<8x32xf32>
    %216 = vector.shape_cast %213 : vector<8x32xf32> to vector<1x1x8x32xf32>
    tpu.vector_store %arg34[%c0_176, %c0_177, %c0_178, %c0_179], %216 {strides = array<i32>} : memref<2x1x8x32xf32, #tpu.memory_space<vmem>>, vector<1x1x8x32xf32>,
    %c0_180 = arith.constant 0 : index
    %c0_181 = arith.constant 0 : index
    %c0_182 = arith.constant 0 : index
    %c0_183 = arith.constant 0 : index
    %217 = vector.load %arg15[%c0_180, %c0_181, %c0_182, %c0_183] : memref<2x4x32x8xf32, #tpu.memory_space<vmem>>, vector<1x1x32x8xf32>
    %218 = vector.shape_cast %217 : vector<1x1x32x8xf32> to vector<32x8xf32>
    %cst_184 = arith.constant dense<0.000000e+00> : vector<8x8xf32>
    %219 = tpu.matmul %212, %218, %cst_184 {dimension_numbers = #tpu.dot_dimension_numbers<[1], [0], [0], [1], [0, 0, 1, 1], [], []>} : vector<8x32xf32>, vector<32x8xf32>, vector<8x8xf32> -> vector<8x8xf32>
    %c0_185 = arith.constant 0 : index
    %c0_186 = arith.constant 0 : index
    %c0_187 = arith.constant 0 : index
    %c0_188 = arith.constant 0 : index
    %220 = vector.load %arg16[%c0_185, %c0_186, %c0_187, %c0_188] : memref<2x4x1x8xf32, #tpu.memory_space<vmem>>, vector<1x1x1x8xf32>
    %221 = vector.shape_cast %220 : vector<1x1x1x8xf32> to vector<1x8xf32>
    %222 = vector.broadcast %221 : vector<1x8xf32> to vector<8x8xf32>
    %223 = arith.addf %219, %222 : vector<8x8xf32>
    %c0_189 = arith.constant 0 : index
    %c0_190 = arith.constant 0 : index
    %c0_191 = arith.constant 0 : index
    %c0_192 = arith.constant 0 : index
    %224 = vector.load %arg17[%c0_189, %c0_190, %c0_191, %c0_192] : memref<2x4x32x8xf32, #tpu.memory_space<vmem>>, vector<1x1x32x8xf32>
    %225 = vector.shape_cast %224 : vector<1x1x32x8xf32> to vector<32x8xf32>
    %cst_193 = arith.constant dense<0.000000e+00> : vector<8x8xf32>
    %226 = tpu.matmul %3, %225, %cst_193 {dimension_numbers = #tpu.dot_dimension_numbers<[1], [0], [0], [1], [0, 0, 1, 1], [], []>} : vector<8x32xf32>, vector<32x8xf32>, vector<8x8xf32> -> vector<8x8xf32>
    %c0_194 = arith.constant 0 : index
    %c0_195 = arith.constant 0 : index
    %c0_196 = arith.constant 0 : index
    %c0_197 = arith.constant 0 : index
    %227 = vector.load %arg18[%c0_194, %c0_195, %c0_196, %c0_197] : memref<2x4x1x8xf32, #tpu.memory_space<vmem>>, vector<1x1x1x8xf32>
    %228 = vector.shape_cast %227 : vector<1x1x1x8xf32> to vector<1x8xf32>
    %229 = vector.broadcast %228 : vector<1x8xf32> to vector<8x8xf32>
    %230 = arith.addf %226, %229 : vector<8x8xf32>
    %c0_198 = arith.constant 0 : index
    %c0_199 = arith.constant 0 : index
    %c0_200 = arith.constant 0 : index
    %c0_201 = arith.constant 0 : index
    %231 = vector.load %arg19[%c0_198, %c0_199, %c0_200, %c0_201] : memref<2x4x32x8xf32, #tpu.memory_space<vmem>>, vector<1x1x32x8xf32>
    %232 = vector.shape_cast %231 : vector<1x1x32x8xf32> to vector<32x8xf32>
    %cst_202 = arith.constant dense<0.000000e+00> : vector<8x8xf32>
    %233 = tpu.matmul %3, %232, %cst_202 {dimension_numbers = #tpu.dot_dimension_numbers<[1], [0], [0], [1], [0, 0, 1, 1], [], []>} : vector<8x32xf32>, vector<32x8xf32>, vector<8x8xf32> -> vector<8x8xf32>
    %c0_203 = arith.constant 0 : index
    %c0_204 = arith.constant 0 : index
    %c0_205 = arith.constant 0 : index
    %c0_206 = arith.constant 0 : index
    %234 = vector.load %arg20[%c0_203, %c0_204, %c0_205, %c0_206] : memref<2x4x1x8xf32, #tpu.memory_space<vmem>>, vector<1x1x1x8xf32>
    %235 = vector.shape_cast %234 : vector<1x1x1x8xf32> to vector<1x8xf32>
    %236 = vector.broadcast %235 : vector<1x8xf32> to vector<8x8xf32>
    %237 = arith.addf %233, %236 : vector<8x8xf32>
    %cst_207 = arith.constant dense<0.000000e+00> : vector<8x8xf32>
    %238 = tpu.matmul %223, %230, %cst_207 {dimension_numbers = #tpu.dot_dimension_numbers<[1], [1], [0], [0], [0, 0, 1, 0], [], []>} : vector<8x8xf32>, vector<8x8xf32>, vector<8x8xf32> -> vector<8x8xf32>
    %239 = arith.addf %238, %7 : vector<8x8xf32>
    %cst_208 = arith.constant dense<0xFF800000> : vector<8xf32>
    %240 = vector.multi_reduction <maximumf>, %239, %cst_208 [1] : vector<8x8xf32> to vector<8xf32>
    %241 = vector.shape_cast %240 : vector<8xf32> to vector<8x1xf32>
    %242 = vector.broadcast %241 : vector<8x1xf32> to vector<8x8xf32>
    %243 = arith.subf %239, %242 : vector<8x8xf32>
    %244 = math.exp %243 : vector<8x8xf32>
    %cst_209 = arith.constant dense<0.000000e+00> : vector<8xf32>
    %245 = vector.multi_reduction <add>, %244, %cst_209 [1] : vector<8x8xf32> to vector<8xf32>
    %246 = vector.shape_cast %245 : vector<8xf32> to vector<8x1xf32>
    %247 = vector.broadcast %246 : vector<8x1xf32> to vector<8x8xf32>
    %248 = arith.divf %244, %247 : vector<8x8xf32>
    %cst_210 = arith.constant dense<0.000000e+00> : vector<8x8xf32>
    %249 = tpu.matmul %248, %237, %cst_210 {dimension_numbers = #tpu.dot_dimension_numbers<[1], [0], [0], [1], [0, 0, 1, 1], [], []>} : vector<8x8xf32>, vector<8x8xf32>, vector<8x8xf32> -> vector<8x8xf32>
    %c0_211 = arith.constant 0 : index
    %c0_212 = arith.constant 0 : index
    %c0_213 = arith.constant 0 : index
    %c0_214 = arith.constant 0 : index
    %250 = vector.load %arg21[%c0_211, %c0_212, %c0_213, %c0_214] : memref<2x4x8x32xf32, #tpu.memory_space<vmem>>, vector<1x1x8x32xf32>
    %251 = vector.shape_cast %250 : vector<1x1x8x32xf32> to vector<8x32xf32>
    %cst_215 = arith.constant dense<0.000000e+00> : vector<8x32xf32>
    %252 = tpu.matmul %249, %251, %cst_215 {dimension_numbers = #tpu.dot_dimension_numbers<[1], [0], [0], [1], [0, 0, 1, 1], [], []>} : vector<8x8xf32>, vector<8x32xf32>, vector<8x32xf32> -> vector<8x32xf32>
    %c0_216 = arith.constant 0 : index
    %c1_217 = arith.constant 1 : index
    %c0_218 = arith.constant 0 : index
    %c0_219 = arith.constant 0 : index
    %253 = vector.load %arg15[%c0_216, %c1_217, %c0_218, %c0_219] : memref<2x4x32x8xf32, #tpu.memory_space<vmem>>, vector<1x1x32x8xf32>
    %254 = vector.shape_cast %253 : vector<1x1x32x8xf32> to vector<32x8xf32>
    %cst_220 = arith.constant dense<0.000000e+00> : vector<8x8xf32>
    %255 = tpu.matmul %212, %254, %cst_220 {dimension_numbers = #tpu.dot_dimension_numbers<[1], [0], [0], [1], [0, 0, 1, 1], [], []>} : vector<8x32xf32>, vector<32x8xf32>, vector<8x8xf32> -> vector<8x8xf32>
    %c0_221 = arith.constant 0 : index
    %c1_222 = arith.constant 1 : index
    %c0_223 = arith.constant 0 : index
    %c0_224 = arith.constant 0 : index
    %256 = vector.load %arg16[%c0_221, %c1_222, %c0_223, %c0_224] : memref<2x4x1x8xf32, #tpu.memory_space<vmem>>, vector<1x1x1x8xf32>
    %257 = vector.shape_cast %256 : vector<1x1x1x8xf32> to vector<1x8xf32>
    %258 = vector.broadcast %257 : vector<1x8xf32> to vector<8x8xf32>
    %259 = arith.addf %255, %258 : vector<8x8xf32>
    %c0_225 = arith.constant 0 : index
    %c1_226 = arith.constant 1 : index
    %c0_227 = arith.constant 0 : index
    %c0_228 = arith.constant 0 : index
    %260 = vector.load %arg17[%c0_225, %c1_226, %c0_227, %c0_228] : memref<2x4x32x8xf32, #tpu.memory_space<vmem>>, vector<1x1x32x8xf32>
    %261 = vector.shape_cast %260 : vector<1x1x32x8xf32> to vector<32x8xf32>
    %cst_229 = arith.constant dense<0.000000e+00> : vector<8x8xf32>
    %262 = tpu.matmul %3, %261, %cst_229 {dimension_numbers = #tpu.dot_dimension_numbers<[1], [0], [0], [1], [0, 0, 1, 1], [], []>} : vector<8x32xf32>, vector<32x8xf32>, vector<8x8xf32> -> vector<8x8xf32>
    %c0_230 = arith.constant 0 : index
    %c1_231 = arith.constant 1 : index
    %c0_232 = arith.constant 0 : index
    %c0_233 = arith.constant 0 : index
    %263 = vector.load %arg18[%c0_230, %c1_231, %c0_232, %c0_233] : memref<2x4x1x8xf32, #tpu.memory_space<vmem>>, vector<1x1x1x8xf32>
    %264 = vector.shape_cast %263 : vector<1x1x1x8xf32> to vector<1x8xf32>
    %265 = vector.broadcast %264 : vector<1x8xf32> to vector<8x8xf32>
    %266 = arith.addf %262, %265 : vector<8x8xf32>
    %c0_234 = arith.constant 0 : index
    %c1_235 = arith.constant 1 : index
    %c0_236 = arith.constant 0 : index
    %c0_237 = arith.constant 0 : index
    %267 = vector.load %arg19[%c0_234, %c1_235, %c0_236, %c0_237] : memref<2x4x32x8xf32, #tpu.memory_space<vmem>>, vector<1x1x32x8xf32>
    %268 = vector.shape_cast %267 : vector<1x1x32x8xf32> to vector<32x8xf32>
    %cst_238 = arith.constant dense<0.000000e+00> : vector<8x8xf32>
    %269 = tpu.matmul %3, %268, %cst_238 {dimension_numbers = #tpu.dot_dimension_numbers<[1], [0], [0], [1], [0, 0, 1, 1], [], []>} : vector<8x32xf32>, vector<32x8xf32>, vector<8x8xf32> -> vector<8x8xf32>
    %c0_239 = arith.constant 0 : index
    %c1_240 = arith.constant 1 : index
    %c0_241 = arith.constant 0 : index
    %c0_242 = arith.constant 0 : index
    %270 = vector.load %arg20[%c0_239, %c1_240, %c0_241, %c0_242] : memref<2x4x1x8xf32, #tpu.memory_space<vmem>>, vector<1x1x1x8xf32>
    %271 = vector.shape_cast %270 : vector<1x1x1x8xf32> to vector<1x8xf32>
    %272 = vector.broadcast %271 : vector<1x8xf32> to vector<8x8xf32>
    %273 = arith.addf %269, %272 : vector<8x8xf32>
    %cst_243 = arith.constant dense<0.000000e+00> : vector<8x8xf32>
    %274 = tpu.matmul %259, %266, %cst_243 {dimension_numbers = #tpu.dot_dimension_numbers<[1], [1], [0], [0], [0, 0, 1, 0], [], []>} : vector<8x8xf32>, vector<8x8xf32>, vector<8x8xf32> -> vector<8x8xf32>
    %275 = arith.addf %274, %7 : vector<8x8xf32>
    %cst_244 = arith.constant dense<0xFF800000> : vector<8xf32>
    %276 = vector.multi_reduction <maximumf>, %275, %cst_244 [1] : vector<8x8xf32> to vector<8xf32>
    %277 = vector.shape_cast %276 : vector<8xf32> to vector<8x1xf32>
    %278 = vector.broadcast %277 : vector<8x1xf32> to vector<8x8xf32>
    %279 = arith.subf %275, %278 : vector<8x8xf32>
    %280 = math.exp %279 : vector<8x8xf32>
    %cst_245 = arith.constant dense<0.000000e+00> : vector<8xf32>
    %281 = vector.multi_reduction <add>, %280, %cst_245 [1] : vector<8x8xf32> to vector<8xf32>
    %282 = vector.shape_cast %281 : vector<8xf32> to vector<8x1xf32>
    %283 = vector.broadcast %282 : vector<8x1xf32> to vector<8x8xf32>
    %284 = arith.divf %280, %283 : vector<8x8xf32>
    %cst_246 = arith.constant dense<0.000000e+00> : vector<8x8xf32>
    %285 = tpu.matmul %284, %273, %cst_246 {dimension_numbers = #tpu.dot_dimension_numbers<[1], [0], [0], [1], [0, 0, 1, 1], [], []>} : vector<8x8xf32>, vector<8x8xf32>, vector<8x8xf32> -> vector<8x8xf32>
    %c0_247 = arith.constant 0 : index
    %c1_248 = arith.constant 1 : index
    %c0_249 = arith.constant 0 : index
    %c0_250 = arith.constant 0 : index
    %286 = vector.load %arg21[%c0_247, %c1_248, %c0_249, %c0_250] : memref<2x4x8x32xf32, #tpu.memory_space<vmem>>, vector<1x1x8x32xf32>
    %287 = vector.shape_cast %286 : vector<1x1x8x32xf32> to vector<8x32xf32>
    %cst_251 = arith.constant dense<0.000000e+00> : vector<8x32xf32>
    %288 = tpu.matmul %285, %287, %cst_251 {dimension_numbers = #tpu.dot_dimension_numbers<[1], [0], [0], [1], [0, 0, 1, 1], [], []>} : vector<8x8xf32>, vector<8x32xf32>, vector<8x32xf32> -> vector<8x32xf32>
    %289 = arith.addf %252, %288 : vector<8x32xf32>
    %c0_252 = arith.constant 0 : index
    %c2_253 = arith.constant 2 : index
    %c0_254 = arith.constant 0 : index
    %c0_255 = arith.constant 0 : index
    %290 = vector.load %arg15[%c0_252, %c2_253, %c0_254, %c0_255] : memref<2x4x32x8xf32, #tpu.memory_space<vmem>>, vector<1x1x32x8xf32>
    %291 = vector.shape_cast %290 : vector<1x1x32x8xf32> to vector<32x8xf32>
    %cst_256 = arith.constant dense<0.000000e+00> : vector<8x8xf32>
    %292 = tpu.matmul %212, %291, %cst_256 {dimension_numbers = #tpu.dot_dimension_numbers<[1], [0], [0], [1], [0, 0, 1, 1], [], []>} : vector<8x32xf32>, vector<32x8xf32>, vector<8x8xf32> -> vector<8x8xf32>
    %c0_257 = arith.constant 0 : index
    %c2_258 = arith.constant 2 : index
    %c0_259 = arith.constant 0 : index
    %c0_260 = arith.constant 0 : index
    %293 = vector.load %arg16[%c0_257, %c2_258, %c0_259, %c0_260] : memref<2x4x1x8xf32, #tpu.memory_space<vmem>>, vector<1x1x1x8xf32>
    %294 = vector.shape_cast %293 : vector<1x1x1x8xf32> to vector<1x8xf32>
    %295 = vector.broadcast %294 : vector<1x8xf32> to vector<8x8xf32>
    %296 = arith.addf %292, %295 : vector<8x8xf32>
    %c0_261 = arith.constant 0 : index
    %c2_262 = arith.constant 2 : index
    %c0_263 = arith.constant 0 : index
    %c0_264 = arith.constant 0 : index
    %297 = vector.load %arg17[%c0_261, %c2_262, %c0_263, %c0_264] : memref<2x4x32x8xf32, #tpu.memory_space<vmem>>, vector<1x1x32x8xf32>
    %298 = vector.shape_cast %297 : vector<1x1x32x8xf32> to vector<32x8xf32>
    %cst_265 = arith.constant dense<0.000000e+00> : vector<8x8xf32>
    %299 = tpu.matmul %3, %298, %cst_265 {dimension_numbers = #tpu.dot_dimension_numbers<[1], [0], [0], [1], [0, 0, 1, 1], [], []>} : vector<8x32xf32>, vector<32x8xf32>, vector<8x8xf32> -> vector<8x8xf32>
    %c0_266 = arith.constant 0 : index
    %c2_267 = arith.constant 2 : index
    %c0_268 = arith.constant 0 : index
    %c0_269 = arith.constant 0 : index
    %300 = vector.load %arg18[%c0_266, %c2_267, %c0_268, %c0_269] : memref<2x4x1x8xf32, #tpu.memory_space<vmem>>, vector<1x1x1x8xf32>
    %301 = vector.shape_cast %300 : vector<1x1x1x8xf32> to vector<1x8xf32>
    %302 = vector.broadcast %301 : vector<1x8xf32> to vector<8x8xf32>
    %303 = arith.addf %299, %302 : vector<8x8xf32>
    %c0_270 = arith.constant 0 : index
    %c2_271 = arith.constant 2 : index
    %c0_272 = arith.constant 0 : index
    %c0_273 = arith.constant 0 : index
    %304 = vector.load %arg19[%c0_270, %c2_271, %c0_272, %c0_273] : memref<2x4x32x8xf32, #tpu.memory_space<vmem>>, vector<1x1x32x8xf32>
    %305 = vector.shape_cast %304 : vector<1x1x32x8xf32> to vector<32x8xf32>
    %cst_274 = arith.constant dense<0.000000e+00> : vector<8x8xf32>
    %306 = tpu.matmul %3, %305, %cst_274 {dimension_numbers = #tpu.dot_dimension_numbers<[1], [0], [0], [1], [0, 0, 1, 1], [], []>} : vector<8x32xf32>, vector<32x8xf32>, vector<8x8xf32> -> vector<8x8xf32>
    %c0_275 = arith.constant 0 : index
    %c2_276 = arith.constant 2 : index
    %c0_277 = arith.constant 0 : index
    %c0_278 = arith.constant 0 : index
    %307 = vector.load %arg20[%c0_275, %c2_276, %c0_277, %c0_278] : memref<2x4x1x8xf32, #tpu.memory_space<vmem>>, vector<1x1x1x8xf32>
    %308 = vector.shape_cast %307 : vector<1x1x1x8xf32> to vector<1x8xf32>
    %309 = vector.broadcast %308 : vector<1x8xf32> to vector<8x8xf32>
    %310 = arith.addf %306, %309 : vector<8x8xf32>
    %cst_279 = arith.constant dense<0.000000e+00> : vector<8x8xf32>
    %311 = tpu.matmul %296, %303, %cst_279 {dimension_numbers = #tpu.dot_dimension_numbers<[1], [1], [0], [0], [0, 0, 1, 0], [], []>} : vector<8x8xf32>, vector<8x8xf32>, vector<8x8xf32> -> vector<8x8xf32>
    %312 = arith.addf %311, %7 : vector<8x8xf32>
    %cst_280 = arith.constant dense<0xFF800000> : vector<8xf32>
    %313 = vector.multi_reduction <maximumf>, %312, %cst_280 [1] : vector<8x8xf32> to vector<8xf32>
    %314 = vector.shape_cast %313 : vector<8xf32> to vector<8x1xf32>
    %315 = vector.broadcast %314 : vector<8x1xf32> to vector<8x8xf32>
    %316 = arith.subf %312, %315 : vector<8x8xf32>
    %317 = math.exp %316 : vector<8x8xf32>
    %cst_281 = arith.constant dense<0.000000e+00> : vector<8xf32>
    %318 = vector.multi_reduction <add>, %317, %cst_281 [1] : vector<8x8xf32> to vector<8xf32>
    %319 = vector.shape_cast %318 : vector<8xf32> to vector<8x1xf32>
    %320 = vector.broadcast %319 : vector<8x1xf32> to vector<8x8xf32>
    %321 = arith.divf %317, %320 : vector<8x8xf32>
    %cst_282 = arith.constant dense<0.000000e+00> : vector<8x8xf32>
    %322 = tpu.matmul %321, %310, %cst_282 {dimension_numbers = #tpu.dot_dimension_numbers<[1], [0], [0], [1], [0, 0, 1, 1], [], []>} : vector<8x8xf32>, vector<8x8xf32>, vector<8x8xf32> -> vector<8x8xf32>
    %c0_283 = arith.constant 0 : index
    %c2_284 = arith.constant 2 : index
    %c0_285 = arith.constant 0 : index
    %c0_286 = arith.constant 0 : index
    %323 = vector.load %arg21[%c0_283, %c2_284, %c0_285, %c0_286] : memref<2x4x8x32xf32, #tpu.memory_space<vmem>>, vector<1x1x8x32xf32>
    %324 = vector.shape_cast %323 : vector<1x1x8x32xf32> to vector<8x32xf32>
    %cst_287 = arith.constant dense<0.000000e+00> : vector<8x32xf32>
    %325 = tpu.matmul %322, %324, %cst_287 {dimension_numbers = #tpu.dot_dimension_numbers<[1], [0], [0], [1], [0, 0, 1, 1], [], []>} : vector<8x8xf32>, vector<8x32xf32>, vector<8x32xf32> -> vector<8x32xf32>
    %326 = arith.addf %289, %325 : vector<8x32xf32>
    %c0_288 = arith.constant 0 : index
    %c3_289 = arith.constant 3 : index
    %c0_290 = arith.constant 0 : index
    %c0_291 = arith.constant 0 : index
    %327 = vector.load %arg15[%c0_288, %c3_289, %c0_290, %c0_291] : memref<2x4x32x8xf32, #tpu.memory_space<vmem>>, vector<1x1x32x8xf32>
    %328 = vector.shape_cast %327 : vector<1x1x32x8xf32> to vector<32x8xf32>
    %cst_292 = arith.constant dense<0.000000e+00> : vector<8x8xf32>
    %329 = tpu.matmul %212, %328, %cst_292 {dimension_numbers = #tpu.dot_dimension_numbers<[1], [0], [0], [1], [0, 0, 1, 1], [], []>} : vector<8x32xf32>, vector<32x8xf32>, vector<8x8xf32> -> vector<8x8xf32>
    %c0_293 = arith.constant 0 : index
    %c3_294 = arith.constant 3 : index
    %c0_295 = arith.constant 0 : index
    %c0_296 = arith.constant 0 : index
    %330 = vector.load %arg16[%c0_293, %c3_294, %c0_295, %c0_296] : memref<2x4x1x8xf32, #tpu.memory_space<vmem>>, vector<1x1x1x8xf32>
    %331 = vector.shape_cast %330 : vector<1x1x1x8xf32> to vector<1x8xf32>
    %332 = vector.broadcast %331 : vector<1x8xf32> to vector<8x8xf32>
    %333 = arith.addf %329, %332 : vector<8x8xf32>
    %c0_297 = arith.constant 0 : index
    %c3_298 = arith.constant 3 : index
    %c0_299 = arith.constant 0 : index
    %c0_300 = arith.constant 0 : index
    %334 = vector.load %arg17[%c0_297, %c3_298, %c0_299, %c0_300] : memref<2x4x32x8xf32, #tpu.memory_space<vmem>>, vector<1x1x32x8xf32>
    %335 = vector.shape_cast %334 : vector<1x1x32x8xf32> to vector<32x8xf32>
    %cst_301 = arith.constant dense<0.000000e+00> : vector<8x8xf32>
    %336 = tpu.matmul %3, %335, %cst_301 {dimension_numbers = #tpu.dot_dimension_numbers<[1], [0], [0], [1], [0, 0, 1, 1], [], []>} : vector<8x32xf32>, vector<32x8xf32>, vector<8x8xf32> -> vector<8x8xf32>
    %c0_302 = arith.constant 0 : index
    %c3_303 = arith.constant 3 : index
    %c0_304 = arith.constant 0 : index
    %c0_305 = arith.constant 0 : index
    %337 = vector.load %arg18[%c0_302, %c3_303, %c0_304, %c0_305] : memref<2x4x1x8xf32, #tpu.memory_space<vmem>>, vector<1x1x1x8xf32>
    %338 = vector.shape_cast %337 : vector<1x1x1x8xf32> to vector<1x8xf32>
    %339 = vector.broadcast %338 : vector<1x8xf32> to vector<8x8xf32>
    %340 = arith.addf %336, %339 : vector<8x8xf32>
    %c0_306 = arith.constant 0 : index
    %c3_307 = arith.constant 3 : index
    %c0_308 = arith.constant 0 : index
    %c0_309 = arith.constant 0 : index
    %341 = vector.load %arg19[%c0_306, %c3_307, %c0_308, %c0_309] : memref<2x4x32x8xf32, #tpu.memory_space<vmem>>, vector<1x1x32x8xf32>
    %342 = vector.shape_cast %341 : vector<1x1x32x8xf32> to vector<32x8xf32>
    %cst_310 = arith.constant dense<0.000000e+00> : vector<8x8xf32>
    %343 = tpu.matmul %3, %342, %cst_310 {dimension_numbers = #tpu.dot_dimension_numbers<[1], [0], [0], [1], [0, 0, 1, 1], [], []>} : vector<8x32xf32>, vector<32x8xf32>, vector<8x8xf32> -> vector<8x8xf32>
    %c0_311 = arith.constant 0 : index
    %c3_312 = arith.constant 3 : index
    %c0_313 = arith.constant 0 : index
    %c0_314 = arith.constant 0 : index
    %344 = vector.load %arg20[%c0_311, %c3_312, %c0_313, %c0_314] : memref<2x4x1x8xf32, #tpu.memory_space<vmem>>, vector<1x1x1x8xf32>
    %345 = vector.shape_cast %344 : vector<1x1x1x8xf32> to vector<1x8xf32>
    %346 = vector.broadcast %345 : vector<1x8xf32> to vector<8x8xf32>
    %347 = arith.addf %343, %346 : vector<8x8xf32>
    %cst_315 = arith.constant dense<0.000000e+00> : vector<8x8xf32>
    %348 = tpu.matmul %333, %340, %cst_315 {dimension_numbers = #tpu.dot_dimension_numbers<[1], [1], [0], [0], [0, 0, 1, 0], [], []>} : vector<8x8xf32>, vector<8x8xf32>, vector<8x8xf32> -> vector<8x8xf32>
    %349 = arith.addf %348, %7 : vector<8x8xf32>
    %cst_316 = arith.constant dense<0xFF800000> : vector<8xf32>
    %350 = vector.multi_reduction <maximumf>, %349, %cst_316 [1] : vector<8x8xf32> to vector<8xf32>
    %351 = vector.shape_cast %350 : vector<8xf32> to vector<8x1xf32>
    %352 = vector.broadcast %351 : vector<8x1xf32> to vector<8x8xf32>
    %353 = arith.subf %349, %352 : vector<8x8xf32>
    %354 = math.exp %353 : vector<8x8xf32>
    %cst_317 = arith.constant dense<0.000000e+00> : vector<8xf32>
    %355 = vector.multi_reduction <add>, %354, %cst_317 [1] : vector<8x8xf32> to vector<8xf32>
    %356 = vector.shape_cast %355 : vector<8xf32> to vector<8x1xf32>
    %357 = vector.broadcast %356 : vector<8x1xf32> to vector<8x8xf32>
    %358 = arith.divf %354, %357 : vector<8x8xf32>
    %cst_318 = arith.constant dense<0.000000e+00> : vector<8x8xf32>
    %359 = tpu.matmul %358, %347, %cst_318 {dimension_numbers = #tpu.dot_dimension_numbers<[1], [0], [0], [1], [0, 0, 1, 1], [], []>} : vector<8x8xf32>, vector<8x8xf32>, vector<8x8xf32> -> vector<8x8xf32>
    %c0_319 = arith.constant 0 : index
    %c3_320 = arith.constant 3 : index
    %c0_321 = arith.constant 0 : index
    %c0_322 = arith.constant 0 : index
    %360 = vector.load %arg21[%c0_319, %c3_320, %c0_321, %c0_322] : memref<2x4x8x32xf32, #tpu.memory_space<vmem>>, vector<1x1x8x32xf32>
    %361 = vector.shape_cast %360 : vector<1x1x8x32xf32> to vector<8x32xf32>
    %cst_323 = arith.constant dense<0.000000e+00> : vector<8x32xf32>
    %362 = tpu.matmul %359, %361, %cst_323 {dimension_numbers = #tpu.dot_dimension_numbers<[1], [0], [0], [1], [0, 0, 1, 1], [], []>} : vector<8x8xf32>, vector<8x32xf32>, vector<8x32xf32> -> vector<8x32xf32>
    %363 = arith.addf %326, %362 : vector<8x32xf32>
    %c0_324 = arith.constant 0 : index
    %c0_325 = arith.constant 0 : index
    %c0_326 = arith.constant 0 : index
    %364 = vector.load %arg22[%c0_324, %c0_325, %c0_326] : memref<2x1x32xf32, #tpu.memory_space<vmem>>, vector<1x1x32xf32>
    %365 = vector.shape_cast %364 : vector<1x1x32xf32> to vector<1x32xf32>
    %366 = vector.broadcast %365 : vector<1x32xf32> to vector<8x32xf32>
    %367 = arith.addf %363, %366 : vector<8x32xf32>
    %368 = arith.addf %367, %212 : vector<8x32xf32>
    %c0_327 = arith.constant 0 : index
    %c0_328 = arith.constant 0 : index
    %c0_329 = arith.constant 0 : index
    %369 = vector.load %arg23[%c0_327, %c0_328, %c0_329] : memref<2x1x32xf32, #tpu.memory_space<vmem>>, vector<1x1x32xf32>
    %370 = vector.shape_cast %369 : vector<1x1x32xf32> to vector<1x32xf32>
    %c0_330 = arith.constant 0 : index
    %c0_331 = arith.constant 0 : index
    %c0_332 = arith.constant 0 : index
    %371 = vector.load %arg24[%c0_330, %c0_331, %c0_332] : memref<2x1x32xf32, #tpu.memory_space<vmem>>, vector<1x1x32xf32>
    %372 = vector.shape_cast %371 : vector<1x1x32xf32> to vector<1x32xf32>
    %cst_333 = arith.constant dense<0.000000e+00> : vector<8xf32>
    %373 = vector.multi_reduction <add>, %368, %cst_333 [1] : vector<8x32xf32> to vector<8xf32>
    %374 = vector.shape_cast %373 : vector<8xf32> to vector<8x1xf32>
    %cst_334 = arith.constant 3.200000e+01 : f32
    %375 = vector.broadcast %cst_334 : f32 to vector<8x1xf32>
    %376 = arith.divf %374, %375 : vector<8x1xf32>
    %377 = vector.broadcast %376 : vector<8x1xf32> to vector<8x32xf32>
    %378 = arith.subf %368, %377 : vector<8x32xf32>
    %379 = arith.mulf %378, %378 : vector<8x32xf32>
    %cst_335 = arith.constant dense<0.000000e+00> : vector<8xf32>
    %380 = vector.multi_reduction <add>, %379, %cst_335 [1] : vector<8x32xf32> to vector<8xf32>
    %381 = vector.shape_cast %380 : vector<8xf32> to vector<8x1xf32>
    %cst_336 = arith.constant 3.200000e+01 : f32
    %382 = vector.broadcast %cst_336 : f32 to vector<8x1xf32>
    %383 = arith.divf %381, %382 : vector<8x1xf32>
    %384 = vector.broadcast %376 : vector<8x1xf32> to vector<8x32xf32>
    %385 = arith.subf %368, %384 : vector<8x32xf32>
    %cst_337 = arith.constant 9.99999997E-7 : f32
    %386 = vector.broadcast %cst_337 : f32 to vector<8x1xf32>
    %387 = arith.addf %383, %386 : vector<8x1xf32>
    %388 = math.rsqrt %387 : vector<8x1xf32>
    %389 = vector.broadcast %388 : vector<8x1xf32> to vector<8x32xf32>
    %390 = arith.mulf %385, %389 : vector<8x32xf32>
    %391 = vector.broadcast %370 : vector<1x32xf32> to vector<8x32xf32>
    %392 = arith.mulf %390, %391 : vector<8x32xf32>
    %393 = vector.broadcast %372 : vector<1x32xf32> to vector<8x32xf32>
    %394 = arith.addf %392, %393 : vector<8x32xf32>
    %395 = arith.addf %394, %212 : vector<8x32xf32>
    %c0_338 = arith.constant 0 : index
    %c0_339 = arith.constant 0 : index
    %c0_340 = arith.constant 0 : index
    %396 = vector.load %arg31[%c0_338, %c0_339, %c0_340] : memref<2x1x32xf32, #tpu.memory_space<vmem>>, vector<1x1x32xf32>
    %397 = vector.shape_cast %396 : vector<1x1x32xf32> to vector<1x32xf32>
    %c0_341 = arith.constant 0 : index
    %c0_342 = arith.constant 0 : index
    %c0_343 = arith.constant 0 : index
    %398 = vector.load %arg32[%c0_341, %c0_342, %c0_343] : memref<2x1x32xf32, #tpu.memory_space<vmem>>, vector<1x1x32xf32>
    %399 = vector.shape_cast %398 : vector<1x1x32xf32> to vector<1x32xf32>
    %cst_344 = arith.constant dense<0.000000e+00> : vector<8xf32>
    %400 = vector.multi_reduction <add>, %395, %cst_344 [1] : vector<8x32xf32> to vector<8xf32>
    %401 = vector.shape_cast %400 : vector<8xf32> to vector<8x1xf32>
    %cst_345 = arith.constant 3.200000e+01 : f32
    %402 = vector.broadcast %cst_345 : f32 to vector<8x1xf32>
    %403 = arith.divf %401, %402 : vector<8x1xf32>
    %404 = vector.broadcast %403 : vector<8x1xf32> to vector<8x32xf32>
    %405 = arith.subf %395, %404 : vector<8x32xf32>
    %406 = arith.mulf %405, %405 : vector<8x32xf32>
    %cst_346 = arith.constant dense<0.000000e+00> : vector<8xf32>
    %407 = vector.multi_reduction <add>, %406, %cst_346 [1] : vector<8x32xf32> to vector<8xf32>
    %408 = vector.shape_cast %407 : vector<8xf32> to vector<8x1xf32>
    %cst_347 = arith.constant 3.200000e+01 : f32
    %409 = vector.broadcast %cst_347 : f32 to vector<8x1xf32>
    %410 = arith.divf %408, %409 : vector<8x1xf32>
    %411 = vector.broadcast %403 : vector<8x1xf32> to vector<8x32xf32>
    %412 = arith.subf %395, %411 : vector<8x32xf32>
    %cst_348 = arith.constant 9.99999997E-7 : f32
    %413 = vector.broadcast %cst_348 : f32 to vector<8x1xf32>
    %414 = arith.addf %410, %413 : vector<8x1xf32>
    %415 = math.rsqrt %414 : vector<8x1xf32>
    %416 = vector.broadcast %415 : vector<8x1xf32> to vector<8x32xf32>
    %417 = arith.mulf %412, %416 : vector<8x32xf32>
    %418 = vector.broadcast %397 : vector<1x32xf32> to vector<8x32xf32>
    %419 = arith.mulf %417, %418 : vector<8x32xf32>
    %420 = vector.broadcast %399 : vector<1x32xf32> to vector<8x32xf32>
    %421 = arith.addf %419, %420 : vector<8x32xf32>
    %422 = tpu.concatenate %248, %284, %321, %358 in 1 : vector<8x8xf32>, vector<8x8xf32>, vector<8x8xf32>, vector<8x8xf32> -> vector<8x32xf32>
    %c0_349 = arith.constant 0 : index
    %c0_350 = arith.constant 0 : index
    %c0_351 = arith.constant 0 : index
    %c0_352 = arith.constant 0 : index
    %423 = vector.load %arg35[%c0_349, %c0_350, %c0_351, %c0_352] : memref<2x1x8x32xf32, #tpu.memory_space<vmem>>, vector<1x1x8x32xf32>
    %424 = vector.shape_cast %423 : vector<1x1x8x32xf32> to vector<8x32xf32>
    %425 = vector.shape_cast %422 : vector<8x32xf32> to vector<1x1x8x32xf32>
    tpu.vector_store %arg35[%c0_349, %c0_350, %c0_351, %c0_352], %425 {strides = array<i32>} : memref<2x1x8x32xf32, #tpu.memory_space<vmem>>, vector<1x1x8x32xf32>,
    %c0_353 = arith.constant 0 : index
    %c0_354 = arith.constant 0 : index
    %c0_355 = arith.constant 0 : index
    %426 = vector.load %arg25[%c0_353, %c0_354, %c0_355] : memref<2x32x64xf32, #tpu.memory_space<vmem>>, vector<1x32x64xf32>
    %427 = vector.shape_cast %426 : vector<1x32x64xf32> to vector<32x64xf32>
    %cst_356 = arith.constant dense<0.000000e+00> : vector<8x64xf32>
    %428 = tpu.matmul %421, %427, %cst_356 {dimension_numbers = #tpu.dot_dimension_numbers<[1], [0], [0], [1], [0, 0, 1, 1], [], []>} : vector<8x32xf32>, vector<32x64xf32>, vector<8x64xf32> -> vector<8x64xf32>
    %c0_357 = arith.constant 0 : index
    %c0_358 = arith.constant 0 : index
    %c0_359 = arith.constant 0 : index
    %429 = vector.load %arg26[%c0_357, %c0_358, %c0_359] : memref<2x1x64xf32, #tpu.memory_space<vmem>>, vector<1x1x64xf32>
    %430 = vector.shape_cast %429 : vector<1x1x64xf32> to vector<1x64xf32>
    %431 = vector.broadcast %430 : vector<1x64xf32> to vector<8x64xf32>
    %432 = arith.addf %428, %431 : vector<8x64xf32>
    %cst_360 = arith.constant 0.000000e+00 : f32
    %433 = vector.broadcast %cst_360 : f32 to vector<8x64xf32>
    %434 = arith.maximumf %432, %433 : vector<8x64xf32>
    %c0_361 = arith.constant 0 : index
    %c0_362 = arith.constant 0 : index
    %c0_363 = arith.constant 0 : index
    %435 = vector.load %arg27[%c0_361, %c0_362, %c0_363] : memref<2x64x32xf32, #tpu.memory_space<vmem>>, vector<1x64x32xf32>
    %436 = vector.shape_cast %435 : vector<1x64x32xf32> to vector<64x32xf32>
    %cst_364 = arith.constant dense<0.000000e+00> : vector<8x32xf32>
    %437 = tpu.matmul %434, %436, %cst_364 {dimension_numbers = #tpu.dot_dimension_numbers<[1], [0], [0], [1], [0, 0, 1, 1], [], []>} : vector<8x64xf32>, vector<64x32xf32>, vector<8x32xf32> -> vector<8x32xf32>
    %c0_365 = arith.constant 0 : index
    %c0_366 = arith.constant 0 : index
    %c0_367 = arith.constant 0 : index
    %438 = vector.load %arg28[%c0_365, %c0_366, %c0_367] : memref<2x1x32xf32, #tpu.memory_space<vmem>>, vector<1x1x32xf32>
    %439 = vector.shape_cast %438 : vector<1x1x32xf32> to vector<1x32xf32>
    %440 = vector.broadcast %439 : vector<1x32xf32> to vector<8x32xf32>
    %441 = arith.addf %437, %440 : vector<8x32xf32>
    %442 = arith.addf %441, %421 : vector<8x32xf32>
    %c0_368 = arith.constant 0 : index
    %c0_369 = arith.constant 0 : index
    %c0_370 = arith.constant 0 : index
    %443 = vector.load %arg29[%c0_368, %c0_369, %c0_370] : memref<2x1x32xf32, #tpu.memory_space<vmem>>, vector<1x1x32xf32>
    %444 = vector.shape_cast %443 : vector<1x1x32xf32> to vector<1x32xf32>
    %c0_371 = arith.constant 0 : index
    %c0_372 = arith.constant 0 : index
    %c0_373 = arith.constant 0 : index
    %445 = vector.load %arg30[%c0_371, %c0_372, %c0_373] : memref<2x1x32xf32, #tpu.memory_space<vmem>>, vector<1x1x32xf32>
    %446 = vector.shape_cast %445 : vector<1x1x32xf32> to vector<1x32xf32>
    %cst_374 = arith.constant dense<0.000000e+00> : vector<8xf32>
    %447 = vector.multi_reduction <add>, %442, %cst_374 [1] : vector<8x32xf32> to vector<8xf32>
    %448 = vector.shape_cast %447 : vector<8xf32> to vector<8x1xf32>
    %cst_375 = arith.constant 3.200000e+01 : f32
    %449 = vector.broadcast %cst_375 : f32 to vector<8x1xf32>
    %450 = arith.divf %448, %449 : vector<8x1xf32>
    %451 = vector.broadcast %450 : vector<8x1xf32> to vector<8x32xf32>
    %452 = arith.subf %442, %451 : vector<8x32xf32>
    %453 = arith.mulf %452, %452 : vector<8x32xf32>
    %cst_376 = arith.constant dense<0.000000e+00> : vector<8xf32>
    %454 = vector.multi_reduction <add>, %453, %cst_376 [1] : vector<8x32xf32> to vector<8xf32>
    %455 = vector.shape_cast %454 : vector<8xf32> to vector<8x1xf32>
    %cst_377 = arith.constant 3.200000e+01 : f32
    %456 = vector.broadcast %cst_377 : f32 to vector<8x1xf32>
    %457 = arith.divf %455, %456 : vector<8x1xf32>
    %458 = vector.broadcast %450 : vector<8x1xf32> to vector<8x32xf32>
    %459 = arith.subf %442, %458 : vector<8x32xf32>
    %cst_378 = arith.constant 9.99999997E-7 : f32
    %460 = vector.broadcast %cst_378 : f32 to vector<8x1xf32>
    %461 = arith.addf %457, %460 : vector<8x1xf32>
    %462 = math.rsqrt %461 : vector<8x1xf32>
    %463 = vector.broadcast %462 : vector<8x1xf32> to vector<8x32xf32>
    %464 = arith.mulf %459, %463 : vector<8x32xf32>
    %465 = vector.broadcast %444 : vector<1x32xf32> to vector<8x32xf32>
    %466 = arith.mulf %464, %465 : vector<8x32xf32>
    %467 = vector.broadcast %446 : vector<1x32xf32> to vector<8x32xf32>
    %468 = arith.addf %466, %467 : vector<8x32xf32>
    %469 = arith.addf %468, %421 : vector<8x32xf32>
    %c0_379 = arith.constant 0 : index
    %c0_380 = arith.constant 0 : index
    %c0_381 = arith.constant 0 : index
    %470 = vector.load %arg31[%c0_379, %c0_380, %c0_381] : memref<2x1x32xf32, #tpu.memory_space<vmem>>, vector<1x1x32xf32>
    %471 = vector.shape_cast %470 : vector<1x1x32xf32> to vector<1x32xf32>
    %c0_382 = arith.constant 0 : index
    %c0_383 = arith.constant 0 : index
    %c0_384 = arith.constant 0 : index
    %472 = vector.load %arg32[%c0_382, %c0_383, %c0_384] : memref<2x1x32xf32, #tpu.memory_space<vmem>>, vector<1x1x32xf32>
    %473 = vector.shape_cast %472 : vector<1x1x32xf32> to vector<1x32xf32>
    %cst_385 = arith.constant dense<0.000000e+00> : vector<8xf32>
    %474 = vector.multi_reduction <add>, %469, %cst_385 [1] : vector<8x32xf32> to vector<8xf32>
    %475 = vector.shape_cast %474 : vector<8xf32> to vector<8x1xf32>
    %cst_386 = arith.constant 3.200000e+01 : f32
    %476 = vector.broadcast %cst_386 : f32 to vector<8x1xf32>
    %477 = arith.divf %475, %476 : vector<8x1xf32>
    %478 = vector.broadcast %477 : vector<8x1xf32> to vector<8x32xf32>
    %479 = arith.subf %469, %478 : vector<8x32xf32>
    %480 = arith.mulf %479, %479 : vector<8x32xf32>
    %cst_387 = arith.constant dense<0.000000e+00> : vector<8xf32>
    %481 = vector.multi_reduction <add>, %480, %cst_387 [1] : vector<8x32xf32> to vector<8xf32>
    %482 = vector.shape_cast %481 : vector<8xf32> to vector<8x1xf32>
    %cst_388 = arith.constant 3.200000e+01 : f32
    %483 = vector.broadcast %cst_388 : f32 to vector<8x1xf32>
    %484 = arith.divf %482, %483 : vector<8x1xf32>
    %485 = vector.broadcast %477 : vector<8x1xf32> to vector<8x32xf32>
    %486 = arith.subf %469, %485 : vector<8x32xf32>
    %cst_389 = arith.constant 9.99999997E-7 : f32
    %487 = vector.broadcast %cst_389 : f32 to vector<8x1xf32>
    %488 = arith.addf %484, %487 : vector<8x1xf32>
    %489 = math.rsqrt %488 : vector<8x1xf32>
    %490 = vector.broadcast %489 : vector<8x1xf32> to vector<8x32xf32>
    %491 = arith.mulf %486, %490 : vector<8x32xf32>
    %492 = vector.broadcast %471 : vector<1x32xf32> to vector<8x32xf32>
    %493 = arith.mulf %491, %492 : vector<8x32xf32>
    %494 = vector.broadcast %473 : vector<1x32xf32> to vector<8x32xf32>
    %495 = arith.addf %493, %494 : vector<8x32xf32>
    %c1_390 = arith.constant 1 : index
    %c0_391 = arith.constant 0 : index
    %c0_392 = arith.constant 0 : index
    %c0_393 = arith.constant 0 : index
    %496 = vector.load %arg5[%c1_390, %c0_391, %c0_392, %c0_393] : memref<2x4x32x8xf32, #tpu.memory_space<vmem>>, vector<1x1x32x8xf32>
    %497 = vector.shape_cast %496 : vector<1x1x32x8xf32> to vector<32x8xf32>
    %cst_394 = arith.constant dense<0.000000e+00> : vector<8x8xf32>
    %498 = tpu.matmul %495, %497, %cst_394 {dimension_numbers = #tpu.dot_dimension_numbers<[1], [0], [0], [1], [0, 0, 1, 1], [], []>} : vector<8x32xf32>, vector<32x8xf32>, vector<8x8xf32> -> vector<8x8xf32>
    %c1_395 = arith.constant 1 : index
    %c0_396 = arith.constant 0 : index
    %c0_397 = arith.constant 0 : index
    %c0_398 = arith.constant 0 : index
    %499 = vector.load %arg6[%c1_395, %c0_396, %c0_397, %c0_398] : memref<2x4x1x8xf32, #tpu.memory_space<vmem>>, vector<1x1x1x8xf32>
    %500 = vector.shape_cast %499 : vector<1x1x1x8xf32> to vector<1x8xf32>
    %501 = vector.broadcast %500 : vector<1x8xf32> to vector<8x8xf32>
    %502 = arith.addf %498, %501 : vector<8x8xf32>
    %c1_399 = arith.constant 1 : index
    %c0_400 = arith.constant 0 : index
    %c0_401 = arith.constant 0 : index
    %c0_402 = arith.constant 0 : index
    %503 = vector.load %arg7[%c1_399, %c0_400, %c0_401, %c0_402] : memref<2x4x32x8xf32, #tpu.memory_space<vmem>>, vector<1x1x32x8xf32>
    %504 = vector.shape_cast %503 : vector<1x1x32x8xf32> to vector<32x8xf32>
    %cst_403 = arith.constant dense<0.000000e+00> : vector<8x8xf32>
    %505 = tpu.matmul %495, %504, %cst_403 {dimension_numbers = #tpu.dot_dimension_numbers<[1], [0], [0], [1], [0, 0, 1, 1], [], []>} : vector<8x32xf32>, vector<32x8xf32>, vector<8x8xf32> -> vector<8x8xf32>
    %c1_404 = arith.constant 1 : index
    %c0_405 = arith.constant 0 : index
    %c0_406 = arith.constant 0 : index
    %c0_407 = arith.constant 0 : index
    %506 = vector.load %arg8[%c1_404, %c0_405, %c0_406, %c0_407] : memref<2x4x1x8xf32, #tpu.memory_space<vmem>>, vector<1x1x1x8xf32>
    %507 = vector.shape_cast %506 : vector<1x1x1x8xf32> to vector<1x8xf32>
    %508 = vector.broadcast %507 : vector<1x8xf32> to vector<8x8xf32>
    %509 = arith.addf %505, %508 : vector<8x8xf32>
    %c1_408 = arith.constant 1 : index
    %c0_409 = arith.constant 0 : index
    %c0_410 = arith.constant 0 : index
    %c0_411 = arith.constant 0 : index
    %510 = vector.load %arg9[%c1_408, %c0_409, %c0_410, %c0_411] : memref<2x4x32x8xf32, #tpu.memory_space<vmem>>, vector<1x1x32x8xf32>
    %511 = vector.shape_cast %510 : vector<1x1x32x8xf32> to vector<32x8xf32>
    %cst_412 = arith.constant dense<0.000000e+00> : vector<8x8xf32>
    %512 = tpu.matmul %495, %511, %cst_412 {dimension_numbers = #tpu.dot_dimension_numbers<[1], [0], [0], [1], [0, 0, 1, 1], [], []>} : vector<8x32xf32>, vector<32x8xf32>, vector<8x8xf32> -> vector<8x8xf32>
    %c1_413 = arith.constant 1 : index
    %c0_414 = arith.constant 0 : index
    %c0_415 = arith.constant 0 : index
    %c0_416 = arith.constant 0 : index
    %513 = vector.load %arg10[%c1_413, %c0_414, %c0_415, %c0_416] : memref<2x4x1x8xf32, #tpu.memory_space<vmem>>, vector<1x1x1x8xf32>
    %514 = vector.shape_cast %513 : vector<1x1x1x8xf32> to vector<1x8xf32>
    %515 = vector.broadcast %514 : vector<1x8xf32> to vector<8x8xf32>
    %516 = arith.addf %512, %515 : vector<8x8xf32>
    %cst_417 = arith.constant dense<0.000000e+00> : vector<8x8xf32>
    %517 = tpu.matmul %502, %509, %cst_417 {dimension_numbers = #tpu.dot_dimension_numbers<[1], [1], [0], [0], [0, 0, 1, 0], [], []>} : vector<8x8xf32>, vector<8x8xf32>, vector<8x8xf32> -> vector<8x8xf32>
    %518 = arith.addf %517, %5 : vector<8x8xf32>
    %cst_418 = arith.constant dense<0xFF800000> : vector<8xf32>
    %519 = vector.multi_reduction <maximumf>, %518, %cst_418 [1] : vector<8x8xf32> to vector<8xf32>
    %520 = vector.shape_cast %519 : vector<8xf32> to vector<8x1xf32>
    %521 = vector.broadcast %520 : vector<8x1xf32> to vector<8x8xf32>
    %522 = arith.subf %518, %521 : vector<8x8xf32>
    %523 = math.exp %522 : vector<8x8xf32>
    %cst_419 = arith.constant dense<0.000000e+00> : vector<8xf32>
    %524 = vector.multi_reduction <add>, %523, %cst_419 [1] : vector<8x8xf32> to vector<8xf32>
    %525 = vector.shape_cast %524 : vector<8xf32> to vector<8x1xf32>
    %526 = vector.broadcast %525 : vector<8x1xf32> to vector<8x8xf32>
    %527 = arith.divf %523, %526 : vector<8x8xf32>
    %cst_420 = arith.constant dense<0.000000e+00> : vector<8x8xf32>
    %528 = tpu.matmul %527, %516, %cst_420 {dimension_numbers = #tpu.dot_dimension_numbers<[1], [0], [0], [1], [0, 0, 1, 1], [], []>} : vector<8x8xf32>, vector<8x8xf32>, vector<8x8xf32> -> vector<8x8xf32>
    %c1_421 = arith.constant 1 : index
    %c0_422 = arith.constant 0 : index
    %c0_423 = arith.constant 0 : index
    %c0_424 = arith.constant 0 : index
    %529 = vector.load %arg11[%c1_421, %c0_422, %c0_423, %c0_424] : memref<2x4x8x32xf32, #tpu.memory_space<vmem>>, vector<1x1x8x32xf32>
    %530 = vector.shape_cast %529 : vector<1x1x8x32xf32> to vector<8x32xf32>
    %cst_425 = arith.constant dense<0.000000e+00> : vector<8x32xf32>
    %531 = tpu.matmul %528, %530, %cst_425 {dimension_numbers = #tpu.dot_dimension_numbers<[1], [0], [0], [1], [0, 0, 1, 1], [], []>} : vector<8x8xf32>, vector<8x32xf32>, vector<8x32xf32> -> vector<8x32xf32>
    %c1_426 = arith.constant 1 : index
    %c1_427 = arith.constant 1 : index
    %c0_428 = arith.constant 0 : index
    %c0_429 = arith.constant 0 : index
    %532 = vector.load %arg5[%c1_426, %c1_427, %c0_428, %c0_429] : memref<2x4x32x8xf32, #tpu.memory_space<vmem>>, vector<1x1x32x8xf32>
    %533 = vector.shape_cast %532 : vector<1x1x32x8xf32> to vector<32x8xf32>
    %cst_430 = arith.constant dense<0.000000e+00> : vector<8x8xf32>
    %534 = tpu.matmul %495, %533, %cst_430 {dimension_numbers = #tpu.dot_dimension_numbers<[1], [0], [0], [1], [0, 0, 1, 1], [], []>} : vector<8x32xf32>, vector<32x8xf32>, vector<8x8xf32> -> vector<8x8xf32>
    %c1_431 = arith.constant 1 : index
    %c1_432 = arith.constant 1 : index
    %c0_433 = arith.constant 0 : index
    %c0_434 = arith.constant 0 : index
    %535 = vector.load %arg6[%c1_431, %c1_432, %c0_433, %c0_434] : memref<2x4x1x8xf32, #tpu.memory_space<vmem>>, vector<1x1x1x8xf32>
    %536 = vector.shape_cast %535 : vector<1x1x1x8xf32> to vector<1x8xf32>
    %537 = vector.broadcast %536 : vector<1x8xf32> to vector<8x8xf32>
    %538 = arith.addf %534, %537 : vector<8x8xf32>
    %c1_435 = arith.constant 1 : index
    %c1_436 = arith.constant 1 : index
    %c0_437 = arith.constant 0 : index
    %c0_438 = arith.constant 0 : index
    %539 = vector.load %arg7[%c1_435, %c1_436, %c0_437, %c0_438] : memref<2x4x32x8xf32, #tpu.memory_space<vmem>>, vector<1x1x32x8xf32>
    %540 = vector.shape_cast %539 : vector<1x1x32x8xf32> to vector<32x8xf32>
    %cst_439 = arith.constant dense<0.000000e+00> : vector<8x8xf32>
    %541 = tpu.matmul %495, %540, %cst_439 {dimension_numbers = #tpu.dot_dimension_numbers<[1], [0], [0], [1], [0, 0, 1, 1], [], []>} : vector<8x32xf32>, vector<32x8xf32>, vector<8x8xf32> -> vector<8x8xf32>
    %c1_440 = arith.constant 1 : index
    %c1_441 = arith.constant 1 : index
    %c0_442 = arith.constant 0 : index
    %c0_443 = arith.constant 0 : index
    %542 = vector.load %arg8[%c1_440, %c1_441, %c0_442, %c0_443] : memref<2x4x1x8xf32, #tpu.memory_space<vmem>>, vector<1x1x1x8xf32>
    %543 = vector.shape_cast %542 : vector<1x1x1x8xf32> to vector<1x8xf32>
    %544 = vector.broadcast %543 : vector<1x8xf32> to vector<8x8xf32>
    %545 = arith.addf %541, %544 : vector<8x8xf32>
    %c1_444 = arith.constant 1 : index
    %c1_445 = arith.constant 1 : index
    %c0_446 = arith.constant 0 : index
    %c0_447 = arith.constant 0 : index
    %546 = vector.load %arg9[%c1_444, %c1_445, %c0_446, %c0_447] : memref<2x4x32x8xf32, #tpu.memory_space<vmem>>, vector<1x1x32x8xf32>
    %547 = vector.shape_cast %546 : vector<1x1x32x8xf32> to vector<32x8xf32>
    %cst_448 = arith.constant dense<0.000000e+00> : vector<8x8xf32>
    %548 = tpu.matmul %495, %547, %cst_448 {dimension_numbers = #tpu.dot_dimension_numbers<[1], [0], [0], [1], [0, 0, 1, 1], [], []>} : vector<8x32xf32>, vector<32x8xf32>, vector<8x8xf32> -> vector<8x8xf32>
    %c1_449 = arith.constant 1 : index
    %c1_450 = arith.constant 1 : index
    %c0_451 = arith.constant 0 : index
    %c0_452 = arith.constant 0 : index
    %549 = vector.load %arg10[%c1_449, %c1_450, %c0_451, %c0_452] : memref<2x4x1x8xf32, #tpu.memory_space<vmem>>, vector<1x1x1x8xf32>
    %550 = vector.shape_cast %549 : vector<1x1x1x8xf32> to vector<1x8xf32>
    %551 = vector.broadcast %550 : vector<1x8xf32> to vector<8x8xf32>
    %552 = arith.addf %548, %551 : vector<8x8xf32>
    %cst_453 = arith.constant dense<0.000000e+00> : vector<8x8xf32>
    %553 = tpu.matmul %538, %545, %cst_453 {dimension_numbers = #tpu.dot_dimension_numbers<[1], [1], [0], [0], [0, 0, 1, 0], [], []>} : vector<8x8xf32>, vector<8x8xf32>, vector<8x8xf32> -> vector<8x8xf32>
    %554 = arith.addf %553, %5 : vector<8x8xf32>
    %cst_454 = arith.constant dense<0xFF800000> : vector<8xf32>
    %555 = vector.multi_reduction <maximumf>, %554, %cst_454 [1] : vector<8x8xf32> to vector<8xf32>
    %556 = vector.shape_cast %555 : vector<8xf32> to vector<8x1xf32>
    %557 = vector.broadcast %556 : vector<8x1xf32> to vector<8x8xf32>
    %558 = arith.subf %554, %557 : vector<8x8xf32>
    %559 = math.exp %558 : vector<8x8xf32>
    %cst_455 = arith.constant dense<0.000000e+00> : vector<8xf32>
    %560 = vector.multi_reduction <add>, %559, %cst_455 [1] : vector<8x8xf32> to vector<8xf32>
    %561 = vector.shape_cast %560 : vector<8xf32> to vector<8x1xf32>
    %562 = vector.broadcast %561 : vector<8x1xf32> to vector<8x8xf32>
    %563 = arith.divf %559, %562 : vector<8x8xf32>
    %cst_456 = arith.constant dense<0.000000e+00> : vector<8x8xf32>
    %564 = tpu.matmul %563, %552, %cst_456 {dimension_numbers = #tpu.dot_dimension_numbers<[1], [0], [0], [1], [0, 0, 1, 1], [], []>} : vector<8x8xf32>, vector<8x8xf32>, vector<8x8xf32> -> vector<8x8xf32>
    %c1_457 = arith.constant 1 : index
    %c1_458 = arith.constant 1 : index
    %c0_459 = arith.constant 0 : index
    %c0_460 = arith.constant 0 : index
    %565 = vector.load %arg11[%c1_457, %c1_458, %c0_459, %c0_460] : memref<2x4x8x32xf32, #tpu.memory_space<vmem>>, vector<1x1x8x32xf32>
    %566 = vector.shape_cast %565 : vector<1x1x8x32xf32> to vector<8x32xf32>
    %cst_461 = arith.constant dense<0.000000e+00> : vector<8x32xf32>
    %567 = tpu.matmul %564, %566, %cst_461 {dimension_numbers = #tpu.dot_dimension_numbers<[1], [0], [0], [1], [0, 0, 1, 1], [], []>} : vector<8x8xf32>, vector<8x32xf32>, vector<8x32xf32> -> vector<8x32xf32>
    %568 = arith.addf %531, %567 : vector<8x32xf32>
    %c1_462 = arith.constant 1 : index
    %c2_463 = arith.constant 2 : index
    %c0_464 = arith.constant 0 : index
    %c0_465 = arith.constant 0 : index
    %569 = vector.load %arg5[%c1_462, %c2_463, %c0_464, %c0_465] : memref<2x4x32x8xf32, #tpu.memory_space<vmem>>, vector<1x1x32x8xf32>
    %570 = vector.shape_cast %569 : vector<1x1x32x8xf32> to vector<32x8xf32>
    %cst_466 = arith.constant dense<0.000000e+00> : vector<8x8xf32>
    %571 = tpu.matmul %495, %570, %cst_466 {dimension_numbers = #tpu.dot_dimension_numbers<[1], [0], [0], [1], [0, 0, 1, 1], [], []>} : vector<8x32xf32>, vector<32x8xf32>, vector<8x8xf32> -> vector<8x8xf32>
    %c1_467 = arith.constant 1 : index
    %c2_468 = arith.constant 2 : index
    %c0_469 = arith.constant 0 : index
    %c0_470 = arith.constant 0 : index
    %572 = vector.load %arg6[%c1_467, %c2_468, %c0_469, %c0_470] : memref<2x4x1x8xf32, #tpu.memory_space<vmem>>, vector<1x1x1x8xf32>
    %573 = vector.shape_cast %572 : vector<1x1x1x8xf32> to vector<1x8xf32>
    %574 = vector.broadcast %573 : vector<1x8xf32> to vector<8x8xf32>
    %575 = arith.addf %571, %574 : vector<8x8xf32>
    %c1_471 = arith.constant 1 : index
    %c2_472 = arith.constant 2 : index
    %c0_473 = arith.constant 0 : index
    %c0_474 = arith.constant 0 : index
    %576 = vector.load %arg7[%c1_471, %c2_472, %c0_473, %c0_474] : memref<2x4x32x8xf32, #tpu.memory_space<vmem>>, vector<1x1x32x8xf32>
    %577 = vector.shape_cast %576 : vector<1x1x32x8xf32> to vector<32x8xf32>
    %cst_475 = arith.constant dense<0.000000e+00> : vector<8x8xf32>
    %578 = tpu.matmul %495, %577, %cst_475 {dimension_numbers = #tpu.dot_dimension_numbers<[1], [0], [0], [1], [0, 0, 1, 1], [], []>} : vector<8x32xf32>, vector<32x8xf32>, vector<8x8xf32> -> vector<8x8xf32>
    %c1_476 = arith.constant 1 : index
    %c2_477 = arith.constant 2 : index
    %c0_478 = arith.constant 0 : index
    %c0_479 = arith.constant 0 : index
    %579 = vector.load %arg8[%c1_476, %c2_477, %c0_478, %c0_479] : memref<2x4x1x8xf32, #tpu.memory_space<vmem>>, vector<1x1x1x8xf32>
    %580 = vector.shape_cast %579 : vector<1x1x1x8xf32> to vector<1x8xf32>
    %581 = vector.broadcast %580 : vector<1x8xf32> to vector<8x8xf32>
    %582 = arith.addf %578, %581 : vector<8x8xf32>
    %c1_480 = arith.constant 1 : index
    %c2_481 = arith.constant 2 : index
    %c0_482 = arith.constant 0 : index
    %c0_483 = arith.constant 0 : index
    %583 = vector.load %arg9[%c1_480, %c2_481, %c0_482, %c0_483] : memref<2x4x32x8xf32, #tpu.memory_space<vmem>>, vector<1x1x32x8xf32>
    %584 = vector.shape_cast %583 : vector<1x1x32x8xf32> to vector<32x8xf32>
    %cst_484 = arith.constant dense<0.000000e+00> : vector<8x8xf32>
    %585 = tpu.matmul %495, %584, %cst_484 {dimension_numbers = #tpu.dot_dimension_numbers<[1], [0], [0], [1], [0, 0, 1, 1], [], []>} : vector<8x32xf32>, vector<32x8xf32>, vector<8x8xf32> -> vector<8x8xf32>
    %c1_485 = arith.constant 1 : index
    %c2_486 = arith.constant 2 : index
    %c0_487 = arith.constant 0 : index
    %c0_488 = arith.constant 0 : index
    %586 = vector.load %arg10[%c1_485, %c2_486, %c0_487, %c0_488] : memref<2x4x1x8xf32, #tpu.memory_space<vmem>>, vector<1x1x1x8xf32>
    %587 = vector.shape_cast %586 : vector<1x1x1x8xf32> to vector<1x8xf32>
    %588 = vector.broadcast %587 : vector<1x8xf32> to vector<8x8xf32>
    %589 = arith.addf %585, %588 : vector<8x8xf32>
    %cst_489 = arith.constant dense<0.000000e+00> : vector<8x8xf32>
    %590 = tpu.matmul %575, %582, %cst_489 {dimension_numbers = #tpu.dot_dimension_numbers<[1], [1], [0], [0], [0, 0, 1, 0], [], []>} : vector<8x8xf32>, vector<8x8xf32>, vector<8x8xf32> -> vector<8x8xf32>
    %591 = arith.addf %590, %5 : vector<8x8xf32>
    %cst_490 = arith.constant dense<0xFF800000> : vector<8xf32>
    %592 = vector.multi_reduction <maximumf>, %591, %cst_490 [1] : vector<8x8xf32> to vector<8xf32>
    %593 = vector.shape_cast %592 : vector<8xf32> to vector<8x1xf32>
    %594 = vector.broadcast %593 : vector<8x1xf32> to vector<8x8xf32>
    %595 = arith.subf %591, %594 : vector<8x8xf32>
    %596 = math.exp %595 : vector<8x8xf32>
    %cst_491 = arith.constant dense<0.000000e+00> : vector<8xf32>
    %597 = vector.multi_reduction <add>, %596, %cst_491 [1] : vector<8x8xf32> to vector<8xf32>
    %598 = vector.shape_cast %597 : vector<8xf32> to vector<8x1xf32>
    %599 = vector.broadcast %598 : vector<8x1xf32> to vector<8x8xf32>
    %600 = arith.divf %596, %599 : vector<8x8xf32>
    %cst_492 = arith.constant dense<0.000000e+00> : vector<8x8xf32>
    %601 = tpu.matmul %600, %589, %cst_492 {dimension_numbers = #tpu.dot_dimension_numbers<[1], [0], [0], [1], [0, 0, 1, 1], [], []>} : vector<8x8xf32>, vector<8x8xf32>, vector<8x8xf32> -> vector<8x8xf32>
    %c1_493 = arith.constant 1 : index
    %c2_494 = arith.constant 2 : index
    %c0_495 = arith.constant 0 : index
    %c0_496 = arith.constant 0 : index
    %602 = vector.load %arg11[%c1_493, %c2_494, %c0_495, %c0_496] : memref<2x4x8x32xf32, #tpu.memory_space<vmem>>, vector<1x1x8x32xf32>
    %603 = vector.shape_cast %602 : vector<1x1x8x32xf32> to vector<8x32xf32>
    %cst_497 = arith.constant dense<0.000000e+00> : vector<8x32xf32>
    %604 = tpu.matmul %601, %603, %cst_497 {dimension_numbers = #tpu.dot_dimension_numbers<[1], [0], [0], [1], [0, 0, 1, 1], [], []>} : vector<8x8xf32>, vector<8x32xf32>, vector<8x32xf32> -> vector<8x32xf32>
    %605 = arith.addf %568, %604 : vector<8x32xf32>
    %c1_498 = arith.constant 1 : index
    %c3_499 = arith.constant 3 : index
    %c0_500 = arith.constant 0 : index
    %c0_501 = arith.constant 0 : index
    %606 = vector.load %arg5[%c1_498, %c3_499, %c0_500, %c0_501] : memref<2x4x32x8xf32, #tpu.memory_space<vmem>>, vector<1x1x32x8xf32>
    %607 = vector.shape_cast %606 : vector<1x1x32x8xf32> to vector<32x8xf32>
    %cst_502 = arith.constant dense<0.000000e+00> : vector<8x8xf32>
    %608 = tpu.matmul %495, %607, %cst_502 {dimension_numbers = #tpu.dot_dimension_numbers<[1], [0], [0], [1], [0, 0, 1, 1], [], []>} : vector<8x32xf32>, vector<32x8xf32>, vector<8x8xf32> -> vector<8x8xf32>
    %c1_503 = arith.constant 1 : index
    %c3_504 = arith.constant 3 : index
    %c0_505 = arith.constant 0 : index
    %c0_506 = arith.constant 0 : index
    %609 = vector.load %arg6[%c1_503, %c3_504, %c0_505, %c0_506] : memref<2x4x1x8xf32, #tpu.memory_space<vmem>>, vector<1x1x1x8xf32>
    %610 = vector.shape_cast %609 : vector<1x1x1x8xf32> to vector<1x8xf32>
    %611 = vector.broadcast %610 : vector<1x8xf32> to vector<8x8xf32>
    %612 = arith.addf %608, %611 : vector<8x8xf32>
    %c1_507 = arith.constant 1 : index
    %c3_508 = arith.constant 3 : index
    %c0_509 = arith.constant 0 : index
    %c0_510 = arith.constant 0 : index
    %613 = vector.load %arg7[%c1_507, %c3_508, %c0_509, %c0_510] : memref<2x4x32x8xf32, #tpu.memory_space<vmem>>, vector<1x1x32x8xf32>
    %614 = vector.shape_cast %613 : vector<1x1x32x8xf32> to vector<32x8xf32>
    %cst_511 = arith.constant dense<0.000000e+00> : vector<8x8xf32>
    %615 = tpu.matmul %495, %614, %cst_511 {dimension_numbers = #tpu.dot_dimension_numbers<[1], [0], [0], [1], [0, 0, 1, 1], [], []>} : vector<8x32xf32>, vector<32x8xf32>, vector<8x8xf32> -> vector<8x8xf32>
    %c1_512 = arith.constant 1 : index
    %c3_513 = arith.constant 3 : index
    %c0_514 = arith.constant 0 : index
    %c0_515 = arith.constant 0 : index
    %616 = vector.load %arg8[%c1_512, %c3_513, %c0_514, %c0_515] : memref<2x4x1x8xf32, #tpu.memory_space<vmem>>, vector<1x1x1x8xf32>
    %617 = vector.shape_cast %616 : vector<1x1x1x8xf32> to vector<1x8xf32>
    %618 = vector.broadcast %617 : vector<1x8xf32> to vector<8x8xf32>
    %619 = arith.addf %615, %618 : vector<8x8xf32>
    %c1_516 = arith.constant 1 : index
    %c3_517 = arith.constant 3 : index
    %c0_518 = arith.constant 0 : index
    %c0_519 = arith.constant 0 : index
    %620 = vector.load %arg9[%c1_516, %c3_517, %c0_518, %c0_519] : memref<2x4x32x8xf32, #tpu.memory_space<vmem>>, vector<1x1x32x8xf32>
    %621 = vector.shape_cast %620 : vector<1x1x32x8xf32> to vector<32x8xf32>
    %cst_520 = arith.constant dense<0.000000e+00> : vector<8x8xf32>
    %622 = tpu.matmul %495, %621, %cst_520 {dimension_numbers = #tpu.dot_dimension_numbers<[1], [0], [0], [1], [0, 0, 1, 1], [], []>} : vector<8x32xf32>, vector<32x8xf32>, vector<8x8xf32> -> vector<8x8xf32>
    %c1_521 = arith.constant 1 : index
    %c3_522 = arith.constant 3 : index
    %c0_523 = arith.constant 0 : index
    %c0_524 = arith.constant 0 : index
    %623 = vector.load %arg10[%c1_521, %c3_522, %c0_523, %c0_524] : memref<2x4x1x8xf32, #tpu.memory_space<vmem>>, vector<1x1x1x8xf32>
    %624 = vector.shape_cast %623 : vector<1x1x1x8xf32> to vector<1x8xf32>
    %625 = vector.broadcast %624 : vector<1x8xf32> to vector<8x8xf32>
    %626 = arith.addf %622, %625 : vector<8x8xf32>
    %cst_525 = arith.constant dense<0.000000e+00> : vector<8x8xf32>
    %627 = tpu.matmul %612, %619, %cst_525 {dimension_numbers = #tpu.dot_dimension_numbers<[1], [1], [0], [0], [0, 0, 1, 0], [], []>} : vector<8x8xf32>, vector<8x8xf32>, vector<8x8xf32> -> vector<8x8xf32>
    %628 = arith.addf %627, %5 : vector<8x8xf32>
    %cst_526 = arith.constant dense<0xFF800000> : vector<8xf32>
    %629 = vector.multi_reduction <maximumf>, %628, %cst_526 [1] : vector<8x8xf32> to vector<8xf32>
    %630 = vector.shape_cast %629 : vector<8xf32> to vector<8x1xf32>
    %631 = vector.broadcast %630 : vector<8x1xf32> to vector<8x8xf32>
    %632 = arith.subf %628, %631 : vector<8x8xf32>
    %633 = math.exp %632 : vector<8x8xf32>
    %cst_527 = arith.constant dense<0.000000e+00> : vector<8xf32>
    %634 = vector.multi_reduction <add>, %633, %cst_527 [1] : vector<8x8xf32> to vector<8xf32>
    %635 = vector.shape_cast %634 : vector<8xf32> to vector<8x1xf32>
    %636 = vector.broadcast %635 : vector<8x1xf32> to vector<8x8xf32>
    %637 = arith.divf %633, %636 : vector<8x8xf32>
    %cst_528 = arith.constant dense<0.000000e+00> : vector<8x8xf32>
    %638 = tpu.matmul %637, %626, %cst_528 {dimension_numbers = #tpu.dot_dimension_numbers<[1], [0], [0], [1], [0, 0, 1, 1], [], []>} : vector<8x8xf32>, vector<8x8xf32>, vector<8x8xf32> -> vector<8x8xf32>
    %c1_529 = arith.constant 1 : index
    %c3_530 = arith.constant 3 : index
    %c0_531 = arith.constant 0 : index
    %c0_532 = arith.constant 0 : index
    %639 = vector.load %arg11[%c1_529, %c3_530, %c0_531, %c0_532] : memref<2x4x8x32xf32, #tpu.memory_space<vmem>>, vector<1x1x8x32xf32>
    %640 = vector.shape_cast %639 : vector<1x1x8x32xf32> to vector<8x32xf32>
    %cst_533 = arith.constant dense<0.000000e+00> : vector<8x32xf32>
    %641 = tpu.matmul %638, %640, %cst_533 {dimension_numbers = #tpu.dot_dimension_numbers<[1], [0], [0], [1], [0, 0, 1, 1], [], []>} : vector<8x8xf32>, vector<8x32xf32>, vector<8x32xf32> -> vector<8x32xf32>
    %642 = arith.addf %605, %641 : vector<8x32xf32>
    %c1_534 = arith.constant 1 : index
    %c0_535 = arith.constant 0 : index
    %c0_536 = arith.constant 0 : index
    %643 = vector.load %arg12[%c1_534, %c0_535, %c0_536] : memref<2x1x32xf32, #tpu.memory_space<vmem>>, vector<1x1x32xf32>
    %644 = vector.shape_cast %643 : vector<1x1x32xf32> to vector<1x32xf32>
    %645 = vector.broadcast %644 : vector<1x32xf32> to vector<8x32xf32>
    %646 = arith.addf %642, %645 : vector<8x32xf32>
    %647 = arith.addf %646, %495 : vector<8x32xf32>
    %c1_537 = arith.constant 1 : index
    %c0_538 = arith.constant 0 : index
    %c0_539 = arith.constant 0 : index
    %648 = vector.load %arg13[%c1_537, %c0_538, %c0_539] : memref<2x1x32xf32, #tpu.memory_space<vmem>>, vector<1x1x32xf32>
    %649 = vector.shape_cast %648 : vector<1x1x32xf32> to vector<1x32xf32>
    %c1_540 = arith.constant 1 : index
    %c0_541 = arith.constant 0 : index
    %c0_542 = arith.constant 0 : index
    %650 = vector.load %arg14[%c1_540, %c0_541, %c0_542] : memref<2x1x32xf32, #tpu.memory_space<vmem>>, vector<1x1x32xf32>
    %651 = vector.shape_cast %650 : vector<1x1x32xf32> to vector<1x32xf32>
    %cst_543 = arith.constant dense<0.000000e+00> : vector<8xf32>
    %652 = vector.multi_reduction <add>, %647, %cst_543 [1] : vector<8x32xf32> to vector<8xf32>
    %653 = vector.shape_cast %652 : vector<8xf32> to vector<8x1xf32>
    %cst_544 = arith.constant 3.200000e+01 : f32
    %654 = vector.broadcast %cst_544 : f32 to vector<8x1xf32>
    %655 = arith.divf %653, %654 : vector<8x1xf32>
    %656 = vector.broadcast %655 : vector<8x1xf32> to vector<8x32xf32>
    %657 = arith.subf %647, %656 : vector<8x32xf32>
    %658 = arith.mulf %657, %657 : vector<8x32xf32>
    %cst_545 = arith.constant dense<0.000000e+00> : vector<8xf32>
    %659 = vector.multi_reduction <add>, %658, %cst_545 [1] : vector<8x32xf32> to vector<8xf32>
    %660 = vector.shape_cast %659 : vector<8xf32> to vector<8x1xf32>
    %cst_546 = arith.constant 3.200000e+01 : f32
    %661 = vector.broadcast %cst_546 : f32 to vector<8x1xf32>
    %662 = arith.divf %660, %661 : vector<8x1xf32>
    %663 = vector.broadcast %655 : vector<8x1xf32> to vector<8x32xf32>
    %664 = arith.subf %647, %663 : vector<8x32xf32>
    %cst_547 = arith.constant 9.99999997E-7 : f32
    %665 = vector.broadcast %cst_547 : f32 to vector<8x1xf32>
    %666 = arith.addf %662, %665 : vector<8x1xf32>
    %667 = math.rsqrt %666 : vector<8x1xf32>
    %668 = vector.broadcast %667 : vector<8x1xf32> to vector<8x32xf32>
    %669 = arith.mulf %664, %668 : vector<8x32xf32>
    %670 = vector.broadcast %649 : vector<1x32xf32> to vector<8x32xf32>
    %671 = arith.mulf %669, %670 : vector<8x32xf32>
    %672 = vector.broadcast %651 : vector<1x32xf32> to vector<8x32xf32>
    %673 = arith.addf %671, %672 : vector<8x32xf32>
    %674 = arith.addf %673, %495 : vector<8x32xf32>
    %c1_548 = arith.constant 1 : index
    %c0_549 = arith.constant 0 : index
    %c0_550 = arith.constant 0 : index
    %675 = vector.load %arg31[%c1_548, %c0_549, %c0_550] : memref<2x1x32xf32, #tpu.memory_space<vmem>>, vector<1x1x32xf32>
    %676 = vector.shape_cast %675 : vector<1x1x32xf32> to vector<1x32xf32>
    %c1_551 = arith.constant 1 : index
    %c0_552 = arith.constant 0 : index
    %c0_553 = arith.constant 0 : index
    %677 = vector.load %arg32[%c1_551, %c0_552, %c0_553] : memref<2x1x32xf32, #tpu.memory_space<vmem>>, vector<1x1x32xf32>
    %678 = vector.shape_cast %677 : vector<1x1x32xf32> to vector<1x32xf32>
    %cst_554 = arith.constant dense<0.000000e+00> : vector<8xf32>
    %679 = vector.multi_reduction <add>, %674, %cst_554 [1] : vector<8x32xf32> to vector<8xf32>
    %680 = vector.shape_cast %679 : vector<8xf32> to vector<8x1xf32>
    %cst_555 = arith.constant 3.200000e+01 : f32
    %681 = vector.broadcast %cst_555 : f32 to vector<8x1xf32>
    %682 = arith.divf %680, %681 : vector<8x1xf32>
    %683 = vector.broadcast %682 : vector<8x1xf32> to vector<8x32xf32>
    %684 = arith.subf %674, %683 : vector<8x32xf32>
    %685 = arith.mulf %684, %684 : vector<8x32xf32>
    %cst_556 = arith.constant dense<0.000000e+00> : vector<8xf32>
    %686 = vector.multi_reduction <add>, %685, %cst_556 [1] : vector<8x32xf32> to vector<8xf32>
    %687 = vector.shape_cast %686 : vector<8xf32> to vector<8x1xf32>
    %cst_557 = arith.constant 3.200000e+01 : f32
    %688 = vector.broadcast %cst_557 : f32 to vector<8x1xf32>
    %689 = arith.divf %687, %688 : vector<8x1xf32>
    %690 = vector.broadcast %682 : vector<8x1xf32> to vector<8x32xf32>
    %691 = arith.subf %674, %690 : vector<8x32xf32>
    %cst_558 = arith.constant 9.99999997E-7 : f32
    %692 = vector.broadcast %cst_558 : f32 to vector<8x1xf32>
    %693 = arith.addf %689, %692 : vector<8x1xf32>
    %694 = math.rsqrt %693 : vector<8x1xf32>
    %695 = vector.broadcast %694 : vector<8x1xf32> to vector<8x32xf32>
    %696 = arith.mulf %691, %695 : vector<8x32xf32>
    %697 = vector.broadcast %676 : vector<1x32xf32> to vector<8x32xf32>
    %698 = arith.mulf %696, %697 : vector<8x32xf32>
    %699 = vector.broadcast %678 : vector<1x32xf32> to vector<8x32xf32>
    %700 = arith.addf %698, %699 : vector<8x32xf32>
    %701 = tpu.concatenate %527, %563, %600, %637 in 1 : vector<8x8xf32>, vector<8x8xf32>, vector<8x8xf32>, vector<8x8xf32> -> vector<8x32xf32>
    %c1_559 = arith.constant 1 : index
    %c0_560 = arith.constant 0 : index
    %c0_561 = arith.constant 0 : index
    %c0_562 = arith.constant 0 : index
    %702 = vector.load %arg34[%c1_559, %c0_560, %c0_561, %c0_562] : memref<2x1x8x32xf32, #tpu.memory_space<vmem>>, vector<1x1x8x32xf32>
    %703 = vector.shape_cast %702 : vector<1x1x8x32xf32> to vector<8x32xf32>
    %704 = vector.shape_cast %701 : vector<8x32xf32> to vector<1x1x8x32xf32>
    tpu.vector_store %arg34[%c1_559, %c0_560, %c0_561, %c0_562], %704 {strides = array<i32>} : memref<2x1x8x32xf32, #tpu.memory_space<vmem>>, vector<1x1x8x32xf32>,
    %c1_563 = arith.constant 1 : index
    %c0_564 = arith.constant 0 : index
    %c0_565 = arith.constant 0 : index
    %c0_566 = arith.constant 0 : index
    %705 = vector.load %arg15[%c1_563, %c0_564, %c0_565, %c0_566] : memref<2x4x32x8xf32, #tpu.memory_space<vmem>>, vector<1x1x32x8xf32>
    %706 = vector.shape_cast %705 : vector<1x1x32x8xf32> to vector<32x8xf32>
    %cst_567 = arith.constant dense<0.000000e+00> : vector<8x8xf32>
    %707 = tpu.matmul %700, %706, %cst_567 {dimension_numbers = #tpu.dot_dimension_numbers<[1], [0], [0], [1], [0, 0, 1, 1], [], []>} : vector<8x32xf32>, vector<32x8xf32>, vector<8x8xf32> -> vector<8x8xf32>
    %c1_568 = arith.constant 1 : index
    %c0_569 = arith.constant 0 : index
    %c0_570 = arith.constant 0 : index
    %c0_571 = arith.constant 0 : index
    %708 = vector.load %arg16[%c1_568, %c0_569, %c0_570, %c0_571] : memref<2x4x1x8xf32, #tpu.memory_space<vmem>>, vector<1x1x1x8xf32>
    %709 = vector.shape_cast %708 : vector<1x1x1x8xf32> to vector<1x8xf32>
    %710 = vector.broadcast %709 : vector<1x8xf32> to vector<8x8xf32>
    %711 = arith.addf %707, %710 : vector<8x8xf32>
    %c1_572 = arith.constant 1 : index
    %c0_573 = arith.constant 0 : index
    %c0_574 = arith.constant 0 : index
    %c0_575 = arith.constant 0 : index
    %712 = vector.load %arg17[%c1_572, %c0_573, %c0_574, %c0_575] : memref<2x4x32x8xf32, #tpu.memory_space<vmem>>, vector<1x1x32x8xf32>
    %713 = vector.shape_cast %712 : vector<1x1x32x8xf32> to vector<32x8xf32>
    %cst_576 = arith.constant dense<0.000000e+00> : vector<8x8xf32>
    %714 = tpu.matmul %3, %713, %cst_576 {dimension_numbers = #tpu.dot_dimension_numbers<[1], [0], [0], [1], [0, 0, 1, 1], [], []>} : vector<8x32xf32>, vector<32x8xf32>, vector<8x8xf32> -> vector<8x8xf32>
    %c1_577 = arith.constant 1 : index
    %c0_578 = arith.constant 0 : index
    %c0_579 = arith.constant 0 : index
    %c0_580 = arith.constant 0 : index
    %715 = vector.load %arg18[%c1_577, %c0_578, %c0_579, %c0_580] : memref<2x4x1x8xf32, #tpu.memory_space<vmem>>, vector<1x1x1x8xf32>
    %716 = vector.shape_cast %715 : vector<1x1x1x8xf32> to vector<1x8xf32>
    %717 = vector.broadcast %716 : vector<1x8xf32> to vector<8x8xf32>
    %718 = arith.addf %714, %717 : vector<8x8xf32>
    %c1_581 = arith.constant 1 : index
    %c0_582 = arith.constant 0 : index
    %c0_583 = arith.constant 0 : index
    %c0_584 = arith.constant 0 : index
    %719 = vector.load %arg19[%c1_581, %c0_582, %c0_583, %c0_584] : memref<2x4x32x8xf32, #tpu.memory_space<vmem>>, vector<1x1x32x8xf32>
    %720 = vector.shape_cast %719 : vector<1x1x32x8xf32> to vector<32x8xf32>
    %cst_585 = arith.constant dense<0.000000e+00> : vector<8x8xf32>
    %721 = tpu.matmul %3, %720, %cst_585 {dimension_numbers = #tpu.dot_dimension_numbers<[1], [0], [0], [1], [0, 0, 1, 1], [], []>} : vector<8x32xf32>, vector<32x8xf32>, vector<8x8xf32> -> vector<8x8xf32>
    %c1_586 = arith.constant 1 : index
    %c0_587 = arith.constant 0 : index
    %c0_588 = arith.constant 0 : index
    %c0_589 = arith.constant 0 : index
    %722 = vector.load %arg20[%c1_586, %c0_587, %c0_588, %c0_589] : memref<2x4x1x8xf32, #tpu.memory_space<vmem>>, vector<1x1x1x8xf32>
    %723 = vector.shape_cast %722 : vector<1x1x1x8xf32> to vector<1x8xf32>
    %724 = vector.broadcast %723 : vector<1x8xf32> to vector<8x8xf32>
    %725 = arith.addf %721, %724 : vector<8x8xf32>
    %cst_590 = arith.constant dense<0.000000e+00> : vector<8x8xf32>
    %726 = tpu.matmul %711, %718, %cst_590 {dimension_numbers = #tpu.dot_dimension_numbers<[1], [1], [0], [0], [0, 0, 1, 0], [], []>} : vector<8x8xf32>, vector<8x8xf32>, vector<8x8xf32> -> vector<8x8xf32>
    %727 = arith.addf %726, %7 : vector<8x8xf32>
    %cst_591 = arith.constant dense<0xFF800000> : vector<8xf32>
    %728 = vector.multi_reduction <maximumf>, %727, %cst_591 [1] : vector<8x8xf32> to vector<8xf32>
    %729 = vector.shape_cast %728 : vector<8xf32> to vector<8x1xf32>
    %730 = vector.broadcast %729 : vector<8x1xf32> to vector<8x8xf32>
    %731 = arith.subf %727, %730 : vector<8x8xf32>
    %732 = math.exp %731 : vector<8x8xf32>
    %cst_592 = arith.constant dense<0.000000e+00> : vector<8xf32>
    %733 = vector.multi_reduction <add>, %732, %cst_592 [1] : vector<8x8xf32> to vector<8xf32>
    %734 = vector.shape_cast %733 : vector<8xf32> to vector<8x1xf32>
    %735 = vector.broadcast %734 : vector<8x1xf32> to vector<8x8xf32>
    %736 = arith.divf %732, %735 : vector<8x8xf32>
    %cst_593 = arith.constant dense<0.000000e+00> : vector<8x8xf32>
    %737 = tpu.matmul %736, %725, %cst_593 {dimension_numbers = #tpu.dot_dimension_numbers<[1], [0], [0], [1], [0, 0, 1, 1], [], []>} : vector<8x8xf32>, vector<8x8xf32>, vector<8x8xf32> -> vector<8x8xf32>
    %c1_594 = arith.constant 1 : index
    %c0_595 = arith.constant 0 : index
    %c0_596 = arith.constant 0 : index
    %c0_597 = arith.constant 0 : index
    %738 = vector.load %arg21[%c1_594, %c0_595, %c0_596, %c0_597] : memref<2x4x8x32xf32, #tpu.memory_space<vmem>>, vector<1x1x8x32xf32>
    %739 = vector.shape_cast %738 : vector<1x1x8x32xf32> to vector<8x32xf32>
    %cst_598 = arith.constant dense<0.000000e+00> : vector<8x32xf32>
    %740 = tpu.matmul %737, %739, %cst_598 {dimension_numbers = #tpu.dot_dimension_numbers<[1], [0], [0], [1], [0, 0, 1, 1], [], []>} : vector<8x8xf32>, vector<8x32xf32>, vector<8x32xf32> -> vector<8x32xf32>
    %c1_599 = arith.constant 1 : index
    %c1_600 = arith.constant 1 : index
    %c0_601 = arith.constant 0 : index
    %c0_602 = arith.constant 0 : index
    %741 = vector.load %arg15[%c1_599, %c1_600, %c0_601, %c0_602] : memref<2x4x32x8xf32, #tpu.memory_space<vmem>>, vector<1x1x32x8xf32>
    %742 = vector.shape_cast %741 : vector<1x1x32x8xf32> to vector<32x8xf32>
    %cst_603 = arith.constant dense<0.000000e+00> : vector<8x8xf32>
    %743 = tpu.matmul %700, %742, %cst_603 {dimension_numbers = #tpu.dot_dimension_numbers<[1], [0], [0], [1], [0, 0, 1, 1], [], []>} : vector<8x32xf32>, vector<32x8xf32>, vector<8x8xf32> -> vector<8x8xf32>
    %c1_604 = arith.constant 1 : index
    %c1_605 = arith.constant 1 : index
    %c0_606 = arith.constant 0 : index
    %c0_607 = arith.constant 0 : index
    %744 = vector.load %arg16[%c1_604, %c1_605, %c0_606, %c0_607] : memref<2x4x1x8xf32, #tpu.memory_space<vmem>>, vector<1x1x1x8xf32>
    %745 = vector.shape_cast %744 : vector<1x1x1x8xf32> to vector<1x8xf32>
    %746 = vector.broadcast %745 : vector<1x8xf32> to vector<8x8xf32>
    %747 = arith.addf %743, %746 : vector<8x8xf32>
    %c1_608 = arith.constant 1 : index
    %c1_609 = arith.constant 1 : index
    %c0_610 = arith.constant 0 : index
    %c0_611 = arith.constant 0 : index
    %748 = vector.load %arg17[%c1_608, %c1_609, %c0_610, %c0_611] : memref<2x4x32x8xf32, #tpu.memory_space<vmem>>, vector<1x1x32x8xf32>
    %749 = vector.shape_cast %748 : vector<1x1x32x8xf32> to vector<32x8xf32>
    %cst_612 = arith.constant dense<0.000000e+00> : vector<8x8xf32>
    %750 = tpu.matmul %3, %749, %cst_612 {dimension_numbers = #tpu.dot_dimension_numbers<[1], [0], [0], [1], [0, 0, 1, 1], [], []>} : vector<8x32xf32>, vector<32x8xf32>, vector<8x8xf32> -> vector<8x8xf32>
    %c1_613 = arith.constant 1 : index
    %c1_614 = arith.constant 1 : index
    %c0_615 = arith.constant 0 : index
    %c0_616 = arith.constant 0 : index
    %751 = vector.load %arg18[%c1_613, %c1_614, %c0_615, %c0_616] : memref<2x4x1x8xf32, #tpu.memory_space<vmem>>, vector<1x1x1x8xf32>
    %752 = vector.shape_cast %751 : vector<1x1x1x8xf32> to vector<1x8xf32>
    %753 = vector.broadcast %752 : vector<1x8xf32> to vector<8x8xf32>
    %754 = arith.addf %750, %753 : vector<8x8xf32>
    %c1_617 = arith.constant 1 : index
    %c1_618 = arith.constant 1 : index
    %c0_619 = arith.constant 0 : index
    %c0_620 = arith.constant 0 : index
    %755 = vector.load %arg19[%c1_617, %c1_618, %c0_619, %c0_620] : memref<2x4x32x8xf32, #tpu.memory_space<vmem>>, vector<1x1x32x8xf32>
    %756 = vector.shape_cast %755 : vector<1x1x32x8xf32> to vector<32x8xf32>
    %cst_621 = arith.constant dense<0.000000e+00> : vector<8x8xf32>
    %757 = tpu.matmul %3, %756, %cst_621 {dimension_numbers = #tpu.dot_dimension_numbers<[1], [0], [0], [1], [0, 0, 1, 1], [], []>} : vector<8x32xf32>, vector<32x8xf32>, vector<8x8xf32> -> vector<8x8xf32>
    %c1_622 = arith.constant 1 : index
    %c1_623 = arith.constant 1 : index
    %c0_624 = arith.constant 0 : index
    %c0_625 = arith.constant 0 : index
    %758 = vector.load %arg20[%c1_622, %c1_623, %c0_624, %c0_625] : memref<2x4x1x8xf32, #tpu.memory_space<vmem>>, vector<1x1x1x8xf32>
    %759 = vector.shape_cast %758 : vector<1x1x1x8xf32> to vector<1x8xf32>
    %760 = vector.broadcast %759 : vector<1x8xf32> to vector<8x8xf32>
    %761 = arith.addf %757, %760 : vector<8x8xf32>
    %cst_626 = arith.constant dense<0.000000e+00> : vector<8x8xf32>
    %762 = tpu.matmul %747, %754, %cst_626 {dimension_numbers = #tpu.dot_dimension_numbers<[1], [1], [0], [0], [0, 0, 1, 0], [], []>} : vector<8x8xf32>, vector<8x8xf32>, vector<8x8xf32> -> vector<8x8xf32>
    %763 = arith.addf %762, %7 : vector<8x8xf32>
    %cst_627 = arith.constant dense<0xFF800000> : vector<8xf32>
    %764 = vector.multi_reduction <maximumf>, %763, %cst_627 [1] : vector<8x8xf32> to vector<8xf32>
    %765 = vector.shape_cast %764 : vector<8xf32> to vector<8x1xf32>
    %766 = vector.broadcast %765 : vector<8x1xf32> to vector<8x8xf32>
    %767 = arith.subf %763, %766 : vector<8x8xf32>
    %768 = math.exp %767 : vector<8x8xf32>
    %cst_628 = arith.constant dense<0.000000e+00> : vector<8xf32>
    %769 = vector.multi_reduction <add>, %768, %cst_628 [1] : vector<8x8xf32> to vector<8xf32>
    %770 = vector.shape_cast %769 : vector<8xf32> to vector<8x1xf32>
    %771 = vector.broadcast %770 : vector<8x1xf32> to vector<8x8xf32>
    %772 = arith.divf %768, %771 : vector<8x8xf32>
    %cst_629 = arith.constant dense<0.000000e+00> : vector<8x8xf32>
    %773 = tpu.matmul %772, %761, %cst_629 {dimension_numbers = #tpu.dot_dimension_numbers<[1], [0], [0], [1], [0, 0, 1, 1], [], []>} : vector<8x8xf32>, vector<8x8xf32>, vector<8x8xf32> -> vector<8x8xf32>
    %c1_630 = arith.constant 1 : index
    %c1_631 = arith.constant 1 : index
    %c0_632 = arith.constant 0 : index
    %c0_633 = arith.constant 0 : index
    %774 = vector.load %arg21[%c1_630, %c1_631, %c0_632, %c0_633] : memref<2x4x8x32xf32, #tpu.memory_space<vmem>>, vector<1x1x8x32xf32>
    %775 = vector.shape_cast %774 : vector<1x1x8x32xf32> to vector<8x32xf32>
    %cst_634 = arith.constant dense<0.000000e+00> : vector<8x32xf32>
    %776 = tpu.matmul %773, %775, %cst_634 {dimension_numbers = #tpu.dot_dimension_numbers<[1], [0], [0], [1], [0, 0, 1, 1], [], []>} : vector<8x8xf32>, vector<8x32xf32>, vector<8x32xf32> -> vector<8x32xf32>
    %777 = arith.addf %740, %776 : vector<8x32xf32>
    %c1_635 = arith.constant 1 : index
    %c2_636 = arith.constant 2 : index
    %c0_637 = arith.constant 0 : index
    %c0_638 = arith.constant 0 : index
    %778 = vector.load %arg15[%c1_635, %c2_636, %c0_637, %c0_638] : memref<2x4x32x8xf32, #tpu.memory_space<vmem>>, vector<1x1x32x8xf32>
    %779 = vector.shape_cast %778 : vector<1x1x32x8xf32> to vector<32x8xf32>
    %cst_639 = arith.constant dense<0.000000e+00> : vector<8x8xf32>
    %780 = tpu.matmul %700, %779, %cst_639 {dimension_numbers = #tpu.dot_dimension_numbers<[1], [0], [0], [1], [0, 0, 1, 1], [], []>} : vector<8x32xf32>, vector<32x8xf32>, vector<8x8xf32> -> vector<8x8xf32>
    %c1_640 = arith.constant 1 : index
    %c2_641 = arith.constant 2 : index
    %c0_642 = arith.constant 0 : index
    %c0_643 = arith.constant 0 : index
    %781 = vector.load %arg16[%c1_640, %c2_641, %c0_642, %c0_643] : memref<2x4x1x8xf32, #tpu.memory_space<vmem>>, vector<1x1x1x8xf32>
    %782 = vector.shape_cast %781 : vector<1x1x1x8xf32> to vector<1x8xf32>
    %783 = vector.broadcast %782 : vector<1x8xf32> to vector<8x8xf32>
    %784 = arith.addf %780, %783 : vector<8x8xf32>
    %c1_644 = arith.constant 1 : index
    %c2_645 = arith.constant 2 : index
    %c0_646 = arith.constant 0 : index
    %c0_647 = arith.constant 0 : index
    %785 = vector.load %arg17[%c1_644, %c2_645, %c0_646, %c0_647] : memref<2x4x32x8xf32, #tpu.memory_space<vmem>>, vector<1x1x32x8xf32>
    %786 = vector.shape_cast %785 : vector<1x1x32x8xf32> to vector<32x8xf32>
    %cst_648 = arith.constant dense<0.000000e+00> : vector<8x8xf32>
    %787 = tpu.matmul %3, %786, %cst_648 {dimension_numbers = #tpu.dot_dimension_numbers<[1], [0], [0], [1], [0, 0, 1, 1], [], []>} : vector<8x32xf32>, vector<32x8xf32>, vector<8x8xf32> -> vector<8x8xf32>
    %c1_649 = arith.constant 1 : index
    %c2_650 = arith.constant 2 : index
    %c0_651 = arith.constant 0 : index
    %c0_652 = arith.constant 0 : index
    %788 = vector.load %arg18[%c1_649, %c2_650, %c0_651, %c0_652] : memref<2x4x1x8xf32, #tpu.memory_space<vmem>>, vector<1x1x1x8xf32>
    %789 = vector.shape_cast %788 : vector<1x1x1x8xf32> to vector<1x8xf32>
    %790 = vector.broadcast %789 : vector<1x8xf32> to vector<8x8xf32>
    %791 = arith.addf %787, %790 : vector<8x8xf32>
    %c1_653 = arith.constant 1 : index
    %c2_654 = arith.constant 2 : index
    %c0_655 = arith.constant 0 : index
    %c0_656 = arith.constant 0 : index
    %792 = vector.load %arg19[%c1_653, %c2_654, %c0_655, %c0_656] : memref<2x4x32x8xf32, #tpu.memory_space<vmem>>, vector<1x1x32x8xf32>
    %793 = vector.shape_cast %792 : vector<1x1x32x8xf32> to vector<32x8xf32>
    %cst_657 = arith.constant dense<0.000000e+00> : vector<8x8xf32>
    %794 = tpu.matmul %3, %793, %cst_657 {dimension_numbers = #tpu.dot_dimension_numbers<[1], [0], [0], [1], [0, 0, 1, 1], [], []>} : vector<8x32xf32>, vector<32x8xf32>, vector<8x8xf32> -> vector<8x8xf32>
    %c1_658 = arith.constant 1 : index
    %c2_659 = arith.constant 2 : index
    %c0_660 = arith.constant 0 : index
    %c0_661 = arith.constant 0 : index
    %795 = vector.load %arg20[%c1_658, %c2_659, %c0_660, %c0_661] : memref<2x4x1x8xf32, #tpu.memory_space<vmem>>, vector<1x1x1x8xf32>
    %796 = vector.shape_cast %795 : vector<1x1x1x8xf32> to vector<1x8xf32>
    %797 = vector.broadcast %796 : vector<1x8xf32> to vector<8x8xf32>
    %798 = arith.addf %794, %797 : vector<8x8xf32>
    %cst_662 = arith.constant dense<0.000000e+00> : vector<8x8xf32>
    %799 = tpu.matmul %784, %791, %cst_662 {dimension_numbers = #tpu.dot_dimension_numbers<[1], [1], [0], [0], [0, 0, 1, 0], [], []>} : vector<8x8xf32>, vector<8x8xf32>, vector<8x8xf32> -> vector<8x8xf32>
    %800 = arith.addf %799, %7 : vector<8x8xf32>
    %cst_663 = arith.constant dense<0xFF800000> : vector<8xf32>
    %801 = vector.multi_reduction <maximumf>, %800, %cst_663 [1] : vector<8x8xf32> to vector<8xf32>
    %802 = vector.shape_cast %801 : vector<8xf32> to vector<8x1xf32>
    %803 = vector.broadcast %802 : vector<8x1xf32> to vector<8x8xf32>
    %804 = arith.subf %800, %803 : vector<8x8xf32>
    %805 = math.exp %804 : vector<8x8xf32>
    %cst_664 = arith.constant dense<0.000000e+00> : vector<8xf32>
    %806 = vector.multi_reduction <add>, %805, %cst_664 [1] : vector<8x8xf32> to vector<8xf32>
    %807 = vector.shape_cast %806 : vector<8xf32> to vector<8x1xf32>
    %808 = vector.broadcast %807 : vector<8x1xf32> to vector<8x8xf32>
    %809 = arith.divf %805, %808 : vector<8x8xf32>
    %cst_665 = arith.constant dense<0.000000e+00> : vector<8x8xf32>
    %810 = tpu.matmul %809, %798, %cst_665 {dimension_numbers = #tpu.dot_dimension_numbers<[1], [0], [0], [1], [0, 0, 1, 1], [], []>} : vector<8x8xf32>, vector<8x8xf32>, vector<8x8xf32> -> vector<8x8xf32>
    %c1_666 = arith.constant 1 : index
    %c2_667 = arith.constant 2 : index
    %c0_668 = arith.constant 0 : index
    %c0_669 = arith.constant 0 : index
    %811 = vector.load %arg21[%c1_666, %c2_667, %c0_668, %c0_669] : memref<2x4x8x32xf32, #tpu.memory_space<vmem>>, vector<1x1x8x32xf32>
    %812 = vector.shape_cast %811 : vector<1x1x8x32xf32> to vector<8x32xf32>
    %cst_670 = arith.constant dense<0.000000e+00> : vector<8x32xf32>
    %813 = tpu.matmul %810, %812, %cst_670 {dimension_numbers = #tpu.dot_dimension_numbers<[1], [0], [0], [1], [0, 0, 1, 1], [], []>} : vector<8x8xf32>, vector<8x32xf32>, vector<8x32xf32> -> vector<8x32xf32>
    %814 = arith.addf %777, %813 : vector<8x32xf32>
    %c1_671 = arith.constant 1 : index
    %c3_672 = arith.constant 3 : index
    %c0_673 = arith.constant 0 : index
    %c0_674 = arith.constant 0 : index
    %815 = vector.load %arg15[%c1_671, %c3_672, %c0_673, %c0_674] : memref<2x4x32x8xf32, #tpu.memory_space<vmem>>, vector<1x1x32x8xf32>
    %816 = vector.shape_cast %815 : vector<1x1x32x8xf32> to vector<32x8xf32>
    %cst_675 = arith.constant dense<0.000000e+00> : vector<8x8xf32>
    %817 = tpu.matmul %700, %816, %cst_675 {dimension_numbers = #tpu.dot_dimension_numbers<[1], [0], [0], [1], [0, 0, 1, 1], [], []>} : vector<8x32xf32>, vector<32x8xf32>, vector<8x8xf32> -> vector<8x8xf32>
    %c1_676 = arith.constant 1 : index
    %c3_677 = arith.constant 3 : index
    %c0_678 = arith.constant 0 : index
    %c0_679 = arith.constant 0 : index
    %818 = vector.load %arg16[%c1_676, %c3_677, %c0_678, %c0_679] : memref<2x4x1x8xf32, #tpu.memory_space<vmem>>, vector<1x1x1x8xf32>
    %819 = vector.shape_cast %818 : vector<1x1x1x8xf32> to vector<1x8xf32>
    %820 = vector.broadcast %819 : vector<1x8xf32> to vector<8x8xf32>
    %821 = arith.addf %817, %820 : vector<8x8xf32>
    %c1_680 = arith.constant 1 : index
    %c3_681 = arith.constant 3 : index
    %c0_682 = arith.constant 0 : index
    %c0_683 = arith.constant 0 : index
    %822 = vector.load %arg17[%c1_680, %c3_681, %c0_682, %c0_683] : memref<2x4x32x8xf32, #tpu.memory_space<vmem>>, vector<1x1x32x8xf32>
    %823 = vector.shape_cast %822 : vector<1x1x32x8xf32> to vector<32x8xf32>
    %cst_684 = arith.constant dense<0.000000e+00> : vector<8x8xf32>
    %824 = tpu.matmul %3, %823, %cst_684 {dimension_numbers = #tpu.dot_dimension_numbers<[1], [0], [0], [1], [0, 0, 1, 1], [], []>} : vector<8x32xf32>, vector<32x8xf32>, vector<8x8xf32> -> vector<8x8xf32>
    %c1_685 = arith.constant 1 : index
    %c3_686 = arith.constant 3 : index
    %c0_687 = arith.constant 0 : index
    %c0_688 = arith.constant 0 : index
    %825 = vector.load %arg18[%c1_685, %c3_686, %c0_687, %c0_688] : memref<2x4x1x8xf32, #tpu.memory_space<vmem>>, vector<1x1x1x8xf32>
    %826 = vector.shape_cast %825 : vector<1x1x1x8xf32> to vector<1x8xf32>
    %827 = vector.broadcast %826 : vector<1x8xf32> to vector<8x8xf32>
    %828 = arith.addf %824, %827 : vector<8x8xf32>
    %c1_689 = arith.constant 1 : index
    %c3_690 = arith.constant 3 : index
    %c0_691 = arith.constant 0 : index
    %c0_692 = arith.constant 0 : index
    %829 = vector.load %arg19[%c1_689, %c3_690, %c0_691, %c0_692] : memref<2x4x32x8xf32, #tpu.memory_space<vmem>>, vector<1x1x32x8xf32>
    %830 = vector.shape_cast %829 : vector<1x1x32x8xf32> to vector<32x8xf32>
    %cst_693 = arith.constant dense<0.000000e+00> : vector<8x8xf32>
    %831 = tpu.matmul %3, %830, %cst_693 {dimension_numbers = #tpu.dot_dimension_numbers<[1], [0], [0], [1], [0, 0, 1, 1], [], []>} : vector<8x32xf32>, vector<32x8xf32>, vector<8x8xf32> -> vector<8x8xf32>
    %c1_694 = arith.constant 1 : index
    %c3_695 = arith.constant 3 : index
    %c0_696 = arith.constant 0 : index
    %c0_697 = arith.constant 0 : index
    %832 = vector.load %arg20[%c1_694, %c3_695, %c0_696, %c0_697] : memref<2x4x1x8xf32, #tpu.memory_space<vmem>>, vector<1x1x1x8xf32>
    %833 = vector.shape_cast %832 : vector<1x1x1x8xf32> to vector<1x8xf32>
    %834 = vector.broadcast %833 : vector<1x8xf32> to vector<8x8xf32>
    %835 = arith.addf %831, %834 : vector<8x8xf32>
    %cst_698 = arith.constant dense<0.000000e+00> : vector<8x8xf32>
    %836 = tpu.matmul %821, %828, %cst_698 {dimension_numbers = #tpu.dot_dimension_numbers<[1], [1], [0], [0], [0, 0, 1, 0], [], []>} : vector<8x8xf32>, vector<8x8xf32>, vector<8x8xf32> -> vector<8x8xf32>
    %837 = arith.addf %836, %7 : vector<8x8xf32>
    %cst_699 = arith.constant dense<0xFF800000> : vector<8xf32>
    %838 = vector.multi_reduction <maximumf>, %837, %cst_699 [1] : vector<8x8xf32> to vector<8xf32>
    %839 = vector.shape_cast %838 : vector<8xf32> to vector<8x1xf32>
    %840 = vector.broadcast %839 : vector<8x1xf32> to vector<8x8xf32>
    %841 = arith.subf %837, %840 : vector<8x8xf32>
    %842 = math.exp %841 : vector<8x8xf32>
    %cst_700 = arith.constant dense<0.000000e+00> : vector<8xf32>
    %843 = vector.multi_reduction <add>, %842, %cst_700 [1] : vector<8x8xf32> to vector<8xf32>
    %844 = vector.shape_cast %843 : vector<8xf32> to vector<8x1xf32>
    %845 = vector.broadcast %844 : vector<8x1xf32> to vector<8x8xf32>
    %846 = arith.divf %842, %845 : vector<8x8xf32>
    %cst_701 = arith.constant dense<0.000000e+00> : vector<8x8xf32>
    %847 = tpu.matmul %846, %835, %cst_701 {dimension_numbers = #tpu.dot_dimension_numbers<[1], [0], [0], [1], [0, 0, 1, 1], [], []>} : vector<8x8xf32>, vector<8x8xf32>, vector<8x8xf32> -> vector<8x8xf32>
    %c1_702 = arith.constant 1 : index
    %c3_703 = arith.constant 3 : index
    %c0_704 = arith.constant 0 : index
    %c0_705 = arith.constant 0 : index
    %848 = vector.load %arg21[%c1_702, %c3_703, %c0_704, %c0_705] : memref<2x4x8x32xf32, #tpu.memory_space<vmem>>, vector<1x1x8x32xf32>
    %849 = vector.shape_cast %848 : vector<1x1x8x32xf32> to vector<8x32xf32>
    %cst_706 = arith.constant dense<0.000000e+00> : vector<8x32xf32>
    %850 = tpu.matmul %847, %849, %cst_706 {dimension_numbers = #tpu.dot_dimension_numbers<[1], [0], [0], [1], [0, 0, 1, 1], [], []>} : vector<8x8xf32>, vector<8x32xf32>, vector<8x32xf32> -> vector<8x32xf32>
    %851 = arith.addf %814, %850 : vector<8x32xf32>
    %c1_707 = arith.constant 1 : index
    %c0_708 = arith.constant 0 : index
    %c0_709 = arith.constant 0 : index
    %852 = vector.load %arg22[%c1_707, %c0_708, %c0_709] : memref<2x1x32xf32, #tpu.memory_space<vmem>>, vector<1x1x32xf32>
    %853 = vector.shape_cast %852 : vector<1x1x32xf32> to vector<1x32xf32>
    %854 = vector.broadcast %853 : vector<1x32xf32> to vector<8x32xf32>
    %855 = arith.addf %851, %854 : vector<8x32xf32>
    %856 = arith.addf %855, %700 : vector<8x32xf32>
    %c1_710 = arith.constant 1 : index
    %c0_711 = arith.constant 0 : index
    %c0_712 = arith.constant 0 : index
    %857 = vector.load %arg23[%c1_710, %c0_711, %c0_712] : memref<2x1x32xf32, #tpu.memory_space<vmem>>, vector<1x1x32xf32>
    %858 = vector.shape_cast %857 : vector<1x1x32xf32> to vector<1x32xf32>
    %c1_713 = arith.constant 1 : index
    %c0_714 = arith.constant 0 : index
    %c0_715 = arith.constant 0 : index
    %859 = vector.load %arg24[%c1_713, %c0_714, %c0_715] : memref<2x1x32xf32, #tpu.memory_space<vmem>>, vector<1x1x32xf32>
    %860 = vector.shape_cast %859 : vector<1x1x32xf32> to vector<1x32xf32>
    %cst_716 = arith.constant dense<0.000000e+00> : vector<8xf32>
    %861 = vector.multi_reduction <add>, %856, %cst_716 [1] : vector<8x32xf32> to vector<8xf32>
    %862 = vector.shape_cast %861 : vector<8xf32> to vector<8x1xf32>
    %cst_717 = arith.constant 3.200000e+01 : f32
    %863 = vector.broadcast %cst_717 : f32 to vector<8x1xf32>
    %864 = arith.divf %862, %863 : vector<8x1xf32>
    %865 = vector.broadcast %864 : vector<8x1xf32> to vector<8x32xf32>
    %866 = arith.subf %856, %865 : vector<8x32xf32>
    %867 = arith.mulf %866, %866 : vector<8x32xf32>
    %cst_718 = arith.constant dense<0.000000e+00> : vector<8xf32>
    %868 = vector.multi_reduction <add>, %867, %cst_718 [1] : vector<8x32xf32> to vector<8xf32>
    %869 = vector.shape_cast %868 : vector<8xf32> to vector<8x1xf32>
    %cst_719 = arith.constant 3.200000e+01 : f32
    %870 = vector.broadcast %cst_719 : f32 to vector<8x1xf32>
    %871 = arith.divf %869, %870 : vector<8x1xf32>
    %872 = vector.broadcast %864 : vector<8x1xf32> to vector<8x32xf32>
    %873 = arith.subf %856, %872 : vector<8x32xf32>
    %cst_720 = arith.constant 9.99999997E-7 : f32
    %874 = vector.broadcast %cst_720 : f32 to vector<8x1xf32>
    %875 = arith.addf %871, %874 : vector<8x1xf32>
    %876 = math.rsqrt %875 : vector<8x1xf32>
    %877 = vector.broadcast %876 : vector<8x1xf32> to vector<8x32xf32>
    %878 = arith.mulf %873, %877 : vector<8x32xf32>
    %879 = vector.broadcast %858 : vector<1x32xf32> to vector<8x32xf32>
    %880 = arith.mulf %878, %879 : vector<8x32xf32>
    %881 = vector.broadcast %860 : vector<1x32xf32> to vector<8x32xf32>
    %882 = arith.addf %880, %881 : vector<8x32xf32>
    %883 = arith.addf %882, %700 : vector<8x32xf32>
    %c1_721 = arith.constant 1 : index
    %c0_722 = arith.constant 0 : index
    %c0_723 = arith.constant 0 : index
    %884 = vector.load %arg31[%c1_721, %c0_722, %c0_723] : memref<2x1x32xf32, #tpu.memory_space<vmem>>, vector<1x1x32xf32>
    %885 = vector.shape_cast %884 : vector<1x1x32xf32> to vector<1x32xf32>
    %c1_724 = arith.constant 1 : index
    %c0_725 = arith.constant 0 : index
    %c0_726 = arith.constant 0 : index
    %886 = vector.load %arg32[%c1_724, %c0_725, %c0_726] : memref<2x1x32xf32, #tpu.memory_space<vmem>>, vector<1x1x32xf32>
    %887 = vector.shape_cast %886 : vector<1x1x32xf32> to vector<1x32xf32>
    %cst_727 = arith.constant dense<0.000000e+00> : vector<8xf32>
    %888 = vector.multi_reduction <add>, %883, %cst_727 [1] : vector<8x32xf32> to vector<8xf32>
    %889 = vector.shape_cast %888 : vector<8xf32> to vector<8x1xf32>
    %cst_728 = arith.constant 3.200000e+01 : f32
    %890 = vector.broadcast %cst_728 : f32 to vector<8x1xf32>
    %891 = arith.divf %889, %890 : vector<8x1xf32>
    %892 = vector.broadcast %891 : vector<8x1xf32> to vector<8x32xf32>
    %893 = arith.subf %883, %892 : vector<8x32xf32>
    %894 = arith.mulf %893, %893 : vector<8x32xf32>
    %cst_729 = arith.constant dense<0.000000e+00> : vector<8xf32>
    %895 = vector.multi_reduction <add>, %894, %cst_729 [1] : vector<8x32xf32> to vector<8xf32>
    %896 = vector.shape_cast %895 : vector<8xf32> to vector<8x1xf32>
    %cst_730 = arith.constant 3.200000e+01 : f32
    %897 = vector.broadcast %cst_730 : f32 to vector<8x1xf32>
    %898 = arith.divf %896, %897 : vector<8x1xf32>
    %899 = vector.broadcast %891 : vector<8x1xf32> to vector<8x32xf32>
    %900 = arith.subf %883, %899 : vector<8x32xf32>
    %cst_731 = arith.constant 9.99999997E-7 : f32
    %901 = vector.broadcast %cst_731 : f32 to vector<8x1xf32>
    %902 = arith.addf %898, %901 : vector<8x1xf32>
    %903 = math.rsqrt %902 : vector<8x1xf32>
    %904 = vector.broadcast %903 : vector<8x1xf32> to vector<8x32xf32>
    %905 = arith.mulf %900, %904 : vector<8x32xf32>
    %906 = vector.broadcast %885 : vector<1x32xf32> to vector<8x32xf32>
    %907 = arith.mulf %905, %906 : vector<8x32xf32>
    %908 = vector.broadcast %887 : vector<1x32xf32> to vector<8x32xf32>
    %909 = arith.addf %907, %908 : vector<8x32xf32>
    %910 = tpu.concatenate %736, %772, %809, %846 in 1 : vector<8x8xf32>, vector<8x8xf32>, vector<8x8xf32>, vector<8x8xf32> -> vector<8x32xf32>
    %c1_732 = arith.constant 1 : index
    %c0_733 = arith.constant 0 : index
    %c0_734 = arith.constant 0 : index
    %c0_735 = arith.constant 0 : index
    %911 = vector.load %arg35[%c1_732, %c0_733, %c0_734, %c0_735] : memref<2x1x8x32xf32, #tpu.memory_space<vmem>>, vector<1x1x8x32xf32>
    %912 = vector.shape_cast %911 : vector<1x1x8x32xf32> to vector<8x32xf32>
    %913 = vector.shape_cast %910 : vector<8x32xf32> to vector<1x1x8x32xf32>
    tpu.vector_store %arg35[%c1_732, %c0_733, %c0_734, %c0_735], %913 {strides = array<i32>} : memref<2x1x8x32xf32, #tpu.memory_space<vmem>>, vector<1x1x8x32xf32>,
    %c1_736 = arith.constant 1 : index
    %c0_737 = arith.constant 0 : index
    %c0_738 = arith.constant 0 : index
    %914 = vector.load %arg25[%c1_736, %c0_737, %c0_738] : memref<2x32x64xf32, #tpu.memory_space<vmem>>, vector<1x32x64xf32>
    %915 = vector.shape_cast %914 : vector<1x32x64xf32> to vector<32x64xf32>
    %cst_739 = arith.constant dense<0.000000e+00> : vector<8x64xf32>
    %916 = tpu.matmul %909, %915, %cst_739 {dimension_numbers = #tpu.dot_dimension_numbers<[1], [0], [0], [1], [0, 0, 1, 1], [], []>} : vector<8x32xf32>, vector<32x64xf32>, vector<8x64xf32> -> vector<8x64xf32>
    %c1_740 = arith.constant 1 : index
    %c0_741 = arith.constant 0 : index
    %c0_742 = arith.constant 0 : index
    %917 = vector.load %arg26[%c1_740, %c0_741, %c0_742] : memref<2x1x64xf32, #tpu.memory_space<vmem>>, vector<1x1x64xf32>
    %918 = vector.shape_cast %917 : vector<1x1x64xf32> to vector<1x64xf32>
    %919 = vector.broadcast %918 : vector<1x64xf32> to vector<8x64xf32>
    %920 = arith.addf %916, %919 : vector<8x64xf32>
    %cst_743 = arith.constant 0.000000e+00 : f32
    %921 = vector.broadcast %cst_743 : f32 to vector<8x64xf32>
    %922 = arith.maximumf %920, %921 : vector<8x64xf32>
    %c1_744 = arith.constant 1 : index
    %c0_745 = arith.constant 0 : index
    %c0_746 = arith.constant 0 : index
    %923 = vector.load %arg27[%c1_744, %c0_745, %c0_746] : memref<2x64x32xf32, #tpu.memory_space<vmem>>, vector<1x64x32xf32>
    %924 = vector.shape_cast %923 : vector<1x64x32xf32> to vector<64x32xf32>
    %cst_747 = arith.constant dense<0.000000e+00> : vector<8x32xf32>
    %925 = tpu.matmul %922, %924, %cst_747 {dimension_numbers = #tpu.dot_dimension_numbers<[1], [0], [0], [1], [0, 0, 1, 1], [], []>} : vector<8x64xf32>, vector<64x32xf32>, vector<8x32xf32> -> vector<8x32xf32>
    %c1_748 = arith.constant 1 : index
    %c0_749 = arith.constant 0 : index
    %c0_750 = arith.constant 0 : index
    %926 = vector.load %arg28[%c1_748, %c0_749, %c0_750] : memref<2x1x32xf32, #tpu.memory_space<vmem>>, vector<1x1x32xf32>
    %927 = vector.shape_cast %926 : vector<1x1x32xf32> to vector<1x32xf32>
    %928 = vector.broadcast %927 : vector<1x32xf32> to vector<8x32xf32>
    %929 = arith.addf %925, %928 : vector<8x32xf32>
    %930 = arith.addf %929, %909 : vector<8x32xf32>
    %c1_751 = arith.constant 1 : index
    %c0_752 = arith.constant 0 : index
    %c0_753 = arith.constant 0 : index
    %931 = vector.load %arg29[%c1_751, %c0_752, %c0_753] : memref<2x1x32xf32, #tpu.memory_space<vmem>>, vector<1x1x32xf32>
    %932 = vector.shape_cast %931 : vector<1x1x32xf32> to vector<1x32xf32>
    %c1_754 = arith.constant 1 : index
    %c0_755 = arith.constant 0 : index
    %c0_756 = arith.constant 0 : index
    %933 = vector.load %arg30[%c1_754, %c0_755, %c0_756] : memref<2x1x32xf32, #tpu.memory_space<vmem>>, vector<1x1x32xf32>
    %934 = vector.shape_cast %933 : vector<1x1x32xf32> to vector<1x32xf32>
    %cst_757 = arith.constant dense<0.000000e+00> : vector<8xf32>
    %935 = vector.multi_reduction <add>, %930, %cst_757 [1] : vector<8x32xf32> to vector<8xf32>
    %936 = vector.shape_cast %935 : vector<8xf32> to vector<8x1xf32>
    %cst_758 = arith.constant 3.200000e+01 : f32
    %937 = vector.broadcast %cst_758 : f32 to vector<8x1xf32>
    %938 = arith.divf %936, %937 : vector<8x1xf32>
    %939 = vector.broadcast %938 : vector<8x1xf32> to vector<8x32xf32>
    %940 = arith.subf %930, %939 : vector<8x32xf32>
    %941 = arith.mulf %940, %940 : vector<8x32xf32>
    %cst_759 = arith.constant dense<0.000000e+00> : vector<8xf32>
    %942 = vector.multi_reduction <add>, %941, %cst_759 [1] : vector<8x32xf32> to vector<8xf32>
    %943 = vector.shape_cast %942 : vector<8xf32> to vector<8x1xf32>
    %cst_760 = arith.constant 3.200000e+01 : f32
    %944 = vector.broadcast %cst_760 : f32 to vector<8x1xf32>
    %945 = arith.divf %943, %944 : vector<8x1xf32>
    %946 = vector.broadcast %938 : vector<8x1xf32> to vector<8x32xf32>
    %947 = arith.subf %930, %946 : vector<8x32xf32>
    %cst_761 = arith.constant 9.99999997E-7 : f32
    %948 = vector.broadcast %cst_761 : f32 to vector<8x1xf32>
    %949 = arith.addf %945, %948 : vector<8x1xf32>
    %950 = math.rsqrt %949 : vector<8x1xf32>
    %951 = vector.broadcast %950 : vector<8x1xf32> to vector<8x32xf32>
    %952 = arith.mulf %947, %951 : vector<8x32xf32>
    %953 = vector.broadcast %932 : vector<1x32xf32> to vector<8x32xf32>
    %954 = arith.mulf %952, %953 : vector<8x32xf32>
    %955 = vector.broadcast %934 : vector<1x32xf32> to vector<8x32xf32>
    %956 = arith.addf %954, %955 : vector<8x32xf32>
    %957 = arith.addf %956, %909 : vector<8x32xf32>
    %c1_762 = arith.constant 1 : index
    %c0_763 = arith.constant 0 : index
    %c0_764 = arith.constant 0 : index
    %958 = vector.load %arg31[%c1_762, %c0_763, %c0_764] : memref<2x1x32xf32, #tpu.memory_space<vmem>>, vector<1x1x32xf32>
    %959 = vector.shape_cast %958 : vector<1x1x32xf32> to vector<1x32xf32>
    %c1_765 = arith.constant 1 : index
    %c0_766 = arith.constant 0 : index
    %c0_767 = arith.constant 0 : index
    %960 = vector.load %arg32[%c1_765, %c0_766, %c0_767] : memref<2x1x32xf32, #tpu.memory_space<vmem>>, vector<1x1x32xf32>
    %961 = vector.shape_cast %960 : vector<1x1x32xf32> to vector<1x32xf32>
    %cst_768 = arith.constant dense<0.000000e+00> : vector<8xf32>
    %962 = vector.multi_reduction <add>, %957, %cst_768 [1] : vector<8x32xf32> to vector<8xf32>
    %963 = vector.shape_cast %962 : vector<8xf32> to vector<8x1xf32>
    %cst_769 = arith.constant 3.200000e+01 : f32
    %964 = vector.broadcast %cst_769 : f32 to vector<8x1xf32>
    %965 = arith.divf %963, %964 : vector<8x1xf32>
    %966 = vector.broadcast %965 : vector<8x1xf32> to vector<8x32xf32>
    %967 = arith.subf %957, %966 : vector<8x32xf32>
    %968 = arith.mulf %967, %967 : vector<8x32xf32>
    %cst_770 = arith.constant dense<0.000000e+00> : vector<8xf32>
    %969 = vector.multi_reduction <add>, %968, %cst_770 [1] : vector<8x32xf32> to vector<8xf32>
    %970 = vector.shape_cast %969 : vector<8xf32> to vector<8x1xf32>
    %cst_771 = arith.constant 3.200000e+01 : f32
    %971 = vector.broadcast %cst_771 : f32 to vector<8x1xf32>
    %972 = arith.divf %970, %971 : vector<8x1xf32>
    %973 = vector.broadcast %965 : vector<8x1xf32> to vector<8x32xf32>
    %974 = arith.subf %957, %973 : vector<8x32xf32>
    %cst_772 = arith.constant 9.99999997E-7 : f32
    %975 = vector.broadcast %cst_772 : f32 to vector<8x1xf32>
    %976 = arith.addf %972, %975 : vector<8x1xf32>
    %977 = math.rsqrt %976 : vector<8x1xf32>
    %978 = vector.broadcast %977 : vector<8x1xf32> to vector<8x32xf32>
    %979 = arith.mulf %974, %978 : vector<8x32xf32>
    %980 = vector.broadcast %959 : vector<1x32xf32> to vector<8x32xf32>
    %981 = arith.mulf %979, %980 : vector<8x32xf32>
    %982 = vector.broadcast %961 : vector<1x32xf32> to vector<8x32xf32>
    %983 = arith.addf %981, %982 : vector<8x32xf32>
    %c0_773 = arith.constant 0 : index
    %c0_774 = arith.constant 0 : index
    %c0_775 = arith.constant 0 : index
    %984 = vector.load %arg33[%c0_773, %c0_774, %c0_775] : memref<1x8x32xf32, #tpu.memory_space<vmem>>, vector<1x8x32xf32>
    %985 = vector.shape_cast %984 : vector<1x8x32xf32> to vector<8x32xf32>
    %986 = vector.shape_cast %983 : vector<8x32xf32> to vector<1x8x32xf32>
    tpu.vector_store %arg33[%c0_773, %c0_774, %c0_775], %986 {strides = array<i32>} : memref<1x8x32xf32, #tpu.memory_space<vmem>>, vector<1x8x32xf32>,
    return
  }
  func.func @transform_0(%arg0: i32) -> (i32, i32, i32) {
    %c0_i32 = arith.constant 0 : i32
    %c0_i32_0 = arith.constant 0 : i32
    %c0_i32_1 = arith.constant 0 : i32
    return %arg0, %c0_i32, %c0_i32_0 : i32, i32, i32
  }
  func.func @transform_1(%arg0: i32) -> (i32, i32, i32) {
    %c0_i32 = arith.constant 0 : i32
    %c0_i32_0 = arith.constant 0 : i32
    %c0_i32_1 = arith.constant 0 : i32
    return %arg0, %c0_i32, %c0_i32_0 : i32, i32, i32
  }
  func.func @transform_2(%arg0: i32) -> (i32, i32, i32) {
    %c0_i32 = arith.constant 0 : i32
    %c0_i32_0 = arith.constant 0 : i32
    %c0_i32_1 = arith.constant 0 : i32
    return %arg0, %c0_i32, %c0_i32_0 : i32, i32, i32
  }
  func.func @transform_3(%arg0: i32) -> (i32, i32, i32) {
    %c0_i32 = arith.constant 0 : i32
    %c0_i32_0 = arith.constant 0 : i32
    %c0_i32_1 = arith.constant 0 : i32
    return %arg0, %c0_i32, %c0_i32_0 : i32, i32, i32
  }
  func.func @transform_4(%arg0: i32) -> (i32, i32, i32, i32) {
    %c0_i32 = arith.constant 0 : i32
    %c0_i32_0 = arith.constant 0 : i32
    %c0_i32_1 = arith.constant 0 : i32
    %c0_i32_2 = arith.constant 0 : i32
    %c0_i32_3 = arith.constant 0 : i32
    return %c0_i32, %c0_i32_0, %c0_i32_1, %c0_i32_2 : i32, i32, i32, i32
  }
  func.func @transform_5(%arg0: i32) -> (i32, i32, i32, i32) {
    %c0_i32 = arith.constant 0 : i32
    %c0_i32_0 = arith.constant 0 : i32
    %c0_i32_1 = arith.constant 0 : i32
    %c0_i32_2 = arith.constant 0 : i32
    %c0_i32_3 = arith.constant 0 : i32
    return %c0_i32, %c0_i32_0, %c0_i32_1, %c0_i32_2 : i32, i32, i32, i32
  }
  func.func @transform_6(%arg0: i32) -> (i32, i32, i32, i32) {
    %c0_i32 = arith.constant 0 : i32
    %c0_i32_0 = arith.constant 0 : i32
    %c0_i32_1 = arith.constant 0 : i32
    %c0_i32_2 = arith.constant 0 : i32
    %c0_i32_3 = arith.constant 0 : i32
    return %c0_i32, %c0_i32_0, %c0_i32_1, %c0_i32_2 : i32, i32, i32, i32
  }
  func.func @transform_7(%arg0: i32) -> (i32, i32, i32, i32) {
    %c0_i32 = arith.constant 0 : i32
    %c0_i32_0 = arith.constant 0 : i32
    %c0_i32_1 = arith.constant 0 : i32
    %c0_i32_2 = arith.constant 0 : i32
    %c0_i32_3 = arith.constant 0 : i32
    return %c0_i32, %c0_i32_0, %c0_i32_1, %c0_i32_2 : i32, i32, i32, i32
  }
  func.func @transform_8(%arg0: i32) -> (i32, i32, i32, i32) {
    %c0_i32 = arith.constant 0 : i32
    %c0_i32_0 = arith.constant 0 : i32
    %c0_i32_1 = arith.constant 0 : i32
    %c0_i32_2 = arith.constant 0 : i32
    %c0_i32_3 = arith.constant 0 : i32
    return %c0_i32, %c0_i32_0, %c0_i32_1, %c0_i32_2 : i32, i32, i32, i32
  }
  func.func @transform_9(%arg0: i32) -> (i32, i32, i32, i32) {
    %c0_i32 = arith.constant 0 : i32
    %c0_i32_0 = arith.constant 0 : i32
    %c0_i32_1 = arith.constant 0 : i32
    %c0_i32_2 = arith.constant 0 : i32
    %c0_i32_3 = arith.constant 0 : i32
    return %c0_i32, %c0_i32_0, %c0_i32_1, %c0_i32_2 : i32, i32, i32, i32
  }
  func.func @transform_10(%arg0: i32) -> (i32, i32, i32, i32) {
    %c0_i32 = arith.constant 0 : i32
    %c0_i32_0 = arith.constant 0 : i32
    %c0_i32_1 = arith.constant 0 : i32
    %c0_i32_2 = arith.constant 0 : i32
    %c0_i32_3 = arith.constant 0 : i32
    return %c0_i32, %c0_i32_0, %c0_i32_1, %c0_i32_2 : i32, i32, i32, i32
  }
  func.func @transform_11(%arg0: i32) -> (i32, i32, i32) {
    %c0_i32 = arith.constant 0 : i32
    %c0_i32_0 = arith.constant 0 : i32
    %c0_i32_1 = arith.constant 0 : i32
    %c0_i32_2 = arith.constant 0 : i32
    return %c0_i32, %c0_i32_0, %c0_i32_1 : i32, i32, i32
  }
  func.func @transform_12(%arg0: i32) -> (i32, i32, i32) {
    %c0_i32 = arith.constant 0 : i32
    %c0_i32_0 = arith.constant 0 : i32
    %c0_i32_1 = arith.constant 0 : i32
    %c0_i32_2 = arith.constant 0 : i32
    return %c0_i32, %c0_i32_0, %c0_i32_1 : i32, i32, i32
  }
  func.func @transform_13(%arg0: i32) -> (i32, i32, i32) {
    %c0_i32 = arith.constant 0 : i32
    %c0_i32_0 = arith.constant 0 : i32
    %c0_i32_1 = arith.constant 0 : i32
    %c0_i32_2 = arith.constant 0 : i32
    return %c0_i32, %c0_i32_0, %c0_i32_1 : i32, i32, i32
  }
  func.func @transform_14(%arg0: i32) -> (i32, i32, i32, i32) {
    %c0_i32 = arith.constant 0 : i32
    %c0_i32_0 = arith.constant 0 : i32
    %c0_i32_1 = arith.constant 0 : i32
    %c0_i32_2 = arith.constant 0 : i32
    %c0_i32_3 = arith.constant 0 : i32
    return %c0_i32, %c0_i32_0, %c0_i32_1, %c0_i32_2 : i32, i32, i32, i32
  }
  func.func @transform_15(%arg0: i32) -> (i32, i32, i32, i32) {
    %c0_i32 = arith.constant 0 : i32
    %c0_i32_0 = arith.constant 0 : i32
    %c0_i32_1 = arith.constant 0 : i32
    %c0_i32_2 = arith.constant 0 : i32
    %c0_i32_3 = arith.constant 0 : i32
    return %c0_i32, %c0_i32_0, %c0_i32_1, %c0_i32_2 : i32, i32, i32, i32
  }
  func.func @transform_16(%arg0: i32) -> (i32, i32, i32, i32) {
    %c0_i32 = arith.constant 0 : i32
    %c0_i32_0 = arith.constant 0 : i32
    %c0_i32_1 = arith.constant 0 : i32
    %c0_i32_2 = arith.constant 0 : i32
    %c0_i32_3 = arith.constant 0 : i32
    return %c0_i32, %c0_i32_0, %c0_i32_1, %c0_i32_2 : i32, i32, i32, i32
  }
  func.func @transform_17(%arg0: i32) -> (i32, i32, i32, i32) {
    %c0_i32 = arith.constant 0 : i32
    %c0_i32_0 = arith.constant 0 : i32
    %c0_i32_1 = arith.constant 0 : i32
    %c0_i32_2 = arith.constant 0 : i32
    %c0_i32_3 = arith.constant 0 : i32
    return %c0_i32, %c0_i32_0, %c0_i32_1, %c0_i32_2 : i32, i32, i32, i32
  }
  func.func @transform_18(%arg0: i32) -> (i32, i32, i32, i32) {
    %c0_i32 = arith.constant 0 : i32
    %c0_i32_0 = arith.constant 0 : i32
    %c0_i32_1 = arith.constant 0 : i32
    %c0_i32_2 = arith.constant 0 : i32
    %c0_i32_3 = arith.constant 0 : i32
    return %c0_i32, %c0_i32_0, %c0_i32_1, %c0_i32_2 : i32, i32, i32, i32
  }
  func.func @transform_19(%arg0: i32) -> (i32, i32, i32, i32) {
    %c0_i32 = arith.constant 0 : i32
    %c0_i32_0 = arith.constant 0 : i32
    %c0_i32_1 = arith.constant 0 : i32
    %c0_i32_2 = arith.constant 0 : i32
    %c0_i32_3 = arith.constant 0 : i32
    return %c0_i32, %c0_i32_0, %c0_i32_1, %c0_i32_2 : i32, i32, i32, i32
  }
  func.func @transform_20(%arg0: i32) -> (i32, i32, i32, i32) {
    %c0_i32 = arith.constant 0 : i32
    %c0_i32_0 = arith.constant 0 : i32
    %c0_i32_1 = arith.constant 0 : i32
    %c0_i32_2 = arith.constant 0 : i32
    %c0_i32_3 = arith.constant 0 : i32
    return %c0_i32, %c0_i32_0, %c0_i32_1, %c0_i32_2 : i32, i32, i32, i32
  }
  func.func @transform_21(%arg0: i32) -> (i32, i32, i32) {
    %c0_i32 = arith.constant 0 : i32
    %c0_i32_0 = arith.constant 0 : i32
    %c0_i32_1 = arith.constant 0 : i32
    %c0_i32_2 = arith.constant 0 : i32
    return %c0_i32, %c0_i32_0, %c0_i32_1 : i32, i32, i32
  }
  func.func @transform_22(%arg0: i32) -> (i32, i32, i32) {
    %c0_i32 = arith.constant 0 : i32
    %c0_i32_0 = arith.constant 0 : i32
    %c0_i32_1 = arith.constant 0 : i32
    %c0_i32_2 = arith.constant 0 : i32
    return %c0_i32, %c0_i32_0, %c0_i32_1 : i32, i32, i32
  }
  func.func @transform_23(%arg0: i32) -> (i32, i32, i32) {
    %c0_i32 = arith.constant 0 : i32
    %c0_i32_0 = arith.constant 0 : i32
    %c0_i32_1 = arith.constant 0 : i32
    %c0_i32_2 = arith.constant 0 : i32
    return %c0_i32, %c0_i32_0, %c0_i32_1 : i32, i32, i32
  }
  func.func @transform_24(%arg0: i32) -> (i32, i32, i32) {
    %c0_i32 = arith.constant 0 : i32
    %c0_i32_0 = arith.constant 0 : i32
    %c0_i32_1 = arith.constant 0 : i32
    %c0_i32_2 = arith.constant 0 : i32
    return %c0_i32, %c0_i32_0, %c0_i32_1 : i32, i32, i32
  }
  func.func @transform_25(%arg0: i32) -> (i32, i32, i32) {
    %c0_i32 = arith.constant 0 : i32
    %c0_i32_0 = arith.constant 0 : i32
    %c0_i32_1 = arith.constant 0 : i32
    %c0_i32_2 = arith.constant 0 : i32
    return %c0_i32, %c0_i32_0, %c0_i32_1 : i32, i32, i32
  }
  func.func @transform_26(%arg0: i32) -> (i32, i32, i32) {
    %c0_i32 = arith.constant 0 : i32
    %c0_i32_0 = arith.constant 0 : i32
    %c0_i32_1 = arith.constant 0 : i32
    %c0_i32_2 = arith.constant 0 : i32
    return %c0_i32, %c0_i32_0, %c0_i32_1 : i32, i32, i32
  }
  func.func @transform_27(%arg0: i32) -> (i32, i32, i32) {
    %c0_i32 = arith.constant 0 : i32
    %c0_i32_0 = arith.constant 0 : i32
    %c0_i32_1 = arith.constant 0 : i32
    %c0_i32_2 = arith.constant 0 : i32
    return %c0_i32, %c0_i32_0, %c0_i32_1 : i32, i32, i32
  }
  func.func @transform_28(%arg0: i32) -> (i32, i32, i32) {
    %c0_i32 = arith.constant 0 : i32
    %c0_i32_0 = arith.constant 0 : i32
    %c0_i32_1 = arith.constant 0 : i32
    %c0_i32_2 = arith.constant 0 : i32
    return %c0_i32, %c0_i32_0, %c0_i32_1 : i32, i32, i32
  }
  func.func @transform_29(%arg0: i32) -> (i32, i32, i32) {
    %c0_i32 = arith.constant 0 : i32
    %c0_i32_0 = arith.constant 0 : i32
    %c0_i32_1 = arith.constant 0 : i32
    %c0_i32_2 = arith.constant 0 : i32
    return %c0_i32, %c0_i32_0, %c0_i32_1 : i32, i32, i32
  }
  func.func @transform_30(%arg0: i32) -> (i32, i32, i32) {
    %c0_i32 = arith.constant 0 : i32
    %c0_i32_0 = arith.constant 0 : i32
    %c0_i32_1 = arith.constant 0 : i32
    %c0_i32_2 = arith.constant 0 : i32
    return %c0_i32, %c0_i32_0, %c0_i32_1 : i32, i32, i32
  }
  func.func @transform_31(%arg0: i32) -> (i32, i32, i32) {
    %c0_i32 = arith.constant 0 : i32
    %c0_i32_0 = arith.constant 0 : i32
    %c0_i32_1 = arith.constant 0 : i32
    %c0_i32_2 = arith.constant 0 : i32
    return %c0_i32, %c0_i32_0, %c0_i32_1 : i32, i32, i32
  }
  func.func @transform_32(%arg0: i32) -> (i32, i32, i32) {
    %c0_i32 = arith.constant 0 : i32
    %c0_i32_0 = arith.constant 0 : i32
    %c0_i32_1 = arith.constant 0 : i32
    return %arg0, %c0_i32, %c0_i32_0 : i32, i32, i32
  }
  func.func @transform_33(%arg0: i32) -> (i32, i32, i32, i32) {
    %c0_i32 = arith.constant 0 : i32
    %c0_i32_0 = arith.constant 0 : i32
    %c0_i32_1 = arith.constant 0 : i32
    %c0_i32_2 = arith.constant 0 : i32
    return %c0_i32, %arg0, %c0_i32_0, %c0_i32_1 : i32, i32, i32, i32
  }
  func.func @transform_34(%arg0: i32) -> (i32, i32, i32, i32) {
    %c0_i32 = arith.constant 0 : i32
    %c0_i32_0 = arith.constant 0 : i32
    %c0_i32_1 = arith.constant 0 : i32
    %c0_i32_2 = arith.constant 0 : i32
    return %c0_i32, %arg0, %c0_i32_0, %c0_i32_1 : i32, i32, i32, i32
  }
}

</mosaic_0001>

<bundles_post_ra>
// kernel: forward.1
= control target key start
LH: loop header
LB: loop body
LE: loop exit
PB: predicated region body
PF: predicated region fallthrough
CT: control target
= control target key end

     0   :  { %s5750_s6 = smov 1   ;;  %s5751_s10 = smov 2   ;;  %s6788_s0 = inlined_call_operand.smem [shape: u32[35], index: -1, kind: input, shape index: {}] }
   0x1   :  { %s5796_s5 = sld [smem:[%s6788_s0]]   ;;  %s5752_s14 = smov 3  }
   0x2   :  { %s5801_s9 = sld [smem:[%s6788_s0 + %s5750_s6]]   ;;  %s5753_s18 = smov 4  }
   0x3   :  { %s5806_s13 = sld [smem:[%s6788_s0 + %s5751_s10]]   ;;  %s5754_s22 = smov 5  }
   0x4   :  { %s5811_s17 = sld [smem:[%s6788_s0 + %s5752_s14]]   ;;  %s5755_s26 = smov 6  }
   0x5   :  { %s5816_s21 = sld [smem:[%s6788_s0 + %s5753_s18]]   ;;  %s5756_s30 = smov 7  }
   0x6   :  { %s5821_s25 = sld [smem:[%s6788_s0 + %s5754_s22]]   ;;  %s5757_s4 = smov 8  }
   0x7   :  { %6826 = sst [smem:[#allocation7_spill]] %s5796_s5  ;;  %s5758_s10 = smov 9  }
   0x8   :  { %6827 = sst [smem:[#allocation8_spill]] %s5801_s9  ;;  %s5759_s15 = smov 10  }
   0x9   :  { %6828 = sst [smem:[#allocation9_spill]] %s5806_s13  ;;  %s5760_s20 = smov 11  }
   0xa   :  { %6829 = sst [smem:[#allocation10_spill]] %s5811_s17  ;;  %s5762_s1 = smov 13  }
   0xb   :  { %s5826_s29 = sld [smem:[%s6788_s0 + %s5755_s26]]   ;;  %s5761_s26 = smov 12  }
   0xc   :  { %s5831_s3 = sld [smem:[%s6788_s0 + %s5756_s30]]   ;;  %s5763_s7 = smov 14  }
   0xd   :  { %s5836_s8 = sld [smem:[%s6788_s0 + %s5757_s4]]   ;;  %s5765_s22 = smov 16  }
   0xe   :  { %s5841_s14 = sld [smem:[%s6788_s0 + %s5758_s10]]   ;;  %s5766_s28 = smov 17  }
   0xf   :  { %s5846_s19 = sld [smem:[%s6788_s0 + %s5759_s15]]   ;;  %s5764_s15 = smov 15  }
  0x10   :  { %s5851_s24 = sld [smem:[%s6788_s0 + %s5760_s20]]  }
  0x11   :  { %s5856_s30 = sld [smem:[%s6788_s0 + %s5761_s26]]  }
  0x12   :  { %6830 = sst [smem:[#allocation11_spill]] %s5831_s3 }
  0x13   :  { %6831 = sst [smem:[#allocation12_spill]] %s5836_s8 }
  0x14   :  { %s5861_s6 = sld [smem:[%s6788_s0 + %s5762_s1]]  }
  0x15   :  { %s5866_s12 = sld [smem:[%s6788_s0 + %s5763_s7]]   ;;  %s5767_s7 = smov 18  }
  0x16   :  { %s5871_s20 = sld [smem:[%s6788_s0 + %s5764_s15]]   ;;  %s5768_s15 = smov 19  }
  0x17   :  { %s5876_s27 = sld [smem:[%s6788_s0 + %s5765_s22]]   ;;  %s5769_s22 = smov 20  }
  0x18   :  { %s5881_s4 = sld [smem:[%s6788_s0 + %s5766_s28]]   ;;  %s5770_s28 = smov 21  }
  0x19   :  { %s5886_s17 = sld [smem:[%s6788_s0 + %s5767_s7]]   ;;  %s5771_s7 = smov 22  }
  0x1a   :  { %6832 = sst [smem:[#allocation13_spill]] %s5861_s6 }
  0x1b   :  { %6833 = sst [smem:[#allocation14_spill]] %s5866_s12 }
  0x1c   :  { %6834 = sst [smem:[#allocation15_spill]] %s5871_s20 }
  0x1d   :  { %s5891_s20 = sld [smem:[%s6788_s0 + %s5768_s15]]   ;;  %s5772_s15 = smov 23  }
  0x1e   :  { %6835 = sst [smem:[#allocation16_spill]] %s5881_s4 }
  0x1f   :  { %6836 = sst [smem:[#allocation17_spill]] %s5886_s17 }
  0x20   :  { %s5896_s12 = sld [smem:[%s6788_s0 + %s5769_s22]]   ;;  %s5773_s22 = smov 24  }
  0x21   :  { %s5901_s4 = sld [smem:[%s6788_s0 + %s5770_s28]]   ;;  %s5774_s28 = smov 25  }
  0x22   :  { %s5906_s17 = sld [smem:[%s6788_s0 + %s5771_s7]]   ;;  %s5775_s7 = smov 26  }
  0x23   :  { %6837 = sst [smem:[#allocation18_spill]] %s5891_s20 }
  0x24   :  { %s5911_s20 = sld [smem:[%s6788_s0 + %s5772_s15]]   ;;  %s5776_s15 = smov 27  }
  0x26   :  { %6838 = sst [smem:[#allocation19_spill]] %s5896_s12 }
  0x27   :  { %6839 = sst [smem:[#allocation20_spill]] %s5901_s4 }
  0x28   :  { %6840 = sst [smem:[#allocation21_spill]] %s5906_s17 }
  0x29   :  { %s5916_s12 = sld [smem:[%s6788_s0 + %s5773_s22]]   ;;  %s5777_s22 = smov 28  }
  0x2a   :  { %6841 = sst [smem:[#allocation22_spill]] %s5911_s20 }
  0x2b   :  { %s5921_s4 = sld [smem:[%s6788_s0 + %s5774_s28]]   ;;  %s5778_s28 = smov 29  }
  0x2c   :  { %s5926_s17 = sld [smem:[%s6788_s0 + %s5775_s7]]   ;;  %s5779_s7 = smov 30  }
  0x2d   :  { %s5931_s20 = sld [smem:[%s6788_s0 + %s5776_s15]]   ;;  %s5780_s15 = smov 31  }
  0x2f   :  { %6842 = sst [smem:[#allocation23_spill]] %s5916_s12 }
  0x30   :  { %s5936_s12 = sld [smem:[%s6788_s0 + %s5777_s22]]   ;;  %s5781_s22 = smov 32  }
  0x31   :  { %6843 = sst [smem:[#allocation24_spill]] %s5921_s4 }
  0x32   :  { %6844 = sst [smem:[#allocation25_spill]] %s5926_s17 }
  0x33   :  { %6845 = sst [smem:[#allocation26_spill]] %s5931_s20 }
  0x34   :  { %s5941_s4 = sld [smem:[%s6788_s0 + %s5778_s28]]   ;;  %s5782_s28 = smov 33  }
  0x35   :  { %s5946_s17 = sld [smem:[%s6788_s0 + %s5779_s7]]   ;;  %s5783_s7 = smov 34  }
  0x36   :  { %6846 = sst [smem:[#allocation27_spill]] %s5936_s12 }
  0x37   :  { %s5951_s20 = sld [smem:[%s6788_s0 + %s5780_s15]]  }
  0x38   :  { %s5956_s12 = sld [smem:[%s6788_s0 + %s5781_s22]]  }
  0x3a   :  { %6847 = sst [smem:[#allocation28_spill]] %s5941_s4 }
  0x3b   :  { %6848 = sst [smem:[#allocation29_spill]] %s5946_s17 }
  0x3c   :  { %s5961_s4 = sld [smem:[%s6788_s0 + %s5782_s28]]  }
  0x3d   :  { %s5966_s17 = sld [smem:[%s6788_s0 + %s5783_s7]]  }
  0x3e   :  { %6849 = sst [smem:[#allocation30_spill]] %s5956_s12 }
  0x42   :  { %6850 = sst [smem:[#allocation31_spill]] %s5961_s4 }
  0x43   :  { %6851 = sst [smem:[#allocation32_spill]] %s5966_s17 }
  0x44   :  { %75 = vsyncpa [#allocation3], 0 }
  0x45   :  { %77 = vsyncpa [#allocation3 + $0x1], 0  ;;  %s5968_s15 = smov 0   ;;  %s5970_s16 = smov 0  }
  0x46   :  { %s5972_s18 = smov 0   ;;  %s5974_s22 = smov 0  }
  0x47 LB: > { %s6852_s8 = sld [smem:[#allocation12_spill]]  ;;  %s5989_s0 = sadd.s32 4294967295, %s5748_s22   ;;  %s5744_s18 = sphi %s5972_s18, %s6907_s18   ;;  %s5740_s16 = sphi %s5970_s16, %s6909_s16   ;;  %s5736_s15 = sphi %s5968_s15, %s6908_s15   ;;  %s5748_s22 = sphi %s5974_s22, %s6905_s22  }
  0x48   : > { %s6853_s6 = sld [smem:[#allocation13_spill]]  ;;  %s5047_s23 = sadd.s32 4294967294, %s5748_s22  }
  0x49   : > { %s6854_s3 = sld [smem:[#allocation11_spill]]  ;;  %s5993_s26 = sadd.s32 1, %s5748_s22  }
  0x4a   : > { %6855 = sst [smem:[#allocation33_spill]] %s5736_s15  ;;  %s782_s28 = sadd.s32 1, %s5744_s18 }
  0x4b   : > { %6856 = sst [smem:[#allocation34_spill]] %s5744_s18  ;;  %s779_s1 = ssub.s32 %s5748_s22, %s5993_s26 }
  0x4c   : > { %6857 = sst [smem:[#allocation35_spill]] %s5748_s22  ;;  %p792_p0 = scmp.ne.s32.totalorder %s5744_s18, %s5740_s16 }
  0x4d   : > { %6858 = sst [smem:[#allocation36_spill]] %s5989_s0  ;;  %p780_p1 = scmp.eq.s32.totalorder %s779_s1, 0 }
  0x4e   : > { %6859 = sst [smem:[#allocation37_spill]] %s5993_s26  ;;  %p793_p2 = scmp.eq.s32.totalorder %s5989_s0, 1 }
  0x4f   : > { %p798_p3 = scmp.ne.s32.totalorder %s5740_s16, %s5736_s15  ;;  %p799_p4 = scmp.eq.s32.totalorder %s5047_s23, 1 }
  0x50   : > { %s6004_s2 = scalar_select %p780_p1, %s5744_s18, %s782_s28  }
  0x51   : > { %p6006_p5 = por %p793_p2, %p792_p0  ;;  %p6010_p6 = por %p799_p4, %p798_p3 }
  0x52   : > { %6860 = sst [smem:[#allocation38_spill]] %s6004_s2  ;;  %p5050_p7 = scmp.ge.s32.totalorder %s5748_s22, 1 }
  0x53   : > { %s6861_s7 = scalar_select %p6006_p5, 1, 0 }
  0x54   : > { %s6863_s10 = scalar_select %p6010_p6, 1, 0 }
  0x55   : > { %6862 = sst [smem:[#allocation39_spill]] %s6861_s7  ;;  %p981_p8 = scmp.lt.s32.totalorder %s5748_s22, 3 }
  0x56   : > { %6864 = sst [smem:[#allocation40_spill]] %s6863_s10 }
  0x57   : > { %p982_p9 = pnand %p5050_p7, %p981_p8 }
  0x58   : > { %s6865_s5 = sld [smem:[#allocation7_spill]] (!%p982_p9)  ;;  %p1086_p10 = scmp.lt.s32.totalorder (!%p982_p9), %s5989_s0, 1 }
  0x59   : > { %985 = sbr.rel (%p982_p9) target bundleno = 12955 (0x329b), region = 148  ;;  %s6866_s13 = sld [smem:[#allocation9_spill]] (!%p982_p9) }
  0x5a   : > { %s6867_s9 = sld [smem:[#allocation8_spill]] (!%p982_p9) }
  0x5b   : > { %s6872_s2 = sld [smem:[#allocation10_spill]] (!%p982_p9) }
  0x5c   : > { %s6873_s18 = sld [smem:[#allocation17_spill]] (!%p982_p9) }
  0x5d   : > { %s6880_s15 = sld [smem:[#allocation21_spill]] (!%p982_p9) }
  0x5e   : > { %v1141_v0 = vld [vmem:[%s5826_s29 + $0x18] sm:$0xff]  ;;  %v1140_v1 = vld [vmem:[%s5826_s29 + $0x10] sm:$0xff]  ;;  %v1139_v4 = vld [vmem:[%s5826_s29 + $0x8] sm:$0xff]  ;;  %s1087_s11 = scalar_select %p1086_p10, %s5989_s0, 1  ;;  %vm1114_vm0 = vcmask 261120   ;;  %vm1194_vm1 = vcmask 64512  }
  0x5f   : > { %v1109_v2 = vld [vmem:[%s5816_s21 + $0x18] sm:$0xff]  ;;  %1158 = vmatpush.msra.mxu1 %v1141_v0  ;;  %v1108_v3 = vld [vmem:[%s5816_s21 + $0x10] sm:$0xff]  ;;  %v1107_v5 = vld [vmem:[%s5816_s21 + $0x8] sm:$0xff]  ;;  %s6883_s22 = sld [smem:[#allocation23_spill]] }
  0x60   : > { %1130 = vmatpush.msra.mxu0 %v1109_v2  ;;  %v1138_v6 = vld [vmem:[%s5826_s29] sm:$0xff]  ;;  %s6025_s23 = sshll.u32 %s1087_s11, 3  ;;  %v1169_v19 = vld [vmem:[%s6852_s8 + $0x18] sm:$0xff]  ;;  %v1168_v20 = vld [vmem:[%s6852_s8 + $0x10] sm:$0xff]  ;;  %s6868_s11 = sld [smem:[#allocation14_spill]] }
  0x61   : > { %1159 = vmatpush.msra.mxu1 %v1140_v1  ;;  %v1106_v7 = vld [vmem:[%s5816_s21] sm:$0xff]  ;;  %s1089_s28 = scalar_lea.vmem %s6865_s5, %s6025_s23  ;;  %s6042_s1 = scalar_lea.vmem %s6866_s13, %s6025_s23  ;;  %1186 = vmatpush.msra.mxu2 %v1169_v19  ;;  %v1167_v21 = vld [vmem:[%s6852_s8 + $0x8] sm:$0xff]  ;;  %v5073_v23 = vld [vmem:[%s5826_s29 + $0x38] sm:$0xff] }
  0x62   : > { %1131 = vmatpush.msra.mxu0 %v1108_v3  ;;  %v6030_v8 = vld [vmem:[%s1089_s28] sm:$0xff]  ;;  %v5072_v24 = vld [vmem:[%s5826_s29 + $0x30] sm:$0xff]  ;;  %v5067_v25 = vld [vmem:[%s5816_s21 + $0x38] sm:$0xff]  ;;  %s6179_s28 = scalar_lea.vmem %s6867_s9, %s6025_s23  ;;  %s6869_s5 = sld [smem:[#allocation29_spill]] }
  0x63   : > { %1160 = vmatpush.msra.mxu1 %v1139_v4  ;;  %v5513_v9 = vld [vmem:[%s6854_s3] ss:$0 sm:$0xff]  ;;  %1187 = vmatpush.msra.mxu2 %v1168_v20  ;;  %v5066_v26 = vld [vmem:[%s5816_s21 + $0x30] sm:$0xff]  ;;  %v5071_v27 = vld [vmem:[%s5826_s29 + $0x28] sm:$0xff]  ;;  %s6870_s9 = sld [smem:[#allocation16_spill]]  ;;  %s6874_s26 = smov %s6873_s18 }
  0x64   : > { %1132 = vmatpush.msra.mxu0 %v1107_v5  ;;  %v5514_v10 = vld [vmem:[%s5821_s25] ss:$0 sm:$0xff]  ;;  %v5065_v28 = vld [vmem:[%s5816_s21 + $0x28] sm:$0xff]  ;;  %v5516_v39 = vld [vmem:[%s6854_s3 + $0x1] ss:$0 sm:$0xff]  ;;  %s6871_s13 = sld [smem:[#allocation15_spill]]  ;;  %s6212_s10 = scalar_lea.vmem %s6872_s2, %s6025_s23 }
  0x65   : > { %1161 = vmatpush.msra.mxu1 %v1138_v6  ;;  %v6045_v15 = vld [vmem:[%s6042_s1] sm:$0xff]  ;;  %1188 = vmatpush.msra.mxu2 %v1167_v21  ;;  %v5079_v42 = vld [vmem:[%s6852_s8 + $0x38] sm:$0xff]  ;;  %v5078_v43 = vld [vmem:[%s6852_s8 + $0x30] sm:$0xff]  ;;  %s6875_s2 = sld [smem:[#allocation18_spill]]  ;;  %s6881_s4 = smov %s6880_s15 }
  0x66   : > { %1133 = vmatpush.msra.mxu0 %v1106_v7  ;;  %5059 = vmatmul.msk.f32.vlgmr.msra.gmra.mxu1 %vm1114_vm0, %v6030_v8  ;;  %v1166_v22 = vld [vmem:[%s6852_s8] sm:$0xff]  ;;  %v5077_v44 = vld [vmem:[%s6852_s8 + $0x28] sm:$0xff]  ;;  %s6884_s12 = smov %s6883_s22  ;;  %s6885_s0 = sld [smem:[#allocation25_spill]] }
  0x67   : > { %5058 = vmatmul.msk.f32.vlgmr.msra.gmra.mxu0 %vm1114_vm0, %v6030_v8  ;;  %1189 = vmatpush.msra.mxu2 %v1166_v22  ;;  %v5070_v29 = vld [vmem:[%s5826_s29 + $0x20] sm:$0xff] }
  0x68   : > { %5060 = vmatmul.msk.f32.vlgmr.msra.gmra.mxu2 %vm1114_vm0, %v6030_v8  ;;  %1321 = vmatpush.msrb.mxu1 %v5073_v23  ;;  %v5064_v30 = vld [vmem:[%s5816_s21 + $0x20] sm:$0xff] }
  0x69   : > { %v5515_v36 = vld [vmem:[%s5841_s14] ss:$0 sm:$0xff]  ;;  %1351 = vmatpush.msrb.mxu2 %v5079_v42  ;;  %v5517_v58 = vld [vmem:[%s5821_s25 + $0x1] ss:$0 sm:$0xff] }
  0x6a   : > { %1322 = vmatpush.msrb.mxu1 %v5072_v24  ;;  %v5076_v46 = vld [vmem:[%s6852_s8 + $0x20] sm:$0xff] }
  0x6b   : > { %1352 = vmatpush.msrb.mxu2 %v5078_v43  ;;  %v1268_v61 = vld [vmem:[%s5846_s19] sm:$0xff] }
  0x6c   : > { %1323 = vmatpush.msrb.mxu1 %v5071_v27  ;;  %v5518_v62 = vld [vmem:[%s5841_s14 + $0x1] ss:$0 sm:$0xff] }
  0x6d   : > { %1353 = vmatpush.msrb.mxu2 %v5077_v44  ;;  %v5094_v19 = vld [vmem:[%s5826_s29 + $0x40] sm:$0xff]  ;;  %v5103_v44 = vld [vmem:[%s6852_s8 + $0x58] sm:$0xff] }
  0x6e   : > { %1324 = vmatpush.msrb.mxu1 %v5070_v29 }
  0x6f   : > { %5075 = vmatmul.msk.f32.vlgmr.msrb.gmra.mxu1 %vm1114_vm0, %v6030_v8  ;;  %1354 = vmatpush.msrb.mxu2 %v5076_v46  ;;  %v5101_v46 = vld [vmem:[%s6852_s8 + $0x48] sm:$0xff] }
  0x70   : > { %5081 = vmatmul.msk.f32.vlgmr.msrb.gmra.mxu2 %vm1114_vm0, %v6030_v8 }
  0x71   : > { %1475 = vmatpush.msra.mxu2 %v1268_v61  ;;  %v5117_v61 = vld [vmem:[%s5826_s29 + $0x60] sm:$0xff] }
  0xe3   : > { %v1163_v11 = vpop.f32.mrf.mxu1 }
  0xe4   : > { %v1135_v12 = vpop.f32.mrf.mxu0  ;;  %v1164_v13 = vadd.f32 %v5513_v9, %v1163_v11  ;;  %v5091_v11 = vld [vmem:[%s5816_s21 + $0x58] sm:$0xff] }
  0xe5   : > { %v1136_v14 = vadd.f32 %v5514_v10, %v1135_v12  ;;  %v5090_v12 = vld [vmem:[%s5816_s21 + $0x50] sm:$0xff] }
  0xe6   : > { %5061 = vmatpush.xpose.msk.msrb.mxu0 %vm1194_vm1, %v1164_v13  ;;  %v5097_v13 = vld [vmem:[%s5826_s29 + $0x58] sm:$0xff] }
  0xe9   : > { %5062 = vmatmul.msk.f32.vlgmr.msrb.gmra.mxu0 %vm1194_vm1, %v1136_v14  ;;  %v5089_v14 = vld [vmem:[%s5816_s21 + $0x48] sm:$0xff] }
  0xea   : > { %1291 = vmatpush.msra.mxu0 %v5067_v25 }
  0xeb   : > { %v1191_v37 = vpop.f32.mrf.mxu2 }
  0xec   : > { %1292 = vmatpush.msra.mxu0 %v5066_v26  ;;  %v1192_v38 = vadd.f32 %v5515_v36, %v1191_v37  ;;  %v1326_v40 = vpop.f32.mrf.mxu1 }
  0xed   : > { %v1327_v41 = vadd.f32 %v5516_v39, %v1326_v40 }
  0xee   : > { %1293 = vmatpush.msra.mxu0 %v5065_v28  ;;  %1263 = vmatpush.msra.mxu3 %v1192_v38 }
  0xf0   : > { %1294 = vmatpush.msra.mxu0 %v5064_v30  ;;  %5082 = vmatpush.xpose.msk.msrb.mxu3 %vm1194_vm1, %v1327_v41 }
  0xf1   : > { %5069 = vmatmul.msk.f32.vlgmr.msra.gmra.mxu0 %vm1114_vm0, %v6030_v8 }
  0xf3   : > { %v1356_v63 = vpop.f32.mrf.mxu2 }
  0xf4   : > { %v1357_v0 = vadd.f32 %v5518_v62, %v1356_v63  ;;  %v5114_v62 = vld [vmem:[%s5816_s21 + $0x78] sm:$0xff]  ;;  %v5113_v63 = vld [vmem:[%s5816_s21 + $0x70] sm:$0xff] }
  0xf6   : > { %1427 = vmatpush.msrb.mxu0 %v1357_v0  ;;  %v5109_v0 = vld [vmem:[%s5846_s19 + $0x10] sm:$0xff] }
  0xf8   : > { %1532 = vmatpush.msra.mxu0 %v5097_v13 }
 0x166   : > { %v1218_v16 = vpop.f32.mrf.mxu0 }
 0x167   : > { %v1219_v17 = vadd.f32 %v1218_v16, %v6045_v15  ;;  %v5096_v16 = vld [vmem:[%s5826_s29 + $0x50] sm:$0xff] }
 0x168   : > { %1533 = vmatpush.msra.mxu0 %v5096_v16 }
 0x169   : > { %v1221_v18 = vsel %vm1194_vm1, %v1219_v17, -inf }
 0x16a   : > { %1222 = vmax.xlane.f32.xlu0 %v1221_v18  ;;  %v5095_v18 = vld [vmem:[%s5826_s29 + $0x48] sm:$0xff] }
 0x16b   : > { %1534 = vmatpush.msra.mxu0 %v5095_v18 }
 0x16d   : > { %1535 = vmatpush.msra.mxu0 %v5094_v19 }
 0x16e   : > { %v1296_v59 = vpop.f32.mrf.mxu0 }
 0x16f   : > { %v1297_v60 = vadd.f32 %v5517_v58, %v1296_v59  ;;  %v5119_v59 = vld [vmem:[%s5826_s29 + $0x70] sm:$0xff] }
 0x1dd   : > { %v1223_v31 = vpop.xlane.xlu0 %1222 }
 0x1de   : > { %v1224_v32 = vsub.f32 %v1219_v17, %v1223_v31  ;;  %v5088_v17 = vld [vmem:[%s5816_s21 + $0x40] sm:$0xff] }
 0x1e0   : > { %v1225_v33 = vmul.f32 1.442695, %v1224_v32  ;;  %v5085_v32 = vld [vmem:[%s5846_s19 + $0x8] sm:$0xff] }
 0x1e1   : > { %1452 = vmatpush.msra.mxu1 %v5085_v32  ;;  %v5125_v32 = vld [vmem:[%s6852_s8 + $0x70] sm:$0xff] }
 0x1e2   : > { %5593 = vpow2.f32 %v1225_v33 }
 0x1e3   : > { %1562 = vmatpush.msrb.mxu1 %v5103_v44 }
 0x1e8   : > { %v5594_v34 = vpop.eup %5593 }
 0x1e9   : > { %v1227_v35 = vsel %vm1194_vm1, %v5594_v34, 0.0 }
 0x1ea   : > { %1228 = vadd.xlane.f32.xlu0 %v1227_v35  ;;  %v5520_v35 = vld [vmem:[%s5821_s25 + $0x2] ss:$0 sm:$0xff] }
 0x25d   : > { %v1229_v45 = vpop.xlane.xlu0 %1228 }
 0x25e   : > { %5595 = vrcp.f32 %v1229_v45  ;;  %v1241_v50 = vand.u32 2147483648, %v1229_v45  ;;  %v1239_v52 = vand.u32 2147483647, %v1229_v45  ;;  %vm1235_vm3 = vweird.f32 %v1229_v45 }
 0x260   : > { %v1242_v54 = vor.u32 1.1754944e-38, %v1241_v50  ;;  %vm1240_vm5 = vcmp.eq.f32.partialorder %v1239_v52, 8.507059e+37 }
 0x264   : > { %v5596_v47 = vpop.eup %5595 }
 0x265   : > { %v1231_v48 = vmul.f32 %v5596_v47, %v1229_v45  ;;  %vm1236_vm2 = vweird.f32 %v5596_v47  ;;  %v5102_v45 = vld [vmem:[%s6852_s8 + $0x50] sm:$0xff] }
 0x266   : > { %vm1237_vm4 = vmor %vm1235_vm3, %vm1236_vm2  ;;  %1563 = vmatpush.msrb.mxu1 %v5102_v45 }
 0x267   : > { %v1232_v49 = vsub.f32 1.0, %v1231_v48 }
 0x268   : > { %1564 = vmatpush.msrb.mxu1 %v5101_v46 }
 0x269   : > { %v1233_v51 = vmul.f32 %v5596_v47, %v1232_v49 }
 0x26b   : > { %v1234_v53 = vadd.f32 %v5596_v47, %v1233_v51 }
 0x26d   : > { %v1238_v55 = vsel %vm1237_vm4, %v5596_v47, %v1234_v53  ;;  %v5100_v47 = vld [vmem:[%s6852_s8 + $0x40] sm:$0xff] }
 0x26e   : > { %v1243_v56 = vsel %vm1240_vm5, %v1242_v54, %v1238_v55  ;;  %1565 = vmatpush.msrb.mxu1 %v5100_v47  ;;  %v5521_v54 = vld [vmem:[%s5841_s14 + $0x2] ss:$0 sm:$0xff]  ;;  %v5120_v55 = vld [vmem:[%s5826_s29 + $0x78] sm:$0xff] }
 0x26f   : > { %v6077_v57 = vmul.f32 %v5594_v34, %v1243_v56  ;;  %v5519_v34 = vld [vmem:[%s6854_s3 + $0x2] ss:$0 sm:$0xff] }
 0x271   : > { %5063 = vmatmul.msk.f32.vlgmr.msra.gmra.mxu3 %vm1194_vm1, %v6077_v57 }
 0x272   : > { %1502 = vmatpush.msra.mxu3 %v5091_v11 }
 0x274   : > { %1503 = vmatpush.msra.mxu3 %v5090_v12 }
 0x276   : > { %1504 = vmatpush.msra.mxu3 %v5089_v14 }
 0x278   : > { %1505 = vmatpush.msra.mxu3 %v5088_v17  ;;  %v5522_v17 = vld [vmem:[%s6854_s3 + $0x3] ss:$0 sm:$0xff] }
 0x279   : > { %5083 = vmatmul.msk.f32.vlgmr.msrb.gmra.mxu3 %vm1194_vm1, %v1297_v60  ;;  %v5118_v60 = vld [vmem:[%s5826_s29 + $0x68] sm:$0xff] }
 0x281   : > { %5093 = vmatmul.msk.f32.vlgmr.msra.gmra.mxu3 %vm1114_vm0, %v6030_v8 }
 0x2f4   : > { %v1265_v1 = vpop.f32.mrf.mxu3 }
 0x2f5   : > { %5087 = vmatmul.msk.f32.vlgmr.msra.gmra.mxu2 %vm1194_vm1, %v1265_v1  ;;  %v5112_v1 = vld [vmem:[%s5816_s21 + $0x68] sm:$0xff] }
 0x2fc   : > { %v1382_v2 = vpop.f32.mrf.mxu3 }
 0x2fd   : > { %v1383_v3 = vadd.f32 %v1382_v2, %v6045_v15  ;;  %v5111_v2 = vld [vmem:[%s5816_s21 + $0x60] sm:$0xff] }
 0x2ff   : > { %v1385_v4 = vsel %vm1194_vm1, %v1383_v3, -inf }
 0x300   : > { %1386 = vmax.xlane.f32.xlu1 %v1385_v4 }
 0x304   : > { %v1507_v36 = vpop.f32.mrf.mxu3 }
 0x305   : > { %v1508_v39 = vadd.f32 %v5520_v35, %v1507_v36 }
 0x373   : > { %v1387_v5 = vpop.xlane.xlu1 %1386 }
 0x374   : > { %v1388_v6 = vsub.f32 %v1383_v3, %v1387_v5 }
 0x376   : > { %v1389_v7 = vmul.f32 1.442695, %v1388_v6 }
 0x378   : > { %5597 = vpow2.f32 %v1389_v7  ;;  %v6111_v40 = vpop.f32.mrf.mxu2 }
 0x37e   : > { %v5598_v9 = vpop.eup %5597 }
 0x37f   : > { %v1391_v10 = vsel %vm1194_vm1, %v5598_v9, 0.0 }
 0x380   : > { %1392 = vadd.xlane.f32.xlu1 %v1391_v10 }
 0x3f3   : > { %v1393_v20 = vpop.xlane.xlu1 %1392 }
 0x3f4   : > { %5599 = vrcp.f32 %v1393_v20  ;;  %v1405_v24 = vand.u32 2147483648, %v1393_v20  ;;  %v1403_v26 = vand.u32 2147483647, %v1393_v20  ;;  %vm1399_vm7 = vweird.f32 %v1393_v20 }
 0x3f6   : > { %v1406_v28 = vor.u32 1.1754944e-38, %v1405_v24  ;;  %vm1404_vm9 = vcmp.eq.f32.partialorder %v1403_v26, 8.507059e+37 }
 0x3fa   : > { %v5600_v21 = vpop.eup %5599 }
 0x3fb   : > { %v1395_v22 = vmul.f32 %v5600_v21, %v1393_v20  ;;  %vm1400_vm6 = vweird.f32 %v5600_v21 }
 0x3fc   : > { %vm1401_vm8 = vmor %vm1399_vm7, %vm1400_vm6 }
 0x3fd   : > { %v1396_v23 = vsub.f32 1.0, %v1395_v22 }
 0x3ff   : > { %v1397_v25 = vmul.f32 %v5600_v21, %v1396_v23 }
 0x401   : > { %v1398_v27 = vadd.f32 %v5600_v21, %v1397_v25 }
 0x403   : > { %v1402_v29 = vsel %vm1401_vm8, %v5600_v21, %v1398_v27  ;;  %v5523_v21 = vld [vmem:[%s5821_s25 + $0x3] ss:$0 sm:$0xff] }
 0x404   : > { %v1407_v30 = vsel %vm1404_vm9, %v1406_v28, %v1402_v29 }
 0x405   : > { %v6099_v31 = vmul.f32 %v5598_v9, %v1407_v30  ;;  %v5126_v30 = vld [vmem:[%s6852_s8 + $0x78] sm:$0xff] }
 0x407   : > { %5084 = vmatmul.msk.f32.vlgmr.msrb.gmra.mxu0 %vm1194_vm1, %v6099_v31 }
 0x408   : > { %1663 = vmatpush.msrb.mxu0 %v5109_v0 }
 0x40f   : > { %5099 = vmatmul.msk.f32.vlgmr.msra.gmra.mxu0 %vm1114_vm0, %v6030_v8 }
 0x484   : > { %v1429_v33 = vpop.f32.mrf.mxu0 }
 0x485   : > { %5086 = vmatmul.msk.f32.vlgmr.msra.gmra.mxu1 %vm1194_vm1, %v1429_v33  ;;  %v5124_v33 = vld [vmem:[%s6852_s8 + $0x68] sm:$0xff] }
 0x486   : > { %1691 = vmatpush.msra.mxu1 %v5114_v62 }
 0x488   : > { %1692 = vmatpush.msra.mxu1 %v5113_v63  ;;  %v5784_v63 = vmov 32.0  }
 0x48a   : > { %1693 = vmatpush.msra.mxu1 %v5112_v1 }
 0x48c   : > { %v1537_v37 = vpop.f32.mrf.mxu0  ;;  %1694 = vmatpush.msra.mxu1 %v5111_v2 }
 0x48d   : > { %v1538_v38 = vadd.f32 %v5519_v34, %v1537_v37  ;;  %5105 = vmatmul.msk.f32.vlgmr.msrb.gmra.mxu1 %vm1114_vm0, %v6030_v8  ;;  %v5123_v34 = vld [vmem:[%s6852_s8 + $0x60] sm:$0xff] }
 0x48f   : > { %5106 = vmatpush.xpose.msk.msrb.mxu2 %vm1194_vm1, %v1538_v38 }
 0x492   : > { %5107 = vmatmul.msk.f32.vlgmr.msrb.gmra.mxu2 %vm1194_vm1, %v1508_v39  ;;  %v5524_v39 = vld [vmem:[%s5841_s14 + $0x3] ss:$0 sm:$0xff] }
 0x493   : > { %1721 = vmatpush.msra.mxu2 %v5120_v55 }
 0x495   : > { %1722 = vmatpush.msra.mxu2 %v5119_v59  ;;  %5116 = vmatmul.msk.f32.vlgmr.msra.gmra.mxu1 %vm1114_vm0, %v6030_v8 }
 0x497   : > { %1723 = vmatpush.msra.mxu2 %v5118_v60 }
 0x499   : > { %1724 = vmatpush.msra.mxu2 %v5117_v61 }
 0x49a   : > { %5122 = vmatmul.msk.f32.vlgmr.msra.gmra.mxu2 %vm1114_vm0, %v6030_v8 }
 0x502   : > { %v1454_v53 = vpop.f32.mrf.mxu1 }
 0x503   : > { %v1478_v24 = vadd.f32 %v6111_v40, %v1454_v53 }
 0x50a   : > { %v1567_v56 = vpop.f32.mrf.mxu1 }
 0x50b   : > { %v1568_v58 = vadd.f32 %v5521_v54, %v1567_v56  ;;  %v5525_v56 = vld [vmem:[%s5851_s24] ss:$0 sm:$0xff] }
 0x50d   : > { %1638 = vmatpush.msrb.mxu3 %v1568_v58 }
 0x50f   : > { %1751 = vmatpush.msra.mxu3 %v5126_v30 }
 0x511   : > { %1752 = vmatpush.msra.mxu3 %v5125_v32 }
 0x512   : > { %v1696_v22 = vpop.f32.mrf.mxu1 }
 0x513   : > { %v1697_v23 = vadd.f32 %v5523_v21, %v1696_v22  ;;  %1753 = vmatpush.msra.mxu3 %v5124_v33 }
 0x515   : > { %v1593_v41 = vpop.f32.mrf.mxu2  ;;  %1754 = vmatpush.msra.mxu3 %v5123_v34 }
 0x516   : > { %v1594_v42 = vadd.f32 %v1593_v41, %v6045_v15 }
 0x518   : > { %v1596_v43 = vsel %vm1194_vm1, %v1594_v42, -inf }
 0x519   : > { %1597 = vmax.xlane.f32.xlu2 %v1596_v43 }
 0x51d   : > { %v1726_v18 = vpop.f32.mrf.mxu2 }
 0x51e   : > { %v1727_v19 = vadd.f32 %v5522_v17, %v1726_v18 }
 0x520   : > { %5129 = vmatpush.xpose.msk.msra.mxu0 %vm1194_vm1, %v1727_v19 }
 0x58c   : > { %v1598_v48 = vpop.xlane.xlu2 %1597 }
 0x58d   : > { %v1599_v49 = vsub.f32 %v1594_v42, %v1598_v48  ;;  %v5132_v42 = vld [vmem:[%s5846_s19 + $0x18] sm:$0xff] }
 0x58e   : > { %1852 = vmatpush.msrb.mxu2 %v5132_v42  ;;  %v1953_v42 = vld [vmem:[%s6868_s11 + $0x10] sm:$0xff] }
 0x58f   : > { %v1600_v50 = vmul.f32 1.442695, %v1599_v49 }
 0x591   : > { %5601 = vpow2.f32 %v1600_v50 }
 0x597   : > { %v5602_v51 = vpop.eup %5601 }
 0x598   : > { %v1602_v52 = vsel %vm1194_vm1, %v5602_v51, 0.0 }
 0x599   : > { %1603 = vadd.xlane.f32.xlu2 %v1602_v52 }
 0x60c   : > { %v1604_v3 = vpop.xlane.xlu2 %1603 }
 0x60d   : > { %5603 = vrcp.f32 %v1604_v3  ;;  %v1616_v7 = vand.u32 2147483648, %v1604_v3  ;;  %v1614_v10 = vand.u32 2147483647, %v1604_v3  ;;  %vm1610_vm11 = vweird.f32 %v1604_v3 }
 0x60f   : > { %v1617_v12 = vor.u32 1.1754944e-38, %v1616_v7  ;;  %vm1615_vm13 = vcmp.eq.f32.partialorder %v1614_v10, 8.507059e+37 }
 0x613   : > { %v5604_v4 = vpop.eup %5603 }
 0x614   : > { %v1606_v5 = vmul.f32 %v5604_v4, %v1604_v3  ;;  %vm1611_vm10 = vweird.f32 %v5604_v4 }
 0x615   : > { %vm1612_vm12 = vmor %vm1610_vm11, %vm1611_vm10 }
 0x616   : > { %v1607_v6 = vsub.f32 1.0, %v1606_v5 }
 0x618   : > { %v1608_v9 = vmul.f32 %v5604_v4, %v1607_v6 }
 0x61a   : > { %v1609_v11 = vadd.f32 %v5604_v4, %v1608_v9 }
 0x61c   : > { %v1613_v13 = vsel %vm1612_vm12, %v5604_v4, %v1609_v11 }
 0x61d   : > { %v1618_v14 = vsel %vm1615_vm13, %v1617_v12, %v1613_v13 }
 0x61e   : > { %v6136_v16 = vmul.f32 %v5602_v51, %v1618_v14 }
 0x620   : > { %5108 = vmatmul.msk.f32.vlgmr.msrb.gmra.mxu3 %vm1194_vm1, %v6136_v16 }
 0x628   : > { %5128 = vmatmul.msk.f32.vlgmr.msra.gmra.mxu3 %vm1114_vm0, %v6030_v8 }
 0x6a3   : > { %v1640_v20 = vpop.f32.mrf.mxu3 }
 0x6a4   : > { %5110 = vmatmul.msk.f32.vlgmr.msrb.gmra.mxu0 %vm1194_vm1, %v1640_v20 }
 0x6ab   : > { %v1756_v40 = vpop.f32.mrf.mxu3 }
 0x6ac   : > { %5130 = vmatmul.msk.f32.vlgmr.msra.gmra.mxu0 %vm1194_vm1, %v1697_v23  ;;  %v1757_v41 = vadd.f32 %v5524_v39, %v1756_v40  ;;  %v5526_v23 = vld [vmem:[%s5856_s30] ss:$0 sm:$0xff]  ;;  %v1954_v40 = vld [vmem:[%s6868_s11 + $0x18] sm:$0xff] }
 0x6ad   : > { %v1982_v39 = vld [vmem:[%s5876_s27] sm:$0xff]  ;;  %1974 = vmatpush.msrb.mxu3 %v1954_v40 }
 0x6ae   : > { %1827 = vmatpush.msrb.mxu1 %v1757_v41  ;;  %v5143_v41 = vld [vmem:[%s6868_s11 + $0x38] sm:$0xff]  ;;  %v5152_v40 = vld [vmem:[%s6874_s26 + $0x20] sm:$0xff] }
 0x6af   : > { %1975 = vmatpush.msrb.mxu3 %v1953_v42 }
 0x721   : > { %v1665_v25 = vpop.f32.mrf.mxu0 }
 0x722   : > { %v1668_v26 = vadd.f32 %v1665_v25, %v1478_v24 }
 0x729   : > { %v1782_v27 = vpop.f32.mrf.mxu0 }
 0x72a   : > { %v1783_v28 = vadd.f32 %v1782_v27, %v6045_v15 }
 0x72c   : > { %v1785_v29 = vsel %vm1194_vm1, %v1783_v28, -inf }
 0x72d   : > { %1786 = vmax.xlane.f32.xlu0 %v1785_v29 }
 0x7a0   : > { %v1787_v35 = vpop.xlane.xlu0 %1786 }
 0x7a1   : > { %v1788_v36 = vsub.f32 %v1783_v28, %v1787_v35 }
 0x7a3   : > { %v1789_v37 = vmul.f32 1.442695, %v1788_v36 }
 0x7a5   : > { %5605 = vpow2.f32 %v1789_v37  ;;  %v1985_v37 = vld [vmem:[%s5876_s27 + $0x18] sm:$0xff] }
 0x7a6   : > { %2005 = vmatpush.msrb.mxu0 %v1985_v37  ;;  %v5154_v37 = vld [vmem:[%s6874_s26 + $0x30] sm:$0xff] }
 0x7ab   : > { %v5606_v15 = vpop.eup %5605 }
 0x7ac   : > { %v1791_v38 = vsel %vm1194_vm1, %v5606_v15, 0.0 }
 0x7ad   : > { %1792 = vadd.xlane.f32.xlu1 %v1791_v38  ;;  %v6184_v38 = vld [vmem:[%s6179_s28] sm:$0xff] }
 0x820   : > { %v1793_v43 = vpop.xlane.xlu1 %1792 }
 0x821   : > { %5607 = vrcp.f32 %v1793_v43  ;;  %v1805_v47 = vand.u32 2147483648, %v1793_v43  ;;  %v1803_v49 = vand.u32 2147483647, %v1793_v43  ;;  %vm1799_vm15 = vweird.f32 %v1793_v43 }
 0x822   : > { %5609 = vrcp.f32 %v5784_v63 }
 0x823   : > { %v1806_v51 = vor.u32 1.1754944e-38, %v1805_v47  ;;  %vm1804_vm3 = vcmp.eq.f32.partialorder %v1803_v49, 8.507059e+37  ;;  %v5140_v47 = vld [vmem:[%s6868_s11 + $0x20] sm:$0xff] }
 0x827   : > { %v5608_v44 = vpop.eup %5607 }
 0x828   : > { %v1795_v45 = vmul.f32 %v5608_v44, %v1793_v43  ;;  %vm1800_vm14 = vweird.f32 %v5608_v44  ;;  %v5610_v0 = vpop.eup %5609  ;;  %v5142_v43 = vld [vmem:[%s6868_s11 + $0x30] sm:$0xff] }
 0x829   : > { %vm1801_vm2 = vmor %vm1799_vm15, %vm1800_vm14  ;;  %v1870_v1 = vmul.f32 32.0, %v5610_v0  ;;  %vm1874_vm4 = vweird.f32 %v5610_v0 }
 0x82a   : > { %v1796_v46 = vsub.f32 1.0, %v1795_v45  ;;  %v5141_v45 = vld [vmem:[%s6868_s11 + $0x28] sm:$0xff] }
 0x82b   : > { %v1871_v2 = vsub.f32 1.0, %v1870_v1  ;;  %v5530_v1 = vld [vmem:[%s6870_s9] ss:$0 sm:$0xff] }
 0x82c   : > { %v1797_v48 = vmul.f32 %v5608_v44, %v1796_v46  ;;  %v1951_v46 = vld [vmem:[%s6868_s11] sm:$0xff] }
 0x82d   : > { %v1872_v3 = vmul.f32 %v5610_v0, %v1871_v2 }
 0x82e   : > { %v1798_v50 = vadd.f32 %v5608_v44, %v1797_v48 }
 0x82f   : > { %v1873_v4 = vadd.f32 %v5610_v0, %v1872_v3 }
 0x830   : > { %v1802_v52 = vsel %vm1801_vm2, %v5608_v44, %v1798_v50  ;;  %v1952_v44 = vld [vmem:[%s6868_s11 + $0x8] sm:$0xff] }
 0x831   : > { %v1807_v53 = vsel %vm1804_vm3, %v1806_v51, %v1802_v52  ;;  %v6165_v5 = vsel %vm1874_vm4, %v5610_v0, %v1873_v4  ;;  %1976 = vmatpush.msrb.mxu3 %v1952_v44  ;;  %v5532_v4 = vld [vmem:[%s6871_s13] ss:$0 sm:$0xff] }
 0x832   : > { %v6157_v54 = vmul.f32 %v5606_v15, %v1807_v53  ;;  %v1983_v15 = vld [vmem:[%s5876_s27 + $0x8] sm:$0xff] }
 0x833   : > { %1977 = vmatpush.msrb.mxu3 %v1951_v46 }
 0x834   : > { %5131 = vmatmul.msk.f32.vlgmr.msrb.gmra.mxu1 %vm1194_vm1, %v6157_v54 }
 0x8b1   : > { %v1829_v55 = vpop.f32.mrf.mxu1 }
 0x8b2   : > { %5133 = vmatmul.msk.f32.vlgmr.msrb.gmra.mxu2 %vm1194_vm1, %v1829_v55 }
 0x935   : > { %v1854_v58 = vpop.f32.mrf.mxu2 }
 0x936   : > { %v1857_v59 = vadd.f32 %v1854_v58, %v1668_v26  ;;  %v5527_v26 = vld [vmem:[%s6853_s6] ss:$0 sm:$0xff] }
 0x938   : > { %v1862_v60 = vadd.f32 %v5525_v56, %v1857_v59  ;;  %v5528_v59 = vld [vmem:[%s6869_s5] ss:$0 sm:$0xff] }
 0x93a   : > { %v1863_v61 = vadd.f32 %v1862_v60, %v6030_v8 }
 0x93c   : > { %v1866_v62 = vsel %vm1114_vm0, %v1863_v61, 0.0 }
 0x93d   : > { %1867 = vadd.xlane.f32.xlu2 %v1866_v62 }
 0x9b0   : > { %v1868_v6 = vpop.xlane.xlu2 %1867 }
 0x9b1   : > { %v1876_v7 = vmul.f32 %v6165_v5, %v1868_v6 }
 0x9b3   : > { %v1877_v9 = vsub.f32 %v1863_v61, %v1876_v7  ;;  %v5529_v61 = vld [vmem:[%s5951_s20] ss:$0 sm:$0xff] }
 0x9b5   : > { %v1878_v10 = vmul.f32 %v1877_v9, %v1877_v9 }
 0x9b7   : > { %v1879_v11 = vsel %vm1114_vm0, %v1878_v10, 0.0 }
 0x9b8   : > { %1880 = vadd.xlane.f32.xlu0 %v1879_v11 }
 0xa2b   : > { %v1881_v12 = vpop.xlane.xlu0 %1880 }
 0xa2c   : > { %v1882_v13 = vmul.f32 %v1881_v12, %v6165_v5 }
 0xa2e   : > { %v1883_v14 = vadd.f32 1e-06, %v1882_v13  ;;  %v2016_v13 = vld [vmem:[%s6873_s18 + $0x18] sm:$0xff]  ;;  %s6876_s18 = sld [smem:[#allocation19_spill]] }
 0xa2f   : > { %2033 = vmatpush.msra.mxu1 %v2016_v13  ;;  %v5172_v13 = vld [vmem:[%s5876_s27 + $0x50] sm:$0xff] }
 0xa30   : > { %5611 = vrsqrt.f32 %v1883_v14  ;;  %vm1890_vm6 = vweird.f32 %v1883_v14 }
 0xa34   : > { %s6877_s23 = smov %s6876_s18 }
 0xa36   : > { %v5612_v17 = vpop.eup %5611 }
 0xa37   : > { %v1885_v18 = vmul.f32 %v5612_v17, %v1883_v14  ;;  %vm1891_vm5 = vweird.f32 %v5612_v17  ;;  %v2015_v14 = vld [vmem:[%s6874_s26 + $0x10] sm:$0xff] }
 0xa38   : > { %vm1892_vm7 = vmor %vm1890_vm6, %vm1891_vm5  ;;  %2034 = vmatpush.msra.mxu1 %v2015_v14  ;;  %v5171_v14 = vld [vmem:[%s5876_s27 + $0x48] sm:$0xff] }
 0xa39   : > { %v1886_v19 = vmul.f32 %v5612_v17, %v1885_v18  ;;  %v2013_v18 = vld [vmem:[%s6874_s26] sm:$0xff] }
 0xa3b   : > { %v1887_v20 = vmul.f32 0.5, %v1886_v19  ;;  %v5149_v19 = vld [vmem:[%s5876_s27 + $0x38] sm:$0xff] }
 0xa3d   : > { %v1888_v21 = vsub.f32 1.5, %v1887_v20  ;;  %v5148_v20 = vld [vmem:[%s5876_s27 + $0x30] sm:$0xff] }
 0xa3f   : > { %v1889_v22 = vmul.f32 %v5612_v17, %v1888_v21  ;;  %v5147_v21 = vld [vmem:[%s5876_s27 + $0x28] sm:$0xff] }
 0xa41   : > { %v1893_v24 = vsel %vm1892_vm7, %v5612_v17, %v1889_v22  ;;  %v2014_v17 = vld [vmem:[%s6874_s26 + $0x8] sm:$0xff]  ;;  %v5146_v22 = vld [vmem:[%s5876_s27 + $0x20] sm:$0xff] }
 0xa42   : > { %v1894_v25 = vmul.f32 %v1893_v24, %v1877_v9  ;;  %v6215_v9 = vld [vmem:[%s6212_s10] sm:$0xff]  ;;  %2035 = vmatpush.msra.mxu1 %v2014_v17 }
 0xa43   : > { %v5170_v17 = vld [vmem:[%s5876_s27 + $0x40] sm:$0xff] }
 0xa44   : > { %v1898_v27 = vmul.f32 %v5526_v23, %v1894_v25  ;;  %2036 = vmatpush.msra.mxu1 %v2013_v18 }
 0xa45   : > { %5136 = vmatmul.msk.f32.vlgmr.msra.gmra.mxu1 %vm1114_vm0, %v6184_v38 }
 0xa46   : > { %v1902_v28 = vadd.f32 %v5527_v26, %v1898_v27  ;;  %2167 = vmatpush.msrb.mxu1 %v5149_v19 }
 0xa48   : > { %v1903_v29 = vadd.f32 %v1902_v28, %v6030_v8  ;;  %v1984_v8 = vld [vmem:[%s5876_s27 + $0x10] sm:$0xff]  ;;  %2168 = vmatpush.msrb.mxu1 %v5148_v20  ;;  %v5533_v28 = vld [vmem:[%s6875_s2] ss:$0 sm:$0xff] }
 0xa49   : > { %2006 = vmatpush.msrb.mxu0 %v1984_v8  ;;  %v5153_v8 = vld [vmem:[%s6874_s26 + $0x28] sm:$0xff] }
 0xa4a   : > { %v1906_v30 = vsel %vm1114_vm0, %v1903_v29, 0.0  ;;  %2169 = vmatpush.msrb.mxu1 %v5147_v21 }
 0xa4b   : > { %1907 = vadd.xlane.f32.xlu1 %v1906_v30  ;;  %2007 = vmatpush.msrb.mxu0 %v1983_v15 }
 0xa4c   : > { %2170 = vmatpush.msrb.mxu1 %v5146_v22 }
 0xa4d   : > { %2008 = vmatpush.msrb.mxu0 %v1982_v39  ;;  %5151 = vmatmul.msk.f32.vlgmr.msrb.gmra.mxu1 %vm1114_vm0, %v6184_v38 }
 0xa4e   : > { %5135 = vmatmul.msk.f32.vlgmr.msrb.gmra.mxu0 %vm1114_vm0, %v6184_v38 }
 0xa4f   : > { %2137 = vmatpush.msra.mxu0 %v5143_v41 }
 0xa51   : > { %2138 = vmatpush.msra.mxu0 %v5142_v43 }
 0xa53   : > { %2139 = vmatpush.msra.mxu0 %v5141_v45 }
 0xa55   : > { %2140 = vmatpush.msra.mxu0 %v5140_v47 }
 0xabe   : > { %v1908_v32 = vpop.xlane.xlu1 %1907 }
 0xabf   : > { %v1909_v33 = vmul.f32 %v1908_v32, %v6165_v5  ;;  %v5534_v32 = vld [vmem:[%s6870_s9 + $0x1] ss:$0 sm:$0xff] }
 0xac1   : > { %v1910_v34 = vsub.f32 %v1903_v29, %v1909_v33 }
 0xac2   : > { %v2038_v29 = vpop.f32.mrf.mxu1 }
 0xac3   : > { %v1911_v35 = vmul.f32 %v1910_v34, %v1910_v34  ;;  %v2039_v30 = vadd.f32 %v5533_v28, %v2038_v29 }
 0xac5   : > { %v1912_v36 = vsel %vm1114_vm0, %v1911_v35, 0.0  ;;  %2109 = vmatpush.msra.mxu3 %v2039_v30  ;;  %v5161_v30 = vld [vmem:[%s6877_s23 + $0x8] sm:$0xff] }
 0xac6   : > { %1913 = vadd.xlane.f32.xlu2 %v1912_v36  ;;  %v5155_v36 = vld [vmem:[%s6874_s26 + $0x38] sm:$0xff]  ;;  %2298 = vmatpush.msra.mxu1 %v5161_v30 }
 0xaca   : > { %v2172_v33 = vpop.f32.mrf.mxu1 }
 0xacb   : > { %v2010_v2 = vpop.f32.mrf.mxu0 }
 0xacc   : > { %v2011_v3 = vadd.f32 %v5530_v1, %v2010_v2 }
 0xace   : > { %5137 = vmatpush.xpose.msk.msra.mxu2 %vm1194_vm1, %v2011_v3 }
 0xad2   : > { %2197 = vmatpush.msrb.mxu2 %v5155_v36  ;;  %v5190_v36 = vld [vmem:[%s6868_s11 + $0x78] sm:$0xff] }
 0xad4   : > { %2198 = vmatpush.msrb.mxu2 %v5154_v37 }
 0xad6   : > { %2199 = vmatpush.msrb.mxu2 %v5153_v8  ;;  %v5189_v8 = vld [vmem:[%s6868_s11 + $0x70] sm:$0xff] }
 0xad8   : > { %2200 = vmatpush.msrb.mxu2 %v5152_v40  ;;  %v5187_v40 = vld [vmem:[%s6868_s11 + $0x60] sm:$0xff] }
 0xb39   : > { %v1914_v48 = vpop.xlane.xlu2 %1913 }
 0xb3a   : > { %v1915_v49 = vmul.f32 %v1914_v48, %v6165_v5 }
 0xb3c   : > { %v1916_v50 = vadd.f32 1e-06, %v1915_v49 }
 0xb3e   : > { %5613 = vrsqrt.f32 %v1916_v50  ;;  %vm1923_vm9 = vweird.f32 %v1916_v50 }
 0xb44   : > { %v5614_v51 = vpop.eup %5613 }
 0xb45   : > { %v1918_v52 = vmul.f32 %v5614_v51, %v1916_v50  ;;  %vm1924_vm8 = vweird.f32 %v5614_v51  ;;  %v5167_v50 = vld [vmem:[%s6868_s11 + $0x58] sm:$0xff] }
 0xb46   : > { %vm1925_vm10 = vmor %vm1923_vm9, %vm1924_vm8 }
 0xb47   : > { %v1919_v53 = vmul.f32 %v5614_v51, %v1918_v52  ;;  %v5531_v52 = vld [vmem:[%s6871_s13 + $0x1] ss:$0 sm:$0xff] }
 0xb49   : > { %v1920_v55 = vmul.f32 0.5, %v1919_v53  ;;  %v5165_v53 = vld [vmem:[%s6868_s11 + $0x48] sm:$0xff] }
 0xb4b   : > { %v1921_v56 = vsub.f32 1.5, %v1920_v55 }
 0xb4d   : > { %v1922_v58 = vmul.f32 %v5614_v51, %v1921_v56  ;;  %v5164_v56 = vld [vmem:[%s6868_s11 + $0x40] sm:$0xff] }
 0xb4f   : > { %v1926_v60 = vsel %vm1925_vm10, %v5614_v51, %v1922_v58  ;;  %v5166_v51 = vld [vmem:[%s6868_s11 + $0x50] sm:$0xff] }
 0xb50   : > { %v1927_v62 = vmul.f32 %v1926_v60, %v1910_v34  ;;  %v2173_v34 = vadd.f32 %v5534_v32, %v2172_v33  ;;  %v5536_v60 = vld [vmem:[%s6875_s2 + $0x1] ss:$0 sm:$0xff]  ;;  %v5179_v32 = vld [vmem:[%s6874_s26 + $0x58] sm:$0xff]  ;;  %v5178_v33 = vld [vmem:[%s6874_s26 + $0x50] sm:$0xff] }
 0xb51   : > { %2408 = vmatpush.msrb.mxu1 %v5179_v32 }
 0xb52   : > { %v1931_v63 = vmul.f32 %v5528_v59, %v1927_v62  ;;  %v2114_v59 = vld [vmem:[%s6876_s18] sm:$0xff]  ;;  %s6878_s18 = sld [smem:[#allocation20_spill]] }
 0xb53   : > { %2409 = vmatpush.msrb.mxu1 %v5178_v33 }
 0xb54   : > { %v6200_v0 = vadd.f32 %v5529_v61, %v1931_v63 }
 0xb56   : > { %5134 = vmatmul.msk.f32.vlgmr.msrb.gmra.mxu3 %vm1114_vm0, %v6200_v0  ;;  %5145 = vmatmul.msk.f32.vlgmr.msra.gmra.mxu0 %vm1114_vm0, %v6200_v0 }
 0xb57   : > { %5158 = vmatpush.xpose.msk.msrb.mxu3 %vm1194_vm1, %v2173_v34  ;;  %v5177_v34 = vld [vmem:[%s6874_s26 + $0x48] sm:$0xff] }
 0xb58   : > { %2410 = vmatpush.msrb.mxu1 %v5177_v34  ;;  %s6879_s17 = smov %s6878_s18 }
 0xbd3   : > { %v2142_v55 = vpop.f32.mrf.mxu0 }
 0xbd4   : > { %v2143_v58 = vadd.f32 %v5531_v52, %v2142_v55 }
 0xbd9   : > { %v1979_v6 = vpop.f32.mrf.mxu3 }
 0xbda   : > { %v1980_v7 = vadd.f32 %v5532_v4, %v1979_v6 }
 0xbdc   : > { %5138 = vmatmul.msk.f32.vlgmr.msra.gmra.mxu2 %vm1194_vm1, %v1980_v7 }
 0xbdd   : > { %2321 = vmatpush.msra.mxu2 %v2114_v59 }
 0xbe4   : > { %5157 = vmatmul.msk.f32.vlgmr.msrb.gmra.mxu2 %vm1114_vm0, %v6184_v38 }
 0xc5f   : > { %v2064_v10 = vpop.f32.mrf.mxu2 }
 0xc60   : > { %v2065_v11 = vadd.f32 %v2064_v10, %v6215_v9 }
 0xc62   : > { %v2067_v12 = vsel %vm1194_vm1, %v2065_v11, -inf }
 0xc63   : > { %2068 = vmax.xlane.f32.xlu0 %v2067_v12  ;;  %v5173_v12 = vld [vmem:[%s5876_s27 + $0x58] sm:$0xff] }
 0xc67   : > { %v2202_v61 = vpop.f32.mrf.mxu2 }
 0xc68   : > { %v2203_v62 = vadd.f32 %v5536_v60, %v2202_v61 }
 0xc6a   : > { %2273 = vmatpush.msrb.mxu0 %v2203_v62 }
 0xc6c   : > { %2378 = vmatpush.msra.mxu0 %v5173_v12 }
 0xc6e   : > { %2379 = vmatpush.msra.mxu0 %v5172_v13 }
 0xc70   : > { %2380 = vmatpush.msra.mxu0 %v5171_v14 }
 0xc72   : > { %2381 = vmatpush.msra.mxu0 %v5170_v17 }
 0xcd6   : > { %v2069_v23 = vpop.xlane.xlu0 %2068 }
 0xcd7   : > { %v2070_v24 = vsub.f32 %v2065_v11, %v2069_v23 }
 0xcd9   : > { %v2071_v25 = vmul.f32 1.442695, %v2070_v24 }
 0xcdb   : > { %5615 = vpow2.f32 %v2071_v25 }
 0xce1   : > { %v5616_v26 = vpop.eup %5615 }
 0xce2   : > { %v2073_v27 = vsel %vm1194_vm1, %v5616_v26, 0.0 }
 0xce3   : > { %2074 = vadd.xlane.f32.xlu1 %v2073_v27 }
 0xd56   : > { %v2075_v35 = vpop.xlane.xlu1 %2074 }
 0xd57   : > { %5617 = vrcp.f32 %v2075_v35  ;;  %v2087_v42 = vand.u32 2147483648, %v2075_v35  ;;  %v2085_v44 = vand.u32 2147483647, %v2075_v35  ;;  %vm2081_vm12 = vweird.f32 %v2075_v35 }
 0xd59   : > { %v2088_v46 = vor.u32 1.1754944e-38, %v2087_v42  ;;  %vm2086_vm14 = vcmp.eq.f32.partialorder %v2085_v44, 8.507059e+37 }
 0xd5d   : > { %v5618_v15 = vpop.eup %5617 }
 0xd5e   : > { %v2077_v39 = vmul.f32 %v5618_v15, %v2075_v35  ;;  %vm2082_vm11 = vweird.f32 %v5618_v15  ;;  %v5176_v35 = vld [vmem:[%s6874_s26 + $0x40] sm:$0xff] }
 0xd5f   : > { %vm2083_vm13 = vmor %vm2081_vm12, %vm2082_vm11  ;;  %2411 = vmatpush.msrb.mxu1 %v5176_v35 }
 0xd60   : > { %v2078_v41 = vsub.f32 1.0, %v2077_v39  ;;  %v5537_v39 = vld [vmem:[%s6870_s9 + $0x2] ss:$0 sm:$0xff] }
 0xd62   : > { %v2079_v43 = vmul.f32 %v5618_v15, %v2078_v41  ;;  %v5535_v41 = vld [vmem:[%s6871_s13 + $0x2] ss:$0 sm:$0xff] }
 0xd64   : > { %v2080_v45 = vadd.f32 %v5618_v15, %v2079_v43 }
 0xd66   : > { %v2084_v47 = vsel %vm2083_vm13, %v5618_v15, %v2080_v45  ;;  %v5188_v15 = vld [vmem:[%s6868_s11 + $0x68] sm:$0xff] }
 0xd67   : > { %v2089_v48 = vsel %vm2086_vm14, %v2088_v46, %v2084_v47 }
 0xd68   : > { %v6241_v49 = vmul.f32 %v5616_v26, %v2089_v48 }
 0xd6a   : > { %5139 = vmatmul.msk.f32.vlgmr.msra.gmra.mxu3 %vm1194_vm1, %v6241_v49 }
 0xd6b   : > { %2348 = vmatpush.msra.mxu3 %v5167_v50  ;;  %v5538_v50 = vld [vmem:[%s6875_s2 + $0x2] ss:$0 sm:$0xff] }
 0xd6d   : > { %2349 = vmatpush.msra.mxu3 %v5166_v51 }
 0xd6f   : > { %2350 = vmatpush.msra.mxu3 %v5165_v53 }
 0xd71   : > { %2351 = vmatpush.msra.mxu3 %v5164_v56 }
 0xd72   : > { %5159 = vmatmul.msk.f32.vlgmr.msrb.gmra.mxu3 %vm1194_vm1, %v2143_v58 }
 0xd7a   : > { %5169 = vmatmul.msk.f32.vlgmr.msra.gmra.mxu3 %vm1114_vm0, %v6200_v0 }
 0xded   : > { %v2111_v63 = vpop.f32.mrf.mxu3 }
 0xdee   : > { %5163 = vmatmul.msk.f32.vlgmr.msra.gmra.mxu2 %vm1194_vm1, %v2111_v63  ;;  %v5196_v63 = vld [vmem:[%s5876_s27 + $0x78] sm:$0xff] }
 0xdf5   : > { %v2228_v1 = vpop.f32.mrf.mxu3 }
 0xdf6   : > { %v2229_v2 = vadd.f32 %v2228_v1, %v6215_v9  ;;  %v5195_v1 = vld [vmem:[%s5876_s27 + $0x70] sm:$0xff] }
 0xdf8   : > { %v2231_v3 = vsel %vm1194_vm1, %v2229_v2, -inf }
 0xdf9   : > { %2232 = vmax.xlane.f32.xlu2 %v2231_v3  ;;  %v5193_v3 = vld [vmem:[%s5876_s27 + $0x60] sm:$0xff] }
 0xdfd   : > { %v2353_v43 = vpop.f32.mrf.mxu3 }
 0xdfe   : > { %v2354_v45 = vadd.f32 %v5535_v41, %v2353_v43  ;;  %v5541_v43 = vld [vmem:[%s6875_s2 + $0x3] ss:$0 sm:$0xff] }
 0xe6c   : > { %v2233_v4 = vpop.xlane.xlu2 %2232 }
 0xe6d   : > { %v2234_v6 = vsub.f32 %v2229_v2, %v2233_v4  ;;  %v5194_v2 = vld [vmem:[%s5876_s27 + $0x68] sm:$0xff]  ;;  %v5185_v4 = vld [vmem:[%s6877_s23 + $0x10] sm:$0xff] }
 0xe6f   : > { %v2235_v7 = vmul.f32 1.442695, %v2234_v6 }
 0xe71   : > { %5619 = vpow2.f32 %v2235_v7  ;;  %v2323_v46 = vpop.f32.mrf.mxu2 }
 0xe77   : > { %v5620_v10 = vpop.eup %5619 }
 0xe78   : > { %v2237_v11 = vsel %vm1194_vm1, %v5620_v10, 0.0 }
 0xe79   : > { %2238 = vadd.xlane.f32.xlu0 %v2237_v11 }
 0xeec   : > { %v2239_v18 = vpop.xlane.xlu0 %2238 }
 0xeed   : > { %5621 = vrcp.f32 %v2239_v18  ;;  %v2251_v22 = vand.u32 2147483648, %v2239_v18  ;;  %v2249_v24 = vand.u32 2147483647, %v2239_v18  ;;  %vm2245_vm2 = vweird.f32 %v2239_v18 }
 0xeef   : > { %v2252_v26 = vor.u32 1.1754944e-38, %v2251_v22  ;;  %vm2250_vm4 = vcmp.eq.f32.partialorder %v2249_v24, 8.507059e+37  ;;  %v5540_v22 = vld [vmem:[%s6870_s9 + $0x3] ss:$0 sm:$0xff] }
 0xef3   : > { %v5622_v19 = vpop.eup %5621 }
 0xef4   : > { %v2241_v20 = vmul.f32 %v5622_v19, %v2239_v18  ;;  %vm2246_vm15 = vweird.f32 %v5622_v19 }
 0xef5   : > { %vm2247_vm3 = vmor %vm2245_vm2, %vm2246_vm15 }
 0xef6   : > { %v2242_v21 = vsub.f32 1.0, %v2241_v20 }
 0xef8   : > { %v2243_v23 = vmul.f32 %v5622_v19, %v2242_v21 }
 0xefa   : > { %v2244_v25 = vadd.f32 %v5622_v19, %v2243_v23 }
 0xefc   : > { %v2248_v27 = vsel %vm2247_vm3, %v5622_v19, %v2244_v25 }
 0xefd   : > { %v2253_v28 = vsel %vm2250_vm4, %v2252_v26, %v2248_v27  ;;  %v5539_v26 = vld [vmem:[%s6871_s13 + $0x3] ss:$0 sm:$0xff] }
 0xefe   : > { %v6263_v29 = vmul.f32 %v5620_v10, %v2253_v28 }
 0xf00   : > { %5160 = vmatmul.msk.f32.vlgmr.msrb.gmra.mxu0 %vm1194_vm1, %v6263_v29 }
 0xf01   : > { %2509 = vmatpush.msrb.mxu0 %v5185_v4 }
 0xf08   : > { %5175 = vmatmul.msk.f32.vlgmr.msra.gmra.mxu0 %vm1114_vm0, %v6184_v38 }
 0xf7d   : > { %v2275_v37 = vpop.f32.mrf.mxu0 }
 0xf7e   : > { %5162 = vmatmul.msk.f32.vlgmr.msra.gmra.mxu1 %vm1194_vm1, %v2275_v37  ;;  %v5201_v37 = vld [vmem:[%s6874_s26 + $0x70] sm:$0xff] }
 0xf7f   : > { %2537 = vmatpush.msra.mxu1 %v5190_v36  ;;  %v5202_v36 = vld [vmem:[%s6874_s26 + $0x78] sm:$0xff] }
 0xf81   : > { %2538 = vmatpush.msra.mxu1 %v5189_v8  ;;  %v5200_v8 = vld [vmem:[%s6874_s26 + $0x68] sm:$0xff] }
 0xf83   : > { %2539 = vmatpush.msra.mxu1 %v5188_v15  ;;  %v5199_v15 = vld [vmem:[%s6874_s26 + $0x60] sm:$0xff] }
 0xf85   : > { %v2383_v42 = vpop.f32.mrf.mxu0  ;;  %2540 = vmatpush.msra.mxu1 %v5187_v40 }
 0xf86   : > { %v2384_v44 = vadd.f32 %v5537_v39, %v2383_v42  ;;  %5181 = vmatmul.msk.f32.vlgmr.msrb.gmra.mxu1 %vm1114_vm0, %v6184_v38 }
 0xf88   : > { %5182 = vmatpush.xpose.msk.msrb.mxu2 %vm1194_vm1, %v2384_v44 }
 0xf8b   : > { %5183 = vmatmul.msk.f32.vlgmr.msrb.gmra.mxu2 %vm1194_vm1, %v2354_v45 }
 0xf8c   : > { %2567 = vmatpush.msra.mxu2 %v5196_v63 }
 0xf8e   : > { %5192 = vmatmul.msk.f32.vlgmr.msra.gmra.mxu1 %vm1114_vm0, %v6200_v0  ;;  %2568 = vmatpush.msra.mxu2 %v5195_v1 }
 0xf90   : > { %2569 = vmatpush.msra.mxu2 %v5194_v2 }
 0xf92   : > { %2570 = vmatpush.msra.mxu2 %v5193_v3 }
 0xf93   : > { %5198 = vmatmul.msk.f32.vlgmr.msra.gmra.mxu2 %vm1114_vm0, %v6184_v38 }
 0xffb   : > { %v2300_v47 = vpop.f32.mrf.mxu1 }
 0xffc   : > { %v2324_v48 = vadd.f32 %v2323_v46, %v2300_v47  ;;  %v5208_v46 = vld [vmem:[%s6877_s23 + $0x18] sm:$0xff] }
 0xffd   : > { %2698 = vmatpush.msrb.mxu2 %v5208_v46  ;;  %v2824_v46 = vld [vmem:[%s6885_s0 + $0x20] sm:$0xff] }
0x1003   : > { %v2413_v51 = vpop.f32.mrf.mxu1 }
0x1004   : > { %v2414_v52 = vadd.f32 %v5538_v50, %v2413_v51 }
0x1006   : > { %2484 = vmatpush.msrb.mxu3 %v2414_v52 }
0x1008   : > { %2597 = vmatpush.msra.mxu3 %v5202_v36 }
0x100a   : > { %2598 = vmatpush.msra.mxu3 %v5201_v37 }
0x100b   : > { %v2542_v27 = vpop.f32.mrf.mxu1 }
0x100c   : > { %v2543_v28 = vadd.f32 %v5539_v26, %v2542_v27  ;;  %2599 = vmatpush.msra.mxu3 %v5200_v8 }
0x100e   : > { %v2439_v53 = vpop.f32.mrf.mxu2  ;;  %2600 = vmatpush.msra.mxu3 %v5199_v15 }
0x100f   : > { %v2440_v55 = vadd.f32 %v2439_v53, %v6215_v9 }
0x1011   : > { %v2442_v56 = vsel %vm1194_vm1, %v2440_v55, -inf }
0x1012   : > { %2443 = vmax.xlane.f32.xlu1 %v2442_v56 }
0x1016   : > { %v2572_v23 = vpop.f32.mrf.mxu2 }
0x1017   : > { %v2573_v24 = vadd.f32 %v5540_v22, %v2572_v23 }
0x1019   : > { %5205 = vmatpush.xpose.msk.msra.mxu0 %vm1194_vm1, %v2573_v24 }
0x1085   : > { %v2444_v58 = vpop.xlane.xlu1 %2443 }
0x1086   : > { %v2445_v59 = vsub.f32 %v2440_v55, %v2444_v58 }
0x1088   : > { %v2446_v60 = vmul.f32 1.442695, %v2445_v59 }
0x108a   : > { %5623 = vpow2.f32 %v2446_v60 }
0x1090   : > { %v5624_v61 = vpop.eup %5623 }
0x1091   : > { %v2448_v62 = vsel %vm1194_vm1, %v5624_v61, 0.0 }
0x1092   : > { %2449 = vadd.xlane.f32.xlu2 %v2448_v62  ;;  %v5542_v62 = vld [vmem:[%s6878_s18] ss:$0 sm:$0xff]  ;;  %s6882_s18 = sld [smem:[#allocation22_spill]] }
0x1105   : > { %v2450_v6 = vpop.xlane.xlu2 %2449 }
0x1106   : > { %5625 = vrcp.f32 %v2450_v6  ;;  %v2462_v12 = vand.u32 2147483648, %v2450_v6  ;;  %v2460_v14 = vand.u32 2147483647, %v2450_v6  ;;  %vm2456_vm6 = vweird.f32 %v2450_v6 }
0x1108   : > { %v2463_v18 = vor.u32 1.1754944e-38, %v2462_v12  ;;  %vm2461_vm8 = vcmp.eq.f32.partialorder %v2460_v14, 8.507059e+37 }
0x110c   : > { %v5626_v7 = vpop.eup %5625 }
0x110d   : > { %v2452_v10 = vmul.f32 %v5626_v7, %v2450_v6  ;;  %vm2457_vm5 = vweird.f32 %v5626_v7 }
0x110e   : > { %vm2458_vm7 = vmor %vm2456_vm6, %vm2457_vm5  ;;  %vm2832_vm5 = vcmask 523264  }
0x110f   : > { %v2453_v11 = vsub.f32 1.0, %v2452_v10 }
0x1111   : > { %v2454_v13 = vmul.f32 %v5626_v7, %v2453_v11 }
0x1113   : > { %v2455_v17 = vadd.f32 %v5626_v7, %v2454_v13 }
0x1115   : > { %v2459_v19 = vsel %vm2458_vm7, %v5626_v7, %v2455_v17 }
0x1116   : > { %v2464_v20 = vsel %vm2461_vm8, %v2463_v18, %v2459_v19 }
0x1117   : > { %v6298_v21 = vmul.f32 %v5624_v61, %v2464_v20 }
0x1119   : > { %5184 = vmatmul.msk.f32.vlgmr.msrb.gmra.mxu3 %vm1194_vm1, %v6298_v21 }
0x1121   : > { %5204 = vmatmul.msk.f32.vlgmr.msra.gmra.mxu3 %vm1114_vm0, %v6184_v38 }
0x119c   : > { %v2486_v25 = vpop.f32.mrf.mxu3 }
0x119d   : > { %5186 = vmatmul.msk.f32.vlgmr.msrb.gmra.mxu0 %vm1194_vm1, %v2486_v25  ;;  %v5543_v25 = vld [vmem:[%s6880_s15] ss:$0 sm:$0xff]  ;;  %s6886_s15 = sld [smem:[#allocation24_spill]] }
0x11a4   : > { %v2602_v44 = vpop.f32.mrf.mxu3 }
0x11a5   : > { %5206 = vmatmul.msk.f32.vlgmr.msra.gmra.mxu0 %vm1194_vm1, %v2543_v28  ;;  %v2603_v45 = vadd.f32 %v5541_v43, %v2602_v44  ;;  %v5544_v28 = vld [vmem:[%s6882_s18] ss:$0 sm:$0xff]  ;;  %v2825_v43 = vld [vmem:[%s6885_s0 + $0x28] sm:$0xff]  ;;  %s6888_s18 = sld [smem:[#allocation27_spill]] }
0x11a7   : > { %2673 = vmatpush.msrb.mxu1 %v2603_v45 }
0x11ab   : > { %s6889_s7 = smov %s6888_s18 }
0x121a   : > { %v2511_v30 = vpop.f32.mrf.mxu0 }
0x121b   : > { %v2514_v32 = vadd.f32 %v2511_v30, %v2324_v48 }
0x1222   : > { %v2628_v33 = vpop.f32.mrf.mxu0 }
0x1223   : > { %v2629_v34 = vadd.f32 %v2628_v33, %v6215_v9 }
0x1225   : > { %v2631_v35 = vsel %vm1194_vm1, %v2629_v34, -inf }
0x1226   : > { %2632 = vmax.xlane.f32.xlu0 %v2631_v35 }
0x1299   : > { %v2633_v39 = vpop.xlane.xlu0 %2632 }
0x129a   : > { %v2634_v40 = vsub.f32 %v2629_v34, %v2633_v39  ;;  %v2791_v39 = vld [vmem:[%s6883_s22 + $0x18] sm:$0xff]  ;;  %s6887_s22 = sld [smem:[#allocation26_spill]] }
0x129b   : > { %2811 = vmatpush.msrb.mxu3 %v2791_v39 }
0x129c   : > { %v2635_v41 = vmul.f32 1.442695, %v2634_v40  ;;  %v2790_v40 = vld [vmem:[%s6884_s12 + $0x10] sm:$0xff] }
0x129d   : > { %2812 = vmatpush.msrb.mxu3 %v2790_v40 }
0x129e   : > { %5627 = vpow2.f32 %v2635_v41  ;;  %v2788_v41 = vld [vmem:[%s6884_s12] sm:$0xff] }
0x12a4   : > { %v5628_v9 = vpop.eup %5627 }
0x12a5   : > { %v2637_v42 = vsel %vm1194_vm1, %v5628_v9, 0.0 }
0x12a6   : > { %2638 = vadd.xlane.f32.xlu1 %v2637_v42  ;;  %v2826_v42 = vld [vmem:[%s6885_s0 + $0x30] sm:$0xff] }
0x1319   : > { %v2639_v47 = vpop.xlane.xlu1 %2638 }
0x131a   : > { %5629 = vrcp.f32 %v2639_v47  ;;  %v2651_v38 = vand.u32 2147483648, %v2639_v47  ;;  %v2649_v53 = vand.u32 2147483647, %v2639_v47  ;;  %vm2645_vm10 = vweird.f32 %v2639_v47 }
0x131c   : > { %v2652_v56 = vor.u32 1.1754944e-38, %v2651_v38  ;;  %vm2650_vm12 = vcmp.eq.f32.partialorder %v2649_v53, 8.507059e+37 }
0x1320   : > { %v5630_v48 = vpop.eup %5629 }
0x1321   : > { %v2641_v50 = vmul.f32 %v5630_v48, %v2639_v47  ;;  %vm2646_vm9 = vweird.f32 %v5630_v48 }
0x1322   : > { %vm2647_vm11 = vmor %vm2645_vm10, %vm2646_vm9 }
0x1323   : > { %v2642_v51 = vsub.f32 1.0, %v2641_v50 }
0x1325   : > { %v2643_v52 = vmul.f32 %v5630_v48, %v2642_v51 }
0x1327   : > { %v2644_v55 = vadd.f32 %v5630_v48, %v2643_v52 }
0x1329   : > { %v2648_v58 = vsel %vm2647_vm11, %v5630_v48, %v2644_v55  ;;  %v2823_v48 = vld [vmem:[%s6885_s0 + $0x18] sm:$0xff] }
0x132a   : > { %v2653_v59 = vsel %vm2650_vm12, %v2652_v56, %v2648_v58  ;;  %v5545_v56 = vld [vmem:[%s6869_s5] ss:$0 sm:$0xff] }
0x132b   : > { %v6318_v60 = vmul.f32 %v5628_v9, %v2653_v59  ;;  %v2827_v9 = vld [vmem:[%s6885_s0 + $0x38] sm:$0xff] }
0x132c   : > { %2844 = vmatpush.msrb.mxu0 %v2827_v9 }
0x132d   : > { %5207 = vmatmul.msk.f32.vlgmr.msrb.gmra.mxu1 %vm1194_vm1, %v6318_v60 }
0x132e   : > { %2845 = vmatpush.msrb.mxu0 %v2826_v42 }
0x1330   : > { %2846 = vmatpush.msrb.mxu0 %v2825_v43 }
0x1332   : > { %2847 = vmatpush.msrb.mxu0 %v2824_v46  ;;  %v5221_v46 = vld [vmem:[%s5826_s29 + $0x98] sm:$0xff] }
0x1333   : > { %2977 = vmatpush.msra.mxu2 %v5221_v46 }
0x1334   : > { %2848 = vmatpush.msrb.mxu0 %v2823_v48  ;;  %v5243_v48 = vld [vmem:[%s5826_s29 + $0xb8] sm:$0xff] }
0x13aa   : > { %v2675_v61 = vpop.f32.mrf.mxu1 }
0x13ab   : > { %5209 = vmatmul.msk.f32.vlgmr.msrb.gmra.mxu2 %vm1194_vm1, %v2675_v61  ;;  %v5546_v61 = vld [vmem:[%s5951_s20] ss:$0 sm:$0xff] }
0x142e   : > { %v2700_v63 = vpop.f32.mrf.mxu2 }
0x142f   : > { %v2703_v1 = vadd.f32 %v2700_v63, %v2514_v32 }
0x1431   : > { %v2708_v2 = vadd.f32 %v5542_v62, %v2703_v1  ;;  %v2822_v1 = vld [vmem:[%s6885_s0 + $0x10] sm:$0xff] }
0x1432   : > { %2849 = vmatpush.msrb.mxu0 %v2822_v1  ;;  %v5237_v1 = vld [vmem:[%s5816_s21 + $0xb8] sm:$0xff] }
0x1433   : > { %v2709_v3 = vadd.f32 %v2708_v2, %v6200_v0  ;;  %v2821_v2 = vld [vmem:[%s6885_s0 + $0x8] sm:$0xff] }
0x1434   : > { %2850 = vmatpush.msrb.mxu0 %v2821_v2  ;;  %v5236_v2 = vld [vmem:[%s5816_s21 + $0xb0] sm:$0xff] }
0x1435   : > { %v2712_v4 = vsel %vm1114_vm0, %v2709_v3, 0.0 }
0x1436   : > { %2713 = vadd.xlane.f32.xlu2 %v2712_v4  ;;  %v5547_v4 = vld [vmem:[%s6886_s15] ss:$0 sm:$0xff]  ;;  %s6890_s15 = sld [smem:[#allocation28_spill]] }
0x14a9   : > { %v2714_v6 = vpop.xlane.xlu2 %2713 }
0x14aa   : > { %v2715_v7 = vmul.f32 %v2714_v6, %v6165_v5 }
0x14ac   : > { %v2716_v10 = vsub.f32 %v2709_v3, %v2715_v7  ;;  %v2820_v3 = vld [vmem:[%s6885_s0] sm:$0xff] }
0x14ad   : > { %2851 = vmatpush.msrb.mxu0 %v2820_v3 }
0x14ae   : > { %v2717_v11 = vmul.f32 %v2716_v10, %v2716_v10 }
0x14af   : > { %3142 = vmatpush.msra.mxu0 %v5243_v48 }
0x14b0   : > { %v2718_v12 = vsel %vm1114_vm0, %v2717_v11, 0.0  ;;  %v5548_v11 = vld [vmem:[%s6887_s22] ss:$0 sm:$0xff] }
0x14b1   : > { %2719 = vadd.xlane.f32.xlu0 %v2718_v12 }
0x1524   : > { %v2720_v13 = vpop.xlane.xlu0 %2719 }
0x1525   : > { %v2721_v14 = vmul.f32 %v2720_v13, %v6165_v5 }
0x1527   : > { %v2722_v17 = vadd.f32 1e-06, %v2721_v14 }
0x1529   : > { %5631 = vrsqrt.f32 %v2722_v17  ;;  %vm2729_vm14 = vweird.f32 %v2722_v17 }
0x152f   : > { %v5632_v18 = vpop.eup %5631 }
0x1530   : > { %v2724_v19 = vmul.f32 %v5632_v18, %v2722_v17  ;;  %vm2730_vm13 = vweird.f32 %v5632_v18 }
0x1531   : > { %vm2731_vm15 = vmor %vm2729_vm14, %vm2730_vm13 }
0x1532   : > { %v2725_v20 = vmul.f32 %v5632_v18, %v2724_v19 }
0x1534   : > { %v2726_v22 = vmul.f32 0.5, %v2725_v20 }
0x1536   : > { %v2727_v23 = vsub.f32 1.5, %v2726_v22 }
0x1538   : > { %v2728_v24 = vmul.f32 %v5632_v18, %v2727_v23 }
0x153a   : > { %v2732_v26 = vsel %vm2731_vm15, %v5632_v18, %v2728_v24 }
0x153b   : > { %v2733_v27 = vmul.f32 %v2732_v26, %v2716_v10 }
0x153d   : > { %v2737_v30 = vmul.f32 %v5543_v25, %v2733_v27 }
0x153f   : > { %v2741_v32 = vadd.f32 %v5544_v28, %v2737_v30 }
0x1541   : > { %v2742_v33 = vadd.f32 %v2741_v32, %v6200_v0  ;;  %v2789_v0 = vld [vmem:[%s6884_s12 + $0x8] sm:$0xff]  ;;  %s6891_s12 = smov %s6890_s15 }
0x1542   : > { %2813 = vmatpush.msrb.mxu3 %v2789_v0 }
0x1543   : > { %v2745_v34 = vsel %vm1114_vm0, %v2742_v33, 0.0 }
0x1544   : > { %2746 = vadd.xlane.f32.xlu1 %v2745_v34  ;;  %2814 = vmatpush.msrb.mxu3 %v2788_v41 }
0x15b7   : > { %v2747_v35 = vpop.xlane.xlu1 %2746 }
0x15b8   : > { %v2748_v36 = vmul.f32 %v2747_v35, %v6165_v5  ;;  %v5549_v35 = vld [vmem:[%s6888_s18] ss:$0 sm:$0xff]  ;;  %s5785_s18 = smov 8  }
0x15ba   : > { %v2749_v37 = vsub.f32 %v2742_v33, %v2748_v36 }
0x15bc   : > { %v2750_v8 = vmul.f32 %v2749_v37, %v2749_v37 }
0x15be   : > { %v2751_v15 = vsel %vm1114_vm0, %v2750_v8, 0.0  ;;  %v5550_v8 = vld [vmem:[%s6890_s15] ss:$0 sm:$0xff]  ;;  %s5786_s15 = smov 16  }
0x15bf   : > { %2752 = vadd.xlane.f32.xlu2 %v2751_v15 }
0x1632   : > { %v2753_v44 = vpop.xlane.xlu2 %2752 }
0x1633   : > { %v2754_v45 = vmul.f32 %v2753_v44, %v6165_v5 }
0x1635   : > { %v2755_v47 = vadd.f32 1e-06, %v2754_v45  ;;  %v5215_v45 = vld [vmem:[%s5816_s21 + $0x98] sm:$0xff] }
0x1636   : > { %2947 = vmatpush.msra.mxu1 %v5215_v45  ;;  %v5558_v45 = vld [vmem:[%s5841_s14 + $0x5] ss:$0 sm:$0xff] }
0x1637   : > { %5633 = vrsqrt.f32 %v2755_v47  ;;  %vm2762_vm3 = vweird.f32 %v2755_v47 }
0x163d   : > { %v5634_v50 = vpop.eup %5633 }
0x163e   : > { %v2757_v51 = vmul.f32 %v5634_v50, %v2755_v47  ;;  %vm2763_vm2 = vweird.f32 %v5634_v50  ;;  %v5227_v47 = vld [vmem:[%s6852_s8 + $0x98] sm:$0xff] }
0x163f   : > { %vm2764_vm4 = vmor %vm2762_vm3, %vm2763_vm2  ;;  %3007 = vmatpush.msra.mxu3 %v5227_v47 }
0x1640   : > { %v2758_v38 = vmul.f32 %v5634_v50, %v2757_v51  ;;  %v5220_v51 = vld [vmem:[%s5826_s29 + $0x90] sm:$0xff] }
0x1641   : > { %2978 = vmatpush.msra.mxu2 %v5220_v51 }
0x1642   : > { %v2759_v52 = vmul.f32 0.5, %v2758_v38  ;;  %v5226_v38 = vld [vmem:[%s6852_s8 + $0x90] sm:$0xff] }
0x1643   : > { %3008 = vmatpush.msra.mxu3 %v5226_v38 }
0x1644   : > { %v2760_v53 = vsub.f32 1.5, %v2759_v52  ;;  %v5242_v52 = vld [vmem:[%s5826_s29 + $0xb0] sm:$0xff] }
0x1645   : > { %3143 = vmatpush.msra.mxu0 %v5242_v52 }
0x1646   : > { %v2761_v55 = vmul.f32 %v5634_v50, %v2760_v53  ;;  %v5213_v53 = vld [vmem:[%s5816_s21 + $0x88] sm:$0xff] }
0x1648   : > { %v2765_v58 = vsel %vm2764_vm4, %v5634_v50, %v2761_v55  ;;  %v5214_v50 = vld [vmem:[%s5816_s21 + $0x90] sm:$0xff]  ;;  %v5219_v55 = vld [vmem:[%s5826_s29 + $0x88] sm:$0xff] }
0x1649   : > { %v2766_v59 = vmul.f32 %v2765_v58, %v2749_v37  ;;  %2948 = vmatpush.msra.mxu1 %v5214_v50  ;;  %2979 = vmatpush.msra.mxu2 %v5219_v55  ;;  %v5241_v58 = vld [vmem:[%s5826_s29 + $0xa8] sm:$0xff] }
0x164a   : > { %3144 = vmatpush.msra.mxu0 %v5241_v58 }
0x164b   : > { %v2770_v62 = vmul.f32 %v5545_v56, %v2766_v59  ;;  %v5225_v56 = vld [vmem:[%s6852_s8 + $0x88] sm:$0xff]  ;;  %2949 = vmatpush.msra.mxu1 %v5213_v53  ;;  %v5212_v59 = vld [vmem:[%s5816_s21 + $0x80] sm:$0xff] }
0x164c   : > { %3009 = vmatpush.msra.mxu3 %v5225_v56 }
0x164d   : > { %v2774_v63 = vadd.f32 %v5546_v61, %v2770_v62  ;;  %v5218_v61 = vld [vmem:[%s5826_s29 + $0x80] sm:$0xff]  ;;  %2950 = vmatpush.msra.mxu1 %v5212_v59 }
0x164e   : > { %v5224_v62 = vld [vmem:[%s6852_s8 + $0x80] sm:$0xff]  ;;  %2980 = vmatpush.msra.mxu2 %v5218_v61 }
0x164f   : > { %5210 = vmatmul.msk.f32.vlgmr.msrb.gmra.mxu3 %vm1114_vm0, %v2774_v63 }
0x1650   : > { %3010 = vmatpush.msra.mxu3 %v5224_v62 }
0x1652   : > { %3112 = vmatpush.msrb.mxu3 %v5237_v1 }
0x1654   : > { %3113 = vmatpush.msrb.mxu3 %v5236_v2 }
0x16d2   : > { %v2816_v6 = vpop.f32.mrf.mxu3 }
0x16d3   : > { %v2817_v7 = vadd.f32 %v5547_v4, %v2816_v6  ;;  %v5235_v4 = vld [vmem:[%s5816_s21 + $0xa8] sm:$0xff] }
0x16d4   : > { %3114 = vmatpush.msrb.mxu3 %v5235_v4 }
0x16d5   : > { %v2819_v10 = vmax.f32 %v2817_v7, 0.0  ;;  %v5234_v7 = vld [vmem:[%s5816_s21 + $0xa0] sm:$0xff] }
0x16d6   : > { %3115 = vmatpush.msrb.mxu3 %v5234_v7  ;;  %v5260_v7 = vld [vmem:[%s5816_s21 + $0xd0] sm:$0xff] }
0x16d7   : > { %5211 = vmatmul.msk.f32.vlgmr.msrb.gmra.mxu0 %vm2832_vm5, %v2819_v10 }
0x1754   : > { %v2853_v12 = vpop.f32.mrf.mxu0 }
0x1755   : > { %v2854_v13 = vadd.f32 %v5548_v11, %v2853_v12 }
0x1757   : > { %v2856_v14 = vadd.f32 %v2854_v13, %v2774_v63 }
0x1759   : > { %v2859_v17 = vsel %vm1114_vm0, %v2856_v14, 0.0 }
0x175a   : > { %2860 = vadd.xlane.f32.xlu0 %v2859_v17 }
0x17cd   : > { %v2861_v18 = vpop.xlane.xlu0 %2860 }
0x17ce   : > { %v2862_v19 = vmul.f32 %v2861_v18, %v6165_v5 }
0x17d0   : > { %v2863_v20 = vsub.f32 %v2856_v14, %v2862_v19  ;;  %v5551_v19 = vld [vmem:[%s6869_s5] ss:$0 sm:$0xff] }
0x17d2   : > { %v2864_v22 = vmul.f32 %v2863_v20, %v2863_v20 }
0x17d4   : > { %v2865_v23 = vsel %vm1114_vm0, %v2864_v22, 0.0  ;;  %v5552_v22 = vld [vmem:[%s5951_s20] ss:$0 sm:$0xff] }
0x17d5   : > { %2866 = vadd.xlane.f32.xlu1 %v2865_v23 }
0x1848   : > { %v2867_v24 = vpop.xlane.xlu1 %2866 }
0x1849   : > { %v2868_v25 = vmul.f32 %v2867_v24, %v6165_v5 }
0x184b   : > { %v2869_v26 = vadd.f32 1e-06, %v2868_v25 }
0x184d   : > { %5635 = vrsqrt.f32 %v2869_v26  ;;  %vm2876_vm7 = vweird.f32 %v2869_v26 }
0x1853   : > { %v5636_v27 = vpop.eup %5635 }
0x1854   : > { %v2871_v28 = vmul.f32 %v5636_v27, %v2869_v26  ;;  %vm2877_vm6 = vweird.f32 %v5636_v27  ;;  %v5555_v26 = vld [vmem:[%s6854_s3 + $0x4] ss:$0 sm:$0xff] }
0x1855   : > { %vm2878_vm8 = vmor %vm2876_vm7, %vm2877_vm6 }
0x1856   : > { %v2872_v30 = vmul.f32 %v5636_v27, %v2871_v28  ;;  %v5554_v28 = vld [vmem:[%s6854_s3 + $0x5] ss:$0 sm:$0xff] }
0x1858   : > { %v2873_v32 = vmul.f32 0.5, %v2872_v30  ;;  %v5553_v30 = vld [vmem:[%s5821_s25 + $0x4] ss:$0 sm:$0xff] }
0x185a   : > { %v2874_v33 = vsub.f32 1.5, %v2873_v32 }
0x185c   : > { %v2875_v34 = vmul.f32 %v5636_v27, %v2874_v33 }
0x185e   : > { %v2879_v36 = vsel %vm2878_vm8, %v5636_v27, %v2875_v34  ;;  %v5556_v27 = vld [vmem:[%s5841_s14 + $0x4] ss:$0 sm:$0xff] }
0x185f   : > { %v2880_v37 = vmul.f32 %v2879_v36, %v2863_v20 }
0x1861   : > { %v2884_v15 = vmul.f32 %v5549_v35, %v2880_v37  ;;  %v5249_v37 = vld [vmem:[%s6852_s8 + $0xb8] sm:$0xff] }
0x1863   : > { %v2888_v39 = vadd.f32 %v5550_v8, %v2884_v15 }
0x1865   : > { %v2889_v40 = vadd.f32 %v2888_v39, %v2774_v63  ;;  %v5240_v63 = vld [vmem:[%s5826_s29 + $0xa0] sm:$0xff] }
0x1866   : > { %3145 = vmatpush.msra.mxu0 %v5240_v63 }
0x1867   : > { %v2892_v0 = vsel %vm1114_vm0, %v2889_v40, 0.0 }
0x1868   : > { %2893 = vadd.xlane.f32.xlu2 %v2892_v0  ;;  %v5247_v0 = vld [vmem:[%s6852_s8 + $0xa8] sm:$0xff] }
0x18db   : > { %v2894_v41 = vpop.xlane.xlu2 %2893 }
0x18dc   : > { %v2895_v9 = vmul.f32 %v2894_v41, %v6165_v5  ;;  %v5246_v41 = vld [vmem:[%s6852_s8 + $0xa0] sm:$0xff] }
0x18de   : > { %v2896_v42 = vsub.f32 %v2889_v40, %v2895_v9  ;;  %v5248_v40 = vld [vmem:[%s6852_s8 + $0xb0] sm:$0xff] }
0x18e0   : > { %v2897_v43 = vmul.f32 %v2896_v42, %v2896_v42 }
0x18e2   : > { %v2898_v44 = vsel %vm1114_vm0, %v2897_v43, 0.0 }
0x18e3   : > { %2899 = vadd.xlane.f32.xlu0 %v2898_v44 }
0x1956   : > { %v2900_v3 = vpop.xlane.xlu0 %2899 }
0x1957   : > { %v2901_v6 = vmul.f32 %v2900_v3, %v6165_v5 }
0x1959   : > { %v2902_v10 = vadd.f32 1e-06, %v2901_v6  ;;  %v5261_v6 = vld [vmem:[%s5816_s21 + $0xd8] sm:$0xff] }
0x195b   : > { %5637 = vrsqrt.f32 %v2902_v10  ;;  %vm2909_vm10 = vweird.f32 %v2902_v10 }
0x1961   : > { %v5638_v11 = vpop.eup %5637 }
0x1962   : > { %v2904_v12 = vmul.f32 %v5638_v11, %v2902_v10  ;;  %vm2910_vm9 = vweird.f32 %v5638_v11  ;;  %v5557_v10 = vld [vmem:[%s5821_s25 + $0x5] ss:$0 sm:$0xff] }
0x1963   : > { %vm2911_vm11 = vmor %vm2909_vm10, %vm2910_vm9 }
0x1964   : > { %v2905_v13 = vmul.f32 %v5638_v11, %v2904_v12 }
0x1966   : > { %v2906_v14 = vmul.f32 0.5, %v2905_v13  ;;  %v5258_v13 = vld [vmem:[%s5816_s21 + $0xc0] sm:$0xff] }
0x1968   : > { %v2907_v17 = vsub.f32 1.5, %v2906_v14 }
0x196a   : > { %v2908_v18 = vmul.f32 %v5638_v11, %v2907_v17  ;;  %v5233_v17 = vld [vmem:[%s5846_s19 + $0x20] sm:$0xff] }
0x196c   : > { %v2912_v20 = vsel %vm2911_vm11, %v5638_v11, %v2908_v18  ;;  %v5259_v11 = vld [vmem:[%s5816_s21 + $0xc8] sm:$0xff] }
0x196d   : > { %v2913_v23 = vmul.f32 %v2912_v20, %v2896_v42  ;;  %v6412_v42 = vld [vmem:[%s6042_s1] sm:$0xff]  ;;  %s6893_s1 = sld [smem:[#allocation23_spill]] }
0x196f   : > { %v2917_v24 = vmul.f32 %v5551_v19, %v2913_v23 }
0x1971   : > { %v6386_v25 = vadd.f32 %v5552_v22, %v2917_v24 }
0x1973   : > { %5217 = vmatmul.msk.f32.vlgmr.msra.gmra.mxu1 %vm1114_vm0, %v6386_v25  ;;  %5223 = vmatmul.msk.f32.vlgmr.msra.gmra.mxu2 %vm1114_vm0, %v6386_v25 }
0x1974   : > { %5229 = vmatmul.msk.f32.vlgmr.msra.gmra.mxu3 %vm1114_vm0, %v6386_v25  ;;  %5245 = vmatmul.msk.f32.vlgmr.msra.gmra.mxu0 %vm1114_vm0, %v6386_v25 }
0x197c   : > { %5239 = vmatmul.msk.f32.vlgmr.msrb.gmra.mxu3 %vm1114_vm0, %v6386_v25 }
0x19f0   : > { %v2952_v34 = vpop.f32.mrf.mxu1 }
0x19f1   : > { %v3147_v32 = vpop.f32.mrf.mxu0  ;;  %v2953_v39 = vadd.f32 %v5553_v30, %v2952_v34  ;;  %v5267_v30 = vld [vmem:[%s5826_s29 + $0xd8] sm:$0xff]  ;;  %v5264_v34 = vld [vmem:[%s5826_s29 + $0xc0] sm:$0xff] }
0x19f2   : > { %v3148_v15 = vadd.f32 %v5554_v28, %v3147_v32  ;;  %v5266_v32 = vld [vmem:[%s5826_s29 + $0xd0] sm:$0xff] }
0x19f6   : > { %v2982_v33 = vpop.f32.mrf.mxu2 }
0x19f7   : > { %v2983_v35 = vadd.f32 %v5555_v26, %v2982_v33  ;;  %v3012_v36 = vpop.f32.mrf.mxu3  ;;  %v5265_v33 = vld [vmem:[%s5826_s29 + $0xc8] sm:$0xff] }
0x19f8   : > { %v3013_v8 = vadd.f32 %v5556_v27, %v3012_v36 }
0x19f9   : > { %5230 = vmatpush.xpose.msk.msrb.mxu1 %vm1194_vm1, %v2983_v35 }
0x19fa   : > { %3083 = vmatpush.msrb.mxu2 %v3013_v8 }
0x19fc   : > { %5252 = vmatpush.xpose.msk.msra.mxu2 %vm1194_vm1, %v3148_v15  ;;  %5231 = vmatmul.msk.f32.vlgmr.msrb.gmra.mxu1 %vm1194_vm1, %v2953_v39 }
0x19fd   : > { %3172 = vmatpush.msra.mxu1 %v5249_v37 }
0x19ff   : > { %3173 = vmatpush.msra.mxu1 %v5248_v40  ;;  %v3117_v12 = vpop.f32.mrf.mxu3 }
0x1a00   : > { %v3118_v14 = vadd.f32 %v5557_v10, %v3117_v12 }
0x1a01   : > { %3174 = vmatpush.msra.mxu1 %v5247_v0 }
0x1a03   : > { %3175 = vmatpush.msra.mxu1 %v5246_v41 }
0x1a04   : > { %5251 = vmatmul.msk.f32.vlgmr.msra.gmra.mxu1 %vm1114_vm0, %v6386_v25 }
0x1a05   : > { %3296 = vmatpush.msrb.mxu1 %v5233_v17 }
0x1a79   : > { %v3038_v9 = vpop.f32.mrf.mxu1 }
0x1a7a   : > { %v3039_v43 = vadd.f32 %v6412_v42, %v3038_v9 }
0x1a7c   : > { %v3041_v44 = vsel %vm1194_vm1, %v3039_v43, -inf }
0x1a7d   : > { %3042 = vmax.xlane.f32.xlu1 %v3041_v44 }
0x1a81   : > { %v3177_v46 = vpop.f32.mrf.mxu1 }
0x1a82   : > { %v3178_v47 = vadd.f32 %v5558_v45, %v3177_v46  ;;  %v5255_v45 = vld [vmem:[%s5846_s19 + $0x28] sm:$0xff]  ;;  %v5273_v46 = vld [vmem:[%s6852_s8 + $0xd8] sm:$0xff] }
0x1a83   : > { %3273 = vmatpush.msrb.mxu0 %v5255_v45 }
0x1a84   : > { %3248 = vmatpush.msra.mxu3 %v3178_v47  ;;  %v5272_v47 = vld [vmem:[%s6852_s8 + $0xd0] sm:$0xff] }
0x1a85   : > { %3383 = vmatpush.msra.mxu0 %v5273_v46 }
0x1a86   : > { %3353 = vmatpush.msrb.mxu3 %v5267_v30 }
0x1a87   : > { %3384 = vmatpush.msra.mxu0 %v5272_v47 }
0x1a88   : > { %3354 = vmatpush.msrb.mxu3 %v5266_v32 }
0x1a8a   : > { %3355 = vmatpush.msrb.mxu3 %v5265_v33  ;;  %v5296_v33 = vld [vmem:[%s6852_s8 + $0xf8] sm:$0xff] }
0x1a8c   : > { %3356 = vmatpush.msrb.mxu3 %v5264_v34  ;;  %v5295_v34 = vld [vmem:[%s6852_s8 + $0xf0] sm:$0xff] }
0x1af0   : > { %v3043_v48 = vpop.xlane.xlu1 %3042 }
0x1af1   : > { %v3044_v50 = vsub.f32 %v3039_v43, %v3043_v48  ;;  %v5271_v48 = vld [vmem:[%s6852_s8 + $0xc8] sm:$0xff] }
0x1af2   : > { %3385 = vmatpush.msra.mxu0 %v5271_v48 }
0x1af3   : > { %v3045_v51 = vmul.f32 1.442695, %v3044_v50  ;;  %v5270_v50 = vld [vmem:[%s6852_s8 + $0xc0] sm:$0xff] }
0x1af4   : > { %3386 = vmatpush.msra.mxu0 %v5270_v50  ;;  %v5562_v50 = vld [vmem:[%s5821_s25 + $0x7] ss:$0 sm:$0xff] }
0x1af5   : > { %5639 = vpow2.f32 %v3045_v51  ;;  %v5284_v51 = vld [vmem:[%s5816_s21 + $0xf8] sm:$0xff] }
0x1afb   : > { %v5640_v38 = vpop.eup %5639 }
0x1afc   : > { %v3047_v52 = vsel %vm1194_vm1, %v5640_v38, 0.0 }
0x1afd   : > { %3048 = vadd.xlane.f32.xlu2 %v3047_v52  ;;  %v5283_v52 = vld [vmem:[%s5816_s21 + $0xf0] sm:$0xff] }
0x1b70   : > { %v3049_v53 = vpop.xlane.xlu2 %3048 }
0x1b71   : > { %5641 = vrcp.f32 %v3049_v53  ;;  %v3061_v59 = vand.u32 2147483648, %v3049_v53  ;;  %v3059_v62 = vand.u32 2147483647, %v3049_v53  ;;  %vm3055_vm13 = vweird.f32 %v3049_v53 }
0x1b73   : > { %v3062_v1 = vor.u32 1.1754944e-38, %v3061_v59  ;;  %vm3060_vm15 = vcmp.eq.f32.partialorder %v3059_v62, 8.507059e+37 }
0x1b77   : > { %v5642_v55 = vpop.eup %5641 }
0x1b78   : > { %v3051_v56 = vmul.f32 %v5642_v55, %v3049_v53  ;;  %vm3056_vm12 = vweird.f32 %v5642_v55  ;;  %v5282_v53 = vld [vmem:[%s5816_s21 + $0xe8] sm:$0xff] }
0x1b79   : > { %vm3057_vm14 = vmor %vm3055_vm13, %vm3056_vm12 }
0x1b7a   : > { %v3052_v58 = vsub.f32 1.0, %v3051_v56  ;;  %v5281_v56 = vld [vmem:[%s5816_s21 + $0xe0] sm:$0xff] }
0x1b7c   : > { %v3053_v61 = vmul.f32 %v5642_v55, %v3052_v58  ;;  %v5559_v58 = vld [vmem:[%s5821_s25 + $0x6] ss:$0 sm:$0xff] }
0x1b7e   : > { %v3054_v63 = vadd.f32 %v5642_v55, %v3053_v61 }
0x1b80   : > { %v3058_v2 = vsel %vm3057_vm14, %v5642_v55, %v3054_v63  ;;  %v5560_v55 = vld [vmem:[%s6854_s3 + $0x6] ss:$0 sm:$0xff]  ;;  %v5290_v63 = vld [vmem:[%s5826_s29 + $0xf8] sm:$0xff] }
0x1b81   : > { %v3063_v3 = vsel %vm3060_vm15, %v3062_v1, %v3058_v2  ;;  %v5289_v2 = vld [vmem:[%s5826_s29 + $0xf0] sm:$0xff] }
0x1b82   : > { %v6418_v4 = vmul.f32 %v5640_v38, %v3063_v3  ;;  %v5288_v3 = vld [vmem:[%s5826_s29 + $0xe8] sm:$0xff] }
0x1b84   : > { %5232 = vmatmul.msk.f32.vlgmr.msrb.gmra.mxu2 %vm1194_vm1, %v6418_v4 }
0x1b85   : > { %3323 = vmatpush.msrb.mxu2 %v5261_v6  ;;  %v5287_v6 = vld [vmem:[%s5826_s29 + $0xe0] sm:$0xff] }
0x1b87   : > { %3324 = vmatpush.msrb.mxu2 %v5260_v7  ;;  %v5279_v7 = vld [vmem:[%s5846_s19 + $0x30] sm:$0xff] }
0x1b89   : > { %3325 = vmatpush.msrb.mxu2 %v5259_v11 }
0x1b8b   : > { %3326 = vmatpush.msrb.mxu2 %v5258_v13  ;;  %v5561_v13 = vld [vmem:[%s5841_s14 + $0x6] ss:$0 sm:$0xff] }
0x1b8c   : > { %5253 = vmatmul.msk.f32.vlgmr.msra.gmra.mxu2 %vm1194_vm1, %v3118_v14 }
0x1b94   : > { %5263 = vmatmul.msk.f32.vlgmr.msrb.gmra.mxu2 %vm1114_vm0, %v6386_v25 }
0x1c07   : > { %v3085_v18 = vpop.f32.mrf.mxu2 }
0x1c08   : > { %5257 = vmatmul.msk.f32.vlgmr.msrb.gmra.mxu1 %vm1194_vm1, %v3085_v18 }
0x1c0f   : > { %v3203_v19 = vpop.f32.mrf.mxu2 }
0x1c10   : > { %v3204_v20 = vadd.f32 %v6412_v42, %v3203_v19 }
0x1c12   : > { %v3206_v22 = vsel %vm1194_vm1, %v3204_v20, -inf }
0x1c13   : > { %3207 = vmax.xlane.f32.xlu0 %v3206_v22  ;;  %v5563_v22 = vld [vmem:[%s6854_s3 + $0x7] ss:$0 sm:$0xff] }
0x1c17   : > { %v3328_v61 = vpop.f32.mrf.mxu2 }
0x1c18   : > { %v3329_v1 = vadd.f32 %v5559_v58, %v3328_v61 }
0x1c85   : > { %v3298_v10 = vpop.f32.mrf.mxu1 }
0x1c86   : > { %v3208_v23 = vpop.xlane.xlu0 %3207 }
0x1c87   : > { %v3209_v24 = vsub.f32 %v3204_v20, %v3208_v23 }
0x1c89   : > { %v3210_v26 = vmul.f32 1.442695, %v3209_v24 }
0x1c8b   : > { %5643 = vpow2.f32 %v3210_v26 }
0x1c91   : > { %v5644_v27 = vpop.eup %5643 }
0x1c92   : > { %v3212_v28 = vsel %vm1194_vm1, %v5644_v27, 0.0 }
0x1c93   : > { %3213 = vadd.xlane.f32.xlu1 %v3212_v28 }
0x1d06   : > { %v3214_v35 = vpop.xlane.xlu1 %3213 }
0x1d07   : > { %5645 = vrcp.f32 %v3214_v35  ;;  %v3226_v15 = vand.u32 2147483648, %v3214_v35  ;;  %v3224_v40 = vand.u32 2147483647, %v3214_v35  ;;  %vm3220_vm3 = vweird.f32 %v3214_v35 }
0x1d09   : > { %v3227_v41 = vor.u32 1.1754944e-38, %v3226_v15  ;;  %vm3225_vm6 = vcmp.eq.f32.partialorder %v3224_v40, 8.507059e+37 }
0x1d0d   : > { %v5646_v36 = vpop.eup %5645 }
0x1d0e   : > { %v3216_v37 = vmul.f32 %v5646_v36, %v3214_v35  ;;  %vm3221_vm2 = vweird.f32 %v5646_v36  ;;  %v5294_v35 = vld [vmem:[%s6852_s8 + $0xe8] sm:$0xff] }
0x1d0f   : > { %vm3222_vm4 = vmor %vm3220_vm3, %vm3221_vm2 }
0x1d10   : > { %v3217_v8 = vsub.f32 1.0, %v3216_v37 }
0x1d12   : > { %v3218_v39 = vmul.f32 %v5646_v36, %v3217_v8 }
0x1d14   : > { %v3219_v0 = vadd.f32 %v5646_v36, %v3218_v39 }
0x1d16   : > { %v3223_v9 = vsel %vm3222_vm4, %v5646_v36, %v3219_v0  ;;  %v5293_v36 = vld [vmem:[%s6852_s8 + $0xe0] sm:$0xff] }
0x1d17   : > { %v3228_v43 = vsel %vm3225_vm6, %v3227_v41, %v3223_v9 }
0x1d18   : > { %v6439_v44 = vmul.f32 %v5644_v27, %v3228_v43 }
0x1d1a   : > { %5254 = vmatmul.msk.f32.vlgmr.msra.gmra.mxu3 %vm1194_vm1, %v6439_v44 }
0x1d1b   : > { %3484 = vmatpush.msra.mxu3 %v5279_v7  ;;  %v5302_v7 = vld [vmem:[%s5846_s19 + $0x38] sm:$0xff] }
0x1d22   : > { %5269 = vmatmul.msk.f32.vlgmr.msrb.gmra.mxu3 %vm1114_vm0, %v6386_v25 }
0x1d9d   : > { %v3250_v38 = vpop.f32.mrf.mxu3 }
0x1d9e   : > { %5256 = vmatmul.msk.f32.vlgmr.msrb.gmra.mxu0 %vm1194_vm1, %v3250_v38  ;;  %v5564_v38 = vld [vmem:[%s5841_s14 + $0x7] ss:$0 sm:$0xff] }
0x1d9f   : > { %3512 = vmatpush.msrb.mxu0 %v5284_v51 }
0x1da1   : > { %3513 = vmatpush.msrb.mxu0 %v5283_v52 }
0x1da3   : > { %3514 = vmatpush.msrb.mxu0 %v5282_v53 }
0x1da5   : > { %v3358_v59 = vpop.f32.mrf.mxu3  ;;  %3515 = vmatpush.msrb.mxu0 %v5281_v56 }
0x1da6   : > { %v3359_v62 = vadd.f32 %v5560_v55, %v3358_v59  ;;  %5275 = vmatmul.msk.f32.vlgmr.msra.gmra.mxu0 %vm1114_vm0, %v6386_v25 }
0x1da8   : > { %5276 = vmatpush.xpose.msk.msra.mxu1 %vm1194_vm1, %v3359_v62 }
0x1dab   : > { %5277 = vmatmul.msk.f32.vlgmr.msra.gmra.mxu1 %vm1194_vm1, %v3329_v1 }
0x1dac   : > { %3542 = vmatpush.msrb.mxu1 %v5290_v63 }
0x1dae   : > { %3543 = vmatpush.msrb.mxu1 %v5289_v2  ;;  %5286 = vmatmul.msk.f32.vlgmr.msrb.gmra.mxu0 %vm1114_vm0, %v6386_v25 }
0x1db0   : > { %3544 = vmatpush.msrb.mxu1 %v5288_v3 }
0x1db2   : > { %3545 = vmatpush.msrb.mxu1 %v5287_v6 }
0x1db3   : > { %5292 = vmatmul.msk.f32.vlgmr.msrb.gmra.mxu1 %vm1114_vm0, %v6386_v25 }
0x1db4   : > { %3673 = vmatpush.msra.mxu1 %v5302_v7  ;;  %v5313_v7 = vld [vmem:[%s6868_s11 + $0x98] sm:$0xff] }
0x1e1b   : > { %v3275_v11 = vpop.f32.mrf.mxu0 }
0x1e1c   : > { %v3299_v12 = vadd.f32 %v3298_v10, %v3275_v11 }
0x1e23   : > { %v3388_v14 = vpop.f32.mrf.mxu0 }
0x1e24   : > { %v3389_v17 = vadd.f32 %v5561_v13, %v3388_v14 }
0x1e26   : > { %3459 = vmatpush.msra.mxu2 %v3389_v17 }
0x1e28   : > { %v3414_v18 = vpop.f32.mrf.mxu1  ;;  %3572 = vmatpush.msrb.mxu2 %v5296_v33 }
0x1e29   : > { %v3415_v19 = vadd.f32 %v6412_v42, %v3414_v18 }
0x1e2a   : > { %3573 = vmatpush.msrb.mxu2 %v5295_v34 }
0x1e2b   : > { %v3417_v20 = vsel %vm1194_vm1, %v3415_v19, -inf  ;;  %v3517_v51 = vpop.f32.mrf.mxu0 }
0x1e2c   : > { %3418 = vmax.xlane.f32.xlu2 %v3417_v20  ;;  %3574 = vmatpush.msrb.mxu2 %v5294_v35  ;;  %v3518_v52 = vadd.f32 %v5562_v50, %v3517_v51 }
0x1e2e   : > { %3575 = vmatpush.msrb.mxu2 %v5293_v36 }
0x1e30   : > { %v3547_v23 = vpop.f32.mrf.mxu1 }
0x1e31   : > { %v3548_v24 = vadd.f32 %v5563_v22, %v3547_v23 }
0x1e33   : > { %5299 = vmatpush.xpose.msk.msrb.mxu3 %vm1194_vm1, %v3548_v24 }
0x1e9f   : > { %v3419_v26 = vpop.xlane.xlu2 %3418 }
0x1ea0   : > { %v3420_v27 = vsub.f32 %v3415_v19, %v3419_v26  ;;  %v5565_v26 = vld [vmem:[%s5851_s24 + $0x1] ss:$0 sm:$0xff] }
0x1ea2   : > { %v3421_v28 = vmul.f32 1.442695, %v3420_v27 }
0x1ea4   : > { %5647 = vpow2.f32 %v3421_v28 }
0x1eaa   : > { %v5648_v30 = vpop.eup %5647 }
0x1eab   : > { %v3423_v32 = vsel %vm1194_vm1, %v5648_v30, 0.0 }
0x1eac   : > { %3424 = vadd.xlane.f32.xlu0 %v3423_v32 }
0x1f1f   : > { %v3425_v37 = vpop.xlane.xlu0 %3424 }
0x1f20   : > { %5649 = vrcp.f32 %v3425_v37  ;;  %v3437_v40 = vand.u32 2147483648, %v3425_v37  ;;  %v3435_v41 = vand.u32 2147483647, %v3425_v37  ;;  %vm3431_vm8 = vweird.f32 %v3425_v37 }
0x1f22   : > { %v3438_v43 = vor.u32 1.1754944e-38, %v3437_v40  ;;  %vm3436_vm10 = vcmp.eq.f32.partialorder %v3435_v41, 8.507059e+37 }
0x1f26   : > { %v5650_v8 = vpop.eup %5649 }
0x1f27   : > { %v3427_v15 = vmul.f32 %v5650_v8, %v3425_v37  ;;  %vm3432_vm7 = vweird.f32 %v5650_v8 }
0x1f28   : > { %vm3433_vm9 = vmor %vm3431_vm8, %vm3432_vm7 }
0x1f29   : > { %v3428_v39 = vsub.f32 1.0, %v3427_v15 }
0x1f2b   : > { %v3429_v0 = vmul.f32 %v5650_v8, %v3428_v39 }
0x1f2d   : > { %v3430_v9 = vadd.f32 %v5650_v8, %v3429_v0 }
0x1f2f   : > { %v3434_v45 = vsel %vm3433_vm9, %v5650_v8, %v3430_v9 }
0x1f30   : > { %v3439_v46 = vsel %vm3436_vm10, %v3438_v43, %v3434_v45 }
0x1f31   : > { %v6480_v47 = vmul.f32 %v5648_v30, %v3439_v46 }
0x1f33   : > { %5278 = vmatmul.msk.f32.vlgmr.msra.gmra.mxu2 %vm1194_vm1, %v6480_v47 }
0x1f34   : > { %3794 = vmatpush.msra.mxu2 %v5313_v7 }
0x1f3b   : > { %5298 = vmatmul.msk.f32.vlgmr.msrb.gmra.mxu2 %vm1114_vm0, %v6386_v25 }
0x1fb6   : > { %v3461_v48 = vpop.f32.mrf.mxu2 }
0x1fb7   : > { %5280 = vmatmul.msk.f32.vlgmr.msra.gmra.mxu3 %vm1194_vm1, %v3461_v48  ;;  %v5566_v48 = vld [vmem:[%s5856_s30 + $0x1] ss:$0 sm:$0xff] }
0x1fbe   : > { %v3577_v53 = vpop.f32.mrf.mxu2 }
0x1fbf   : > { %v3578_v55 = vadd.f32 %v5564_v38, %v3577_v53  ;;  %5300 = vmatmul.msk.f32.vlgmr.msrb.gmra.mxu3 %vm1194_vm1, %v3518_v52  ;;  %v5567_v38 = vld [vmem:[%s6853_s6 + $0x1] ss:$0 sm:$0xff] }
0x1fc1   : > { %3648 = vmatpush.msra.mxu0 %v3578_v55 }
0x203a   : > { %v3486_v56 = vpop.f32.mrf.mxu3 }
0x203b   : > { %v3489_v58 = vadd.f32 %v3486_v56, %v3299_v12 }
0x2042   : > { %v3603_v59 = vpop.f32.mrf.mxu3 }
0x2043   : > { %v3604_v61 = vadd.f32 %v6412_v42, %v3603_v59 }
0x2045   : > { %v3606_v62 = vsel %vm1194_vm1, %v3604_v61, -inf }
0x2046   : > { %3607 = vmax.xlane.f32.xlu1 %v3606_v62 }
0x20b9   : > { %v3608_v63 = vpop.xlane.xlu1 %3607 }
0x20ba   : > { %v3609_v1 = vsub.f32 %v3604_v61, %v3608_v63 }
0x20bc   : > { %v3610_v2 = vmul.f32 1.442695, %v3609_v1  ;;  %v5319_v1 = vld [vmem:[%s5876_s27 + $0x98] sm:$0xff] }
0x20bd   : > { %3824 = vmatpush.msra.mxu3 %v5319_v1  ;;  %v5573_v1 = vld [vmem:[%s6875_s2 + $0x4] ss:$0 sm:$0xff] }
0x20be   : > { %5651 = vpow2.f32 %v3610_v2  ;;  %v5318_v2 = vld [vmem:[%s5876_s27 + $0x90] sm:$0xff] }
0x20bf   : > { %3825 = vmatpush.msra.mxu3 %v5318_v2 }
0x20c4   : > { %v5652_v3 = vpop.eup %5651 }
0x20c5   : > { %v3612_v6 = vsel %vm1194_vm1, %v5652_v3, 0.0 }
0x20c6   : > { %3613 = vadd.xlane.f32.xlu2 %v3612_v6  ;;  %v6516_v6 = vld [vmem:[%s6179_s28] sm:$0xff]  ;;  %s6894_s28 = sld [smem:[#allocation24_spill]] }
0x2139   : > { %v3614_v10 = vpop.xlane.xlu2 %3613 }
0x213a   : > { %5653 = vrcp.f32 %v3614_v10  ;;  %v3626_v42 = vand.u32 2147483648, %v3614_v10  ;;  %v3624_v17 = vand.u32 2147483647, %v3614_v10  ;;  %vm3620_vm12 = vweird.f32 %v3614_v10 }
0x213c   : > { %v3627_v19 = vor.u32 1.1754944e-38, %v3626_v42  ;;  %vm3625_vm14 = vcmp.eq.f32.partialorder %v3624_v17, 8.507059e+37  ;;  %v5333_v42 = vld [vmem:[%s6868_s11 + $0xa8] sm:$0xff]  ;;  %v5332_v17 = vld [vmem:[%s6868_s11 + $0xa0] sm:$0xff] }
0x2140   : > { %v5654_v11 = vpop.eup %5653 }
0x2141   : > { %v3616_v12 = vmul.f32 %v5654_v11, %v3614_v10  ;;  %vm3621_vm11 = vweird.f32 %v5654_v11  ;;  %v5335_v10 = vld [vmem:[%s6868_s11 + $0xb8] sm:$0xff] }
0x2142   : > { %vm3622_vm13 = vmor %vm3620_vm12, %vm3621_vm11 }
0x2143   : > { %v3617_v13 = vsub.f32 1.0, %v3616_v12  ;;  %v5334_v12 = vld [vmem:[%s6868_s11 + $0xb0] sm:$0xff] }
0x2145   : > { %v3618_v14 = vmul.f32 %v5654_v11, %v3617_v13  ;;  %v5311_v13 = vld [vmem:[%s6868_s11 + $0x88] sm:$0xff] }
0x2147   : > { %v3619_v18 = vadd.f32 %v5654_v11, %v3618_v14  ;;  %v5310_v14 = vld [vmem:[%s6868_s11 + $0x80] sm:$0xff] }
0x2149   : > { %v3623_v20 = vsel %vm3622_vm13, %v5654_v11, %v3619_v18  ;;  %v5312_v11 = vld [vmem:[%s6868_s11 + $0x90] sm:$0xff] }
0x214a   : > { %v3628_v22 = vsel %vm3625_vm14, %v3627_v19, %v3623_v20  ;;  %3795 = vmatpush.msra.mxu2 %v5312_v11 }
0x214b   : > { %v6494_v23 = vmul.f32 %v5652_v3, %v3628_v22  ;;  %v5316_v3 = vld [vmem:[%s5876_s27 + $0x80] sm:$0xff] }
0x214c   : > { %3796 = vmatpush.msra.mxu2 %v5311_v13  ;;  %v5346_v13 = vld [vmem:[%s6874_s26 + $0xb0] sm:$0xff] }
0x214d   : > { %5301 = vmatmul.msk.f32.vlgmr.msra.gmra.mxu0 %vm1194_vm1, %v6494_v23 }
0x214e   : > { %3797 = vmatpush.msra.mxu2 %v5310_v14 }
0x21ca   : > { %v3650_v24 = vpop.f32.mrf.mxu0 }
0x21cb   : > { %5303 = vmatmul.msk.f32.vlgmr.msra.gmra.mxu1 %vm1194_vm1, %v3650_v24 }
0x2248   : > { %v3675_v27 = vpop.f32.mrf.mxu1 }
0x2249   : > { %v3678_v28 = vadd.f32 %v3675_v27, %v3489_v58 }
0x224b   : > { %v3684_v30 = vadd.f32 %v5565_v26, %v3678_v28 }
0x224d   : > { %v3685_v32 = vadd.f32 %v3684_v30, %v6386_v25 }
0x224f   : > { %v3690_v33 = vsel %vm1114_vm0, %v3685_v32, 0.0 }
0x2250   : > { %3691 = vadd.xlane.f32.xlu0 %v3690_v33 }
0x22c3   : > { %v3692_v34 = vpop.xlane.xlu0 %3691 }
0x22c4   : > { %v3693_v35 = vmul.f32 %v3692_v34, %v6165_v5  ;;  %v5569_v34 = vld [vmem:[%s5951_s20 + $0x1] ss:$0 sm:$0xff] }
0x22c6   : > { %v3694_v36 = vsub.f32 %v3685_v32, %v3693_v35  ;;  %v5568_v32 = vld [vmem:[%s6869_s5 + $0x1] ss:$0 sm:$0xff] }
0x22c8   : > { %v3695_v37 = vmul.f32 %v3694_v36, %v3694_v36 }
0x22ca   : > { %v3696_v8 = vsel %vm1114_vm0, %v3695_v37, 0.0 }
0x22cb   : > { %3697 = vadd.xlane.f32.xlu1 %v3696_v8  ;;  %v5570_v8 = vld [vmem:[%s6870_s9 + $0x4] ss:$0 sm:$0xff] }
0x233e   : > { %v3698_v15 = vpop.xlane.xlu1 %3697 }
0x233f   : > { %v3699_v39 = vmul.f32 %v3698_v15, %v6165_v5 }
0x2341   : > { %v3700_v40 = vadd.f32 1e-06, %v3699_v39 }
0x2343   : > { %5655 = vrsqrt.f32 %v3700_v40  ;;  %vm3707_vm2 = vweird.f32 %v3700_v40 }
0x2349   : > { %v5656_v0 = vpop.eup %5655 }
0x234a   : > { %v3702_v41 = vmul.f32 %v5656_v0, %v3700_v40  ;;  %vm3708_vm15 = vweird.f32 %v5656_v0  ;;  %v5571_v40 = vld [vmem:[%s6871_s13 + $0x4] ss:$0 sm:$0xff] }
0x234b   : > { %vm3709_vm3 = vmor %vm3707_vm2, %vm3708_vm15 }
0x234c   : > { %v3703_v9 = vmul.f32 %v5656_v0, %v3702_v41 }
0x234e   : > { %v3704_v43 = vmul.f32 0.5, %v3703_v9 }
0x2350   : > { %v3705_v45 = vsub.f32 1.5, %v3704_v43  ;;  %v6542_v43 = vld [vmem:[%s6212_s10] sm:$0xff]  ;;  %s6892_s10 = sld [smem:[#allocation22_spill]] }
0x2352   : > { %v3706_v46 = vmul.f32 %v5656_v0, %v3705_v45 }
0x2354   : > { %v3710_v50 = vsel %vm3709_vm3, %v5656_v0, %v3706_v46 }
0x2355   : > { %v3711_v51 = vmul.f32 %v3710_v50, %v3694_v36  ;;  %v5324_v50 = vld [vmem:[%s6874_s26 + $0x90] sm:$0xff] }
0x2357   : > { %v3715_v52 = vmul.f32 %v5566_v48, %v3711_v51  ;;  %v5325_v48 = vld [vmem:[%s6874_s26 + $0x98] sm:$0xff]  ;;  %v5323_v51 = vld [vmem:[%s6874_s26 + $0x88] sm:$0xff] }
0x2358   : > { %3854 = vmatpush.msrb.mxu0 %v5325_v48 }
0x2359   : > { %v3719_v53 = vadd.f32 %v5567_v38, %v3715_v52  ;;  %v5322_v38 = vld [vmem:[%s6874_s26 + $0x80] sm:$0xff]  ;;  %v5341_v52 = vld [vmem:[%s5876_s27 + $0xb8] sm:$0xff] }
0x235a   : > { %3855 = vmatpush.msrb.mxu0 %v5324_v50 }
0x235b   : > { %v3720_v55 = vadd.f32 %v3719_v53, %v6386_v25  ;;  %v5317_v25 = vld [vmem:[%s5876_s27 + $0x88] sm:$0xff]  ;;  %v5340_v53 = vld [vmem:[%s5876_s27 + $0xb0] sm:$0xff] }
0x235c   : > { %3826 = vmatpush.msra.mxu3 %v5317_v25  ;;  %3856 = vmatpush.msrb.mxu0 %v5323_v51 }
0x235d   : > { %v3725_v56 = vsel %vm1114_vm0, %v3720_v55, 0.0 }
0x235e   : > { %3726 = vadd.xlane.f32.xlu2 %v3725_v56  ;;  %3827 = vmatpush.msra.mxu3 %v5316_v3  ;;  %v5338_v56 = vld [vmem:[%s5876_s27 + $0xa0] sm:$0xff] }
0x235f   : > { %5321 = vmatmul.msk.f32.vlgmr.msra.gmra.mxu3 %vm1114_vm0, %v6516_v6  ;;  %3857 = vmatpush.msrb.mxu0 %v5322_v38  ;;  %v5574_v3 = vld [vmem:[%s6870_s9 + $0x5] ss:$0 sm:$0xff] }
0x2360   : > { %3959 = vmatpush.msrb.mxu3 %v5335_v10  ;;  %5327 = vmatmul.msk.f32.vlgmr.msrb.gmra.mxu0 %vm1114_vm0, %v6516_v6 }
0x2361   : > { %3989 = vmatpush.msra.mxu0 %v5341_v52 }
0x2362   : > { %3960 = vmatpush.msrb.mxu3 %v5334_v12  ;;  %v5347_v12 = vld [vmem:[%s6874_s26 + $0xb8] sm:$0xff] }
0x2363   : > { %3990 = vmatpush.msra.mxu0 %v5340_v53 }
0x2364   : > { %3961 = vmatpush.msrb.mxu3 %v5333_v42  ;;  %v5345_v42 = vld [vmem:[%s6874_s26 + $0xa8] sm:$0xff] }
0x2366   : > { %3962 = vmatpush.msrb.mxu3 %v5332_v17 }
0x23d1   : > { %v3727_v58 = vpop.xlane.xlu2 %3726 }
0x23d2   : > { %v3728_v59 = vmul.f32 %v3727_v58, %v6165_v5 }
0x23d4   : > { %v3729_v61 = vsub.f32 %v3720_v55, %v3728_v59  ;;  %v5339_v55 = vld [vmem:[%s5876_s27 + $0xa8] sm:$0xff] }
0x23d5   : > { %3991 = vmatpush.msra.mxu0 %v5339_v55 }
0x23d6   : > { %v3730_v62 = vmul.f32 %v3729_v61, %v3729_v61 }
0x23d7   : > { %3992 = vmatpush.msra.mxu0 %v5338_v56  ;;  %v5365_v56 = vld [vmem:[%s5876_s27 + $0xd8] sm:$0xff] }
0x23d8   : > { %v3731_v63 = vsel %vm1114_vm0, %v3730_v62, 0.0  ;;  %5343 = vmatmul.msk.f32.vlgmr.msra.gmra.mxu0 %vm1114_vm0, %v6516_v6 }
0x23d9   : > { %3732 = vadd.xlane.f32.xlu0 %v3731_v63 }
0x23dd   : > { %v3859_v2 = vpop.f32.mrf.mxu0 }
0x23de   : > { %v3860_v25 = vadd.f32 %v5573_v1, %v3859_v2 }
0x23e0   : > { %3930 = vmatpush.msrb.mxu2 %v3860_v25 }
0x23e2   : > { %v3829_v15 = vpop.f32.mrf.mxu3 }
0x23e3   : > { %v3830_v39 = vadd.f32 %v5570_v8, %v3829_v15  ;;  %v5356_v15 = vld [vmem:[%s6868_s11 + $0xc0] sm:$0xff] }
0x23e5   : > { %5328 = vmatpush.xpose.msk.msrb.mxu1 %vm1194_vm1, %v3830_v39 }
0x23e9   : > { %4019 = vmatpush.msra.mxu1 %v5347_v12 }
0x23eb   : > { %4020 = vmatpush.msra.mxu1 %v5346_v13 }
0x23ed   : > { %4021 = vmatpush.msra.mxu1 %v5345_v42 }
0x244c   : > { %v3733_v18 = vpop.xlane.xlu0 %3732 }
0x244d   : > { %v3734_v19 = vmul.f32 %v3733_v18, %v6165_v5  ;;  %v5344_v18 = vld [vmem:[%s6874_s26 + $0xa0] sm:$0xff] }
0x244e   : > { %4022 = vmatpush.msra.mxu1 %v5344_v18  ;;  %v5370_v18 = vld [vmem:[%s6874_s26 + $0xd0] sm:$0xff] }
0x244f   : > { %v3735_v20 = vadd.f32 1e-06, %v3734_v19 }
0x2451   : > { %5657 = vrsqrt.f32 %v3735_v20  ;;  %vm3742_vm6 = vweird.f32 %v3735_v20 }
0x2455   : > { %v3994_v7 = vpop.f32.mrf.mxu0 }
0x2456   : > { %v3995_v10 = vadd.f32 %v5574_v3, %v3994_v7 }
0x2457   : > { %v5658_v22 = vpop.eup %5657 }
0x2458   : > { %v3737_v24 = vmul.f32 %v5658_v22, %v3735_v20  ;;  %vm3743_vm4 = vweird.f32 %v5658_v22 }
0x2459   : > { %vm3744_vm7 = vmor %vm3742_vm6, %vm3743_vm4 }
0x245a   : > { %v3738_v26 = vmul.f32 %v5658_v22, %v3737_v24 }
0x245c   : > { %v3739_v27 = vmul.f32 0.5, %v3738_v26 }
0x245e   : > { %v3740_v28 = vsub.f32 1.5, %v3739_v27 }
0x2460   : > { %v3741_v30 = vmul.f32 %v5658_v22, %v3740_v28 }
0x2462   : > { %v3745_v33 = vsel %vm3744_vm7, %v5658_v22, %v3741_v30 }
0x2463   : > { %v3746_v35 = vmul.f32 %v3745_v33, %v3729_v61  ;;  %v5359_v33 = vld [vmem:[%s6868_s11 + $0xd8] sm:$0xff] }
0x2465   : > { %v3750_v36 = vmul.f32 %v5568_v32, %v3746_v35  ;;  %v5572_v35 = vld [vmem:[%s6871_s13 + $0x5] ss:$0 sm:$0xff] }
0x2467   : > { %v6531_v37 = vadd.f32 %v5569_v34, %v3750_v36  ;;  %v5358_v34 = vld [vmem:[%s6868_s11 + $0xd0] sm:$0xff]  ;;  %v5357_v36 = vld [vmem:[%s6868_s11 + $0xc8] sm:$0xff] }
0x2469   : > { %5315 = vmatmul.msk.f32.vlgmr.msra.gmra.mxu2 %vm1114_vm0, %v6531_v37  ;;  %5337 = vmatmul.msk.f32.vlgmr.msrb.gmra.mxu3 %vm1114_vm0, %v6531_v37 }
0x246a   : > { %5350 = vmatpush.xpose.msk.msra.mxu2 %vm1194_vm1, %v3995_v10 }
0x24ec   : > { %v3799_v0 = vpop.f32.mrf.mxu2  ;;  %v3964_v8 = vpop.f32.mrf.mxu3 }
0x24ed   : > { %v3800_v41 = vadd.f32 %v5571_v40, %v3799_v0  ;;  %v3965_v39 = vadd.f32 %v5572_v35, %v3964_v8  ;;  %v5331_v40 = vld [vmem:[%s6877_s23 + $0x20] sm:$0xff] }
0x24ee   : > { %v5576_v0 = vld [vmem:[%s6875_s2 + $0x5] ss:$0 sm:$0xff] }
0x24ef   : > { %5329 = vmatmul.msk.f32.vlgmr.msrb.gmra.mxu1 %vm1194_vm1, %v3800_v41 }
0x24f0   : > { %4143 = vmatpush.msrb.mxu1 %v5331_v40 }
0x24f7   : > { %5349 = vmatmul.msk.f32.vlgmr.msra.gmra.mxu1 %vm1114_vm0, %v6516_v6 }
0x256c   : > { %v3885_v9 = vpop.f32.mrf.mxu1 }
0x256d   : > { %v3886_v45 = vadd.f32 %v6542_v43, %v3885_v9 }
0x256f   : > { %v3888_v46 = vsel %vm1194_vm1, %v3886_v45, -inf }
0x2570   : > { %3889 = vmax.xlane.f32.xlu1 %v3888_v46 }
0x2574   : > { %v4024_v41 = vpop.f32.mrf.mxu1 }
0x2575   : > { %v4025_v9 = vadd.f32 %v5576_v0, %v4024_v41  ;;  %v5578_v0 = vld [vmem:[%s6875_s2 + $0x6] ss:$0 sm:$0xff] }
0x2577   : > { %4095 = vmatpush.msra.mxu3 %v4025_v9 }
0x2579   : > { %4200 = vmatpush.msrb.mxu3 %v5365_v56  ;;  %v5387_v56 = vld [vmem:[%s5876_s27 + $0xf0] sm:$0xff] }
0x25e3   : > { %v3890_v58 = vpop.xlane.xlu1 %3889 }
0x25e4   : > { %v3891_v59 = vsub.f32 %v3886_v45, %v3890_v58  ;;  %v5364_v58 = vld [vmem:[%s5876_s27 + $0xd0] sm:$0xff] }
0x25e5   : > { %4201 = vmatpush.msrb.mxu3 %v5364_v58  ;;  %v5377_v58 = vld [vmem:[%s6877_s23 + $0x30] sm:$0xff] }
0x25e6   : > { %v3892_v61 = vmul.f32 1.442695, %v3891_v59  ;;  %v5363_v59 = vld [vmem:[%s5876_s27 + $0xc8] sm:$0xff] }
0x25e7   : > { %4202 = vmatpush.msrb.mxu3 %v5363_v59  ;;  %v5386_v59 = vld [vmem:[%s5876_s27 + $0xe8] sm:$0xff] }
0x25e8   : > { %5659 = vpow2.f32 %v3892_v61  ;;  %v5362_v61 = vld [vmem:[%s5876_s27 + $0xc0] sm:$0xff] }
0x25e9   : > { %4203 = vmatpush.msrb.mxu3 %v5362_v61  ;;  %v5385_v61 = vld [vmem:[%s5876_s27 + $0xe0] sm:$0xff] }
0x25ee   : > { %v5660_v62 = vpop.eup %5659 }
0x25ef   : > { %v3894_v63 = vsel %vm1194_vm1, %v5660_v62, 0.0 }
0x25f0   : > { %3895 = vadd.xlane.f32.xlu2 %v3894_v63 }
0x2663   : > { %v3896_v11 = vpop.xlane.xlu2 %3895 }
0x2664   : > { %5661 = vrcp.f32 %v3896_v11  ;;  %v3908_v20 = vand.u32 2147483648, %v3896_v11  ;;  %v3906_v24 = vand.u32 2147483647, %v3896_v11  ;;  %vm3902_vm9 = vweird.f32 %v3896_v11 }
0x2666   : > { %v3909_v27 = vor.u32 1.1754944e-38, %v3908_v20  ;;  %vm3907_vm11 = vcmp.eq.f32.partialorder %v3906_v24, 8.507059e+37  ;;  %v5368_v20 = vld [vmem:[%s6874_s26 + $0xc0] sm:$0xff] }
0x266a   : > { %v5662_v14 = vpop.eup %5661 }
0x266b   : > { %v3898_v17 = vmul.f32 %v5662_v14, %v3896_v11  ;;  %vm3903_vm8 = vweird.f32 %v5662_v14 }
0x266c   : > { %vm3904_vm10 = vmor %vm3902_vm9, %vm3903_vm8 }
0x266d   : > { %v3899_v19 = vsub.f32 1.0, %v3898_v17  ;;  %v5371_v17 = vld [vmem:[%s6874_s26 + $0xd8] sm:$0xff] }
0x266f   : > { %v3900_v22 = vmul.f32 %v5662_v14, %v3899_v19  ;;  %v5369_v19 = vld [vmem:[%s6874_s26 + $0xc8] sm:$0xff] }
0x2671   : > { %v3901_v26 = vadd.f32 %v5662_v14, %v3900_v22  ;;  %v5382_v22 = vld [vmem:[%s6868_s11 + $0xf8] sm:$0xff] }
0x2673   : > { %v3905_v28 = vsel %vm3904_vm10, %v5662_v14, %v3901_v26  ;;  %v5353_v14 = vld [vmem:[%s6877_s23 + $0x28] sm:$0xff]  ;;  %v5381_v26 = vld [vmem:[%s6868_s11 + $0xf0] sm:$0xff] }
0x2674   : > { %v3910_v30 = vsel %vm3907_vm11, %v3909_v27, %v3905_v28  ;;  %4120 = vmatpush.msrb.mxu0 %v5353_v14  ;;  %v5380_v27 = vld [vmem:[%s6868_s11 + $0xe8] sm:$0xff]  ;;  %v5577_v28 = vld [vmem:[%s6870_s9 + $0x6] ss:$0 sm:$0xff] }
0x2675   : > { %v6568_v32 = vmul.f32 %v5660_v62, %v3910_v30  ;;  %v5379_v30 = vld [vmem:[%s6868_s11 + $0xe0] sm:$0xff] }
0x2676   : > { %4230 = vmatpush.msra.mxu0 %v5371_v17  ;;  %v5580_v17 = vld [vmem:[%s6870_s9 + $0x7] ss:$0 sm:$0xff] }
0x2677   : > { %5330 = vmatmul.msk.f32.vlgmr.msrb.gmra.mxu2 %vm1194_vm1, %v6568_v32 }
0x2678   : > { %4170 = vmatpush.msrb.mxu2 %v5359_v33  ;;  %4231 = vmatpush.msra.mxu0 %v5370_v18  ;;  %v5575_v33 = vld [vmem:[%s6871_s13 + $0x6] ss:$0 sm:$0xff] }
0x267a   : > { %4171 = vmatpush.msrb.mxu2 %v5358_v34  ;;  %4232 = vmatpush.msra.mxu0 %v5369_v19 }
0x267c   : > { %4172 = vmatpush.msrb.mxu2 %v5357_v36  ;;  %4233 = vmatpush.msra.mxu0 %v5368_v20 }
0x267e   : > { %4173 = vmatpush.msrb.mxu2 %v5356_v15 }
0x267f   : > { %5351 = vmatmul.msk.f32.vlgmr.msra.gmra.mxu2 %vm1194_vm1, %v3965_v39 }
0x2687   : > { %5361 = vmatmul.msk.f32.vlgmr.msrb.gmra.mxu2 %vm1114_vm0, %v6531_v37 }
0x26fa   : > { %v3932_v45 = vpop.f32.mrf.mxu2 }
0x26fb   : > { %5355 = vmatmul.msk.f32.vlgmr.msrb.gmra.mxu1 %vm1194_vm1, %v3932_v45 }
0x2702   : > { %v4050_v46 = vpop.f32.mrf.mxu2 }
0x2703   : > { %v4051_v48 = vadd.f32 %v6542_v43, %v4050_v46 }
0x2705   : > { %v4053_v50 = vsel %vm1194_vm1, %v4051_v48, -inf }
0x2706   : > { %4054 = vmax.xlane.f32.xlu0 %v4053_v50 }
0x270a   : > { %v4175_v35 = vpop.f32.mrf.mxu2 }
0x270b   : > { %v4176_v8 = vadd.f32 %v5575_v33, %v4175_v35  ;;  %v5394_v35 = vld [vmem:[%s6874_s26 + $0xf8] sm:$0xff] }
0x2778   : > { %v4145_v15 = vpop.f32.mrf.mxu1 }
0x2779   : > { %v4055_v51 = vpop.xlane.xlu0 %4054 }
0x277a   : > { %v4056_v38 = vsub.f32 %v4051_v48, %v4055_v51 }
0x277c   : > { %v4057_v52 = vmul.f32 1.442695, %v4056_v38 }
0x277e   : > { %5663 = vpow2.f32 %v4057_v52 }
0x2784   : > { %v5664_v53 = vpop.eup %5663 }
0x2785   : > { %v4059_v55 = vsel %vm1194_vm1, %v5664_v53, 0.0 }
0x2786   : > { %4060 = vadd.xlane.f32.xlu1 %v4059_v55  ;;  %v5388_v55 = vld [vmem:[%s5876_s27 + $0xf8] sm:$0xff] }
0x27f9   : > { %v4061_v62 = vpop.xlane.xlu1 %4060 }
0x27fa   : > { %5665 = vrcp.f32 %v4061_v62  ;;  %v4073_v25 = vand.u32 2147483648, %v4061_v62  ;;  %v4071_v7 = vand.u32 2147483647, %v4061_v62  ;;  %vm4067_vm13 = vweird.f32 %v4061_v62 }
0x27fc   : > { %v4074_v11 = vor.u32 1.1754944e-38, %v4073_v25  ;;  %vm4072_vm15 = vcmp.eq.f32.partialorder %v4071_v7, 8.507059e+37 }
0x2800   : > { %v5666_v63 = vpop.eup %5665 }
0x2801   : > { %v4063_v1 = vmul.f32 %v5666_v63, %v4061_v62  ;;  %vm4068_vm12 = vweird.f32 %v5666_v63 }
0x2802   : > { %vm4069_vm14 = vmor %vm4067_vm13, %vm4068_vm12 }
0x2803   : > { %v4064_v2 = vsub.f32 1.0, %v4063_v1 }
0x2805   : > { %v4065_v3 = vmul.f32 %v5666_v63, %v4064_v2 }
0x2807   : > { %v4066_v10 = vadd.f32 %v5666_v63, %v4065_v3 }
0x2809   : > { %v4070_v12 = vsel %vm4069_vm14, %v5666_v63, %v4066_v10 }
0x280a   : > { %v4075_v13 = vsel %vm4072_vm15, %v4074_v11, %v4070_v12 }
0x280b   : > { %v6590_v42 = vmul.f32 %v5664_v53, %v4075_v13 }
0x280d   : > { %5352 = vmatmul.msk.f32.vlgmr.msra.gmra.mxu3 %vm1194_vm1, %v6590_v42 }
0x280e   : > { %4331 = vmatpush.msra.mxu3 %v5377_v58 }
0x2815   : > { %5367 = vmatmul.msk.f32.vlgmr.msrb.gmra.mxu3 %vm1114_vm0, %v6516_v6 }
0x2890   : > { %v4097_v24 = vpop.f32.mrf.mxu3 }
0x2891   : > { %5354 = vmatmul.msk.f32.vlgmr.msrb.gmra.mxu0 %vm1194_vm1, %v4097_v24 }
0x2892   : > { %4359 = vmatpush.msrb.mxu0 %v5382_v22  ;;  %v5579_v22 = vld [vmem:[%s6871_s13 + $0x7] ss:$0 sm:$0xff] }
0x2894   : > { %4360 = vmatpush.msrb.mxu0 %v5381_v26 }
0x2896   : > { %4361 = vmatpush.msrb.mxu0 %v5380_v27 }
0x2898   : > { %v4205_v34 = vpop.f32.mrf.mxu3  ;;  %4362 = vmatpush.msrb.mxu0 %v5379_v30 }
0x2899   : > { %v4206_v36 = vadd.f32 %v5577_v28, %v4205_v34  ;;  %5373 = vmatmul.msk.f32.vlgmr.msra.gmra.mxu0 %vm1114_vm0, %v6516_v6 }
0x289b   : > { %5374 = vmatpush.xpose.msk.msra.mxu1 %vm1194_vm1, %v4206_v36  ;;  %v5393_v36 = vld [vmem:[%s6874_s26 + $0xf0] sm:$0xff] }
0x289e   : > { %5375 = vmatmul.msk.f32.vlgmr.msra.gmra.mxu1 %vm1194_vm1, %v4176_v8  ;;  %v5392_v8 = vld [vmem:[%s6874_s26 + $0xe8] sm:$0xff] }
0x289f   : > { %4389 = vmatpush.msrb.mxu1 %v5388_v55 }
0x28a1   : > { %5384 = vmatmul.msk.f32.vlgmr.msrb.gmra.mxu0 %vm1114_vm0, %v6531_v37  ;;  %4390 = vmatpush.msrb.mxu1 %v5387_v56 }
0x28a3   : > { %4391 = vmatpush.msrb.mxu1 %v5386_v59 }
0x28a5   : > { %4392 = vmatpush.msrb.mxu1 %v5385_v61 }
0x28a6   : > { %5390 = vmatmul.msk.f32.vlgmr.msrb.gmra.mxu1 %vm1114_vm0, %v6516_v6 }
0x290e   : > { %v4122_v39 = vpop.f32.mrf.mxu0 }
0x290f   : > { %v4146_v40 = vadd.f32 %v4145_v15, %v4122_v39  ;;  %v5391_v15 = vld [vmem:[%s6874_s26 + $0xe0] sm:$0xff] }
0x2916   : > { %v4235_v41 = vpop.f32.mrf.mxu0 }
0x2917   : > { %v4236_v9 = vadd.f32 %v5578_v0, %v4235_v41 }
0x2919   : > { %4306 = vmatpush.msra.mxu2 %v4236_v9  ;;  %v5581_v9 = vld [vmem:[%s6875_s2 + $0x7] ss:$0 sm:$0xff] }
0x291b   : > { %v4261_v45 = vpop.f32.mrf.mxu1  ;;  %4419 = vmatpush.msrb.mxu2 %v5394_v35 }
0x291c   : > { %v4262_v46 = vadd.f32 %v6542_v43, %v4261_v45 }
0x291d   : > { %4420 = vmatpush.msrb.mxu2 %v5393_v36 }
0x291e   : > { %v4264_v48 = vsel %vm1194_vm1, %v4262_v46, -inf  ;;  %v4364_v24 = vpop.f32.mrf.mxu0 }
0x291f   : > { %4265 = vmax.xlane.f32.xlu2 %v4264_v48  ;;  %v4365_v26 = vadd.f32 %v5579_v22, %v4364_v24  ;;  %4421 = vmatpush.msrb.mxu2 %v5392_v8  ;;  %v5400_v48 = vld [vmem:[%s6877_s23 + $0x38] sm:$0xff]  ;;  %v5584_v8 = vld [vmem:[%s6892_s10 + $0x1] ss:$0 sm:$0xff]  ;;  %s5787_s10 = smov 24  }
0x2920   : > { %4520 = vmatpush.msra.mxu1 %v5400_v48  ;;  %v5411_v48 = vld [vmem:[%s6893_s1 + $0x38] sm:$0xff] }
0x2921   : > { %4422 = vmatpush.msrb.mxu2 %v5391_v15 }
0x2923   : > { %v4394_v18 = vpop.f32.mrf.mxu1 }
0x2924   : > { %v4395_v19 = vadd.f32 %v5580_v17, %v4394_v18 }
0x2926   : > { %5397 = vmatpush.xpose.msk.msrb.mxu3 %vm1194_vm1, %v4395_v19 }
0x2992   : > { %v4266_v50 = vpop.xlane.xlu2 %4265 }
0x2993   : > { %v4267_v51 = vsub.f32 %v4262_v46, %v4266_v50 }
0x2995   : > { %v4268_v38 = vmul.f32 1.442695, %v4267_v51 }
0x2997   : > { %5667 = vpow2.f32 %v4268_v38 }
0x299d   : > { %v5668_v52 = vpop.eup %5667 }
0x299e   : > { %v4270_v53 = vsel %vm1194_vm1, %v5668_v52, 0.0 }
0x299f   : > { %4271 = vadd.xlane.f32.xlu0 %v4270_v53 }
0x2a12   : > { %v4272_v62 = vpop.xlane.xlu0 %4271 }
0x2a13   : > { %5669 = vrcp.f32 %v4272_v62  ;;  %v4284_v25 = vand.u32 2147483648, %v4272_v62  ;;  %v4282_v7 = vand.u32 2147483647, %v4272_v62  ;;  %vm4278_vm3 = vweird.f32 %v4272_v62 }
0x2a15   : > { %v4285_v11 = vor.u32 1.1754944e-38, %v4284_v25  ;;  %vm4283_vm6 = vcmp.eq.f32.partialorder %v4282_v7, 8.507059e+37 }
0x2a19   : > { %v5670_v63 = vpop.eup %5669 }
0x2a1a   : > { %v4274_v1 = vmul.f32 %v5670_v63, %v4272_v62  ;;  %vm4279_vm2 = vweird.f32 %v5670_v63 }
0x2a1b   : > { %vm4280_vm4 = vmor %vm4278_vm3, %vm4279_vm2 }
0x2a1c   : > { %v4275_v2 = vsub.f32 1.0, %v4274_v1  ;;  %v5582_v1 = vld [vmem:[%s6879_s17 + $0x1] ss:$0 sm:$0xff] }
0x2a1e   : > { %v4276_v3 = vmul.f32 %v5670_v63, %v4275_v2 }
0x2a20   : > { %v4277_v10 = vadd.f32 %v5670_v63, %v4276_v3 }
0x2a22   : > { %v4281_v12 = vsel %vm4280_vm4, %v5670_v63, %v4277_v10 }
0x2a23   : > { %v4286_v13 = vsel %vm4283_vm6, %v4285_v11, %v4281_v12  ;;  %vm1946_vm6 = vcmask 130048  }
0x2a24   : > { %v6625_v14 = vmul.f32 %v5668_v52, %v4286_v13 }
0x2a26   : > { %5376 = vmatmul.msk.f32.vlgmr.msra.gmra.mxu2 %vm1194_vm1, %v6625_v14 }
0x2a27   : > { %4639 = vmatpush.msra.mxu2 %v5411_v48 }
0x2a2e   : > { %5396 = vmatmul.msk.f32.vlgmr.msrb.gmra.mxu2 %vm1114_vm0, %v6516_v6 }
0x2aa9   : > { %v4308_v20 = vpop.f32.mrf.mxu2 }
0x2aaa   : > { %5378 = vmatmul.msk.f32.vlgmr.msra.gmra.mxu3 %vm1194_vm1, %v4308_v20 }
0x2ab1   : > { %v4424_v45 = vpop.f32.mrf.mxu2 }
0x2ab2   : > { %5398 = vmatmul.msk.f32.vlgmr.msrb.gmra.mxu3 %vm1194_vm1, %v4365_v26  ;;  %v4425_v46 = vadd.f32 %v5581_v9, %v4424_v45 }
0x2ab4   : > { %4495 = vmatpush.msra.mxu0 %v4425_v46 }
0x2b2d   : > { %v4333_v27 = vpop.f32.mrf.mxu3 }
0x2b2e   : > { %v4336_v28 = vadd.f32 %v4333_v27, %v4146_v40 }
0x2b35   : > { %v4450_v30 = vpop.f32.mrf.mxu3 }
0x2b36   : > { %v4451_v33 = vadd.f32 %v6542_v43, %v4450_v30 }
0x2b38   : > { %v4453_v34 = vsel %vm1194_vm1, %v4451_v33, -inf }
0x2b39   : > { %4454 = vmax.xlane.f32.xlu1 %v4453_v34  ;;  %v5583_v34 = vld [vmem:[%s6881_s4 + $0x1] ss:$0 sm:$0xff] }
0x2bac   : > { %v4455_v39 = vpop.xlane.xlu1 %4454 }
0x2bad   : > { %v4456_v40 = vsub.f32 %v4451_v33, %v4455_v39 }
0x2baf   : > { %v4457_v0 = vmul.f32 1.442695, %v4456_v40 }
0x2bb1   : > { %5671 = vpow2.f32 %v4457_v0 }
0x2bb7   : > { %v5672_v43 = vpop.eup %5671 }
0x2bb8   : > { %v4459_v41 = vsel %vm1194_vm1, %v5672_v43, 0.0 }
0x2bb9   : > { %4460 = vadd.xlane.f32.xlu2 %v4459_v41 }
0x2c2c   : > { %v4461_v50 = vpop.xlane.xlu2 %4460 }
0x2c2d   : > { %5673 = vrcp.f32 %v4461_v50  ;;  %v4473_v6 = vand.u32 2147483648, %v4461_v50  ;;  %v4471_v55 = vand.u32 2147483647, %v4461_v50  ;;  %vm4467_vm8 = vweird.f32 %v4461_v50 }
0x2c2f   : > { %v4474_v58 = vor.u32 1.1754944e-38, %v4473_v6  ;;  %vm4472_vm10 = vcmp.eq.f32.partialorder %v4471_v55, 8.507059e+37  ;;  %v5419_v6 = vld [vmem:[%s6885_s0 + $0x68] sm:$0xff] }
0x2c33   : > { %v5674_v51 = vpop.eup %5673 }
0x2c34   : > { %v4463_v38 = vmul.f32 %v5674_v51, %v4461_v50  ;;  %vm4468_vm7 = vweird.f32 %v5674_v51  ;;  %v5410_v50 = vld [vmem:[%s6893_s1 + $0x30] sm:$0xff] }
0x2c35   : > { %vm4469_vm9 = vmor %vm4467_vm8, %vm4468_vm7  ;;  %4640 = vmatpush.msra.mxu2 %v5410_v50  ;;  %vm1948_vm7 = vcmask 195584  }
0x2c36   : > { %v4464_v52 = vsub.f32 1.0, %v4463_v38  ;;  %v5421_v38 = vld [vmem:[%s6885_s0 + $0x78] sm:$0xff] }
0x2c37   : > { %4673 = vmatpush.msra.mxu3 %v5421_v38 }
0x2c38   : > { %v4465_v53 = vmul.f32 %v5674_v51, %v4464_v52  ;;  %v5420_v52 = vld [vmem:[%s6885_s0 + $0x70] sm:$0xff] }
0x2c39   : > { %4674 = vmatpush.msra.mxu3 %v5420_v52 }
0x2c3a   : > { %v4466_v56 = vadd.f32 %v5674_v51, %v4465_v53 }
0x2c3b   : > { %4675 = vmatpush.msra.mxu3 %v5419_v6 }
0x2c3c   : > { %v4470_v59 = vsel %vm4469_vm9, %v5674_v51, %v4466_v56  ;;  %v5408_v51 = vld [vmem:[%s6893_s1 + $0x20] sm:$0xff] }
0x2c3d   : > { %v4475_v61 = vsel %vm4472_vm10, %v4474_v58, %v4470_v59  ;;  %v5418_v56 = vld [vmem:[%s6885_s0 + $0x60] sm:$0xff]  ;;  %v5417_v59 = vld [vmem:[%s6885_s0 + $0x58] sm:$0xff] }
0x2c3e   : > { %v6645_v62 = vmul.f32 %v5672_v43, %v4475_v61  ;;  %4676 = vmatpush.msra.mxu3 %v5418_v56 }
0x2c40   : > { %5399 = vmatmul.msk.f32.vlgmr.msra.gmra.mxu0 %vm1194_vm1, %v6645_v62  ;;  %4677 = vmatpush.msra.mxu3 %v5417_v59 }
0x2cbd   : > { %v4497_v63 = vpop.f32.mrf.mxu0 }
0x2cbe   : > { %5401 = vmatmul.msk.f32.vlgmr.msra.gmra.mxu1 %vm1194_vm1, %v4497_v63 }
0x2d3b   : > { %v4522_v2 = vpop.f32.mrf.mxu1 }
0x2d3c   : > { %v4525_v25 = vadd.f32 %v4522_v2, %v4336_v28 }
0x2d3e   : > { %v4531_v3 = vadd.f32 %v5582_v1, %v4525_v25 }
0x2d40   : > { %v4532_v7 = vadd.f32 %v4531_v3, %v6531_v37 }
0x2d42   : > { %v4537_v10 = vsel %vm1114_vm0, %v4532_v7, 0.0 }
0x2d43   : > { %4538 = vadd.xlane.f32.xlu0 %v4537_v10 }
0x2db6   : > { %v4539_v11 = vpop.xlane.xlu0 %4538 }
0x2db7   : > { %v4540_v12 = vmul.f32 %v4539_v11, %v6165_v5  ;;  %v5586_v11 = vld [vmem:[%s5951_s20 + $0x1] ss:$0 sm:$0xff] }
0x2db9   : > { %v4541_v13 = vsub.f32 %v4532_v7, %v4540_v12  ;;  %v5585_v7 = vld [vmem:[%s6869_s5 + $0x1] ss:$0 sm:$0xff] }
0x2dbb   : > { %v4542_v17 = vmul.f32 %v4541_v13, %v4541_v13 }
0x2dbd   : > { %v4543_v18 = vsel %vm1114_vm0, %v4542_v17, 0.0 }
0x2dbe   : > { %4544 = vadd.xlane.f32.xlu1 %v4543_v18  ;;  %v5416_v18 = vld [vmem:[%s6885_s0 + $0x50] sm:$0xff] }
0x2dbf   : > { %4678 = vmatpush.msra.mxu3 %v5416_v18 }
0x2e31   : > { %v4545_v19 = vpop.xlane.xlu1 %4544 }
0x2e32   : > { %v4546_v20 = vmul.f32 %v4545_v19, %v6165_v5  ;;  %v5415_v19 = vld [vmem:[%s6885_s0 + $0x48] sm:$0xff] }
0x2e33   : > { %4679 = vmatpush.msra.mxu3 %v5415_v19 }
0x2e34   : > { %v4547_v22 = vadd.f32 1e-06, %v4546_v20  ;;  %v5414_v20 = vld [vmem:[%s6885_s0 + $0x40] sm:$0xff] }
0x2e35   : > { %4680 = vmatpush.msra.mxu3 %v5414_v20 }
0x2e36   : > { %5675 = vrsqrt.f32 %v4547_v22  ;;  %vm4554_vm12 = vweird.f32 %v4547_v22 }
0x2e3c   : > { %v5676_v24 = vpop.eup %5675 }
0x2e3d   : > { %v4549_v26 = vmul.f32 %v5676_v24, %v4547_v22  ;;  %vm4555_vm11 = vweird.f32 %v5676_v24  ;;  %v5587_v22 = vld [vmem:[%s6894_s28 + $0x1] ss:$0 sm:$0xff]  ;;  %s6711_s28 = sand.u32 1, %s5740_s16  }
0x2e3e   : > { %vm4556_vm13 = vmor %vm4554_vm12, %vm4555_vm11 }
0x2e3f   : > { %v4550_v27 = vmul.f32 %v5676_v24, %v4549_v26 }
0x2e41   : > { %v4551_v28 = vmul.f32 0.5, %v4550_v27 }
0x2e43   : > { %v4552_v30 = vsub.f32 1.5, %v4551_v28  ;;  %v5588_v28 = vld [vmem:[%s6887_s22 + $0x1] ss:$0 sm:$0xff]  ;;  %s5052_s22 = sshll.u32 %s6711_s28, 4 }
0x2e45   : > { %v4553_v33 = vmul.f32 %v5676_v24, %v4552_v30 }
0x2e47   : > { %v4557_v35 = vsel %vm4556_vm13, %v5676_v24, %v4553_v33 }
0x2e48   : > { %v4558_v36 = vmul.f32 %v4557_v35, %v4541_v13 }
0x2e4a   : > { %v4562_v15 = vmul.f32 %v5583_v34, %v4558_v36 }
0x2e4c   : > { %v4566_v39 = vadd.f32 %v5584_v8, %v4562_v15 }
0x2e4e   : > { %v4567_v40 = vadd.f32 %v4566_v39, %v6531_v37  ;;  %v5409_v37 = vld [vmem:[%s6893_s1 + $0x28] sm:$0xff]  ;;  %s5051_s1 = sshll.u32 %s6711_s28, 3 }
0x2e4f   : > { %4641 = vmatpush.msra.mxu2 %v5409_v37  ;;  %s1073_s6 = scalar_lea.vmem [#allocation2], %s5051_s1 }
0x2e50   : > { %v4570_v0 = vsel %vm1114_vm0, %v4567_v40, 0.0 }
0x2e51   : > { %4571 = vadd.xlane.f32.xlu2 %v4570_v0  ;;  %4642 = vmatpush.msra.mxu2 %v5408_v51 }
0x2ec4   : > { %v4572_v43 = vpop.xlane.xlu2 %4571 }
0x2ec5   : > { %v4573_v41 = vmul.f32 %v4572_v43, %v6165_v5 }
0x2ec7   : > { %v4574_v9 = vsub.f32 %v4567_v40, %v4573_v41 }
0x2ec9   : > { %v4575_v45 = vmul.f32 %v4574_v9, %v4574_v9 }
0x2ecb   : > { %v4576_v46 = vsel %vm1114_vm0, %v4575_v45, 0.0 }
0x2ecc   : > { %4577 = vadd.xlane.f32.xlu0 %v4576_v46  ;;  %v5590_v46 = vld [vmem:[%s6891_s12 + $0x1] ss:$0 sm:$0xff] }
0x2f3f   : > { %v4578_v53 = vpop.xlane.xlu0 %4577 }
0x2f40   : > { %v4579_v55 = vmul.f32 %v4578_v53, %v6165_v5 }
0x2f42   : > { %v4580_v58 = vadd.f32 1e-06, %v4579_v55 }
0x2f44   : > { %5677 = vrsqrt.f32 %v4580_v58  ;;  %vm4587_vm15 = vweird.f32 %v4580_v58 }
0x2f4a   : > { %v5678_v61 = vpop.eup %5677 }
0x2f4b   : > { %v4582_v63 = vmul.f32 %v5678_v61, %v4580_v58  ;;  %vm4588_vm14 = vweird.f32 %v5678_v61 }
0x2f4c   : > { %vm4589_vm2 = vmor %vm4587_vm15, %vm4588_vm14 }
0x2f4d   : > { %v4583_v1 = vmul.f32 %v5678_v61, %v4582_v63 }
0x2f4f   : > { %v4584_v2 = vmul.f32 0.5, %v4583_v1 }
0x2f51   : > { %v4585_v25 = vsub.f32 1.5, %v4584_v2 }
0x2f53   : > { %v4586_v3 = vmul.f32 %v5678_v61, %v4585_v25 }
0x2f55   : > { %v4590_v10 = vsel %vm4589_vm2, %v5678_v61, %v4586_v3 }
0x2f56   : > { %v4591_v12 = vmul.f32 %v4590_v10, %v4574_v9 }
0x2f58   : > { %v4595_v13 = vmul.f32 %v5585_v7, %v4591_v12 }
0x2f5a   : > { %v4599_v17 = vadd.f32 %v5586_v11, %v4595_v13 }
0x2f5c   : > { %5413 = vmatmul.msk.f32.vlgmr.msra.gmra.mxu2 %vm1114_vm0, %v4599_v17 }
0x2fdf   : > { %v4644_v24 = vpop.f32.mrf.mxu2 }
0x2fe0   : > { %v4645_v26 = vadd.f32 %v5587_v22, %v4644_v24 }
0x2fe2   : > { %v4647_v27 = vmax.f32 %v4645_v26, 0.0 }
0x2fe4   : > { %5423 = vmatmul.msk.f32.vlgmr.msra.gmra.mxu3 %vm2832_vm5, %v4647_v27 }
0x3067   : > { %v4682_v30 = vpop.f32.mrf.mxu3 }
0x3068   : > { %v4683_v33 = vadd.f32 %v5588_v28, %v4682_v30 }
0x306a   : > { %v4685_v34 = vadd.f32 %v4683_v33, %v4599_v17  ;;  %v5591_v33 = vld [vmem:[%s6869_s5 + $0x1] ss:$0 sm:$0xff] }
0x306c   : > { %v4690_v35 = vsel %vm1114_vm0, %v4685_v34, 0.0 }
0x306d   : > { %4691 = vadd.xlane.f32.xlu1 %v4690_v35  ;;  %v5592_v35 = vld [vmem:[%s5951_s20 + $0x1] ss:$0 sm:$0xff] }
0x3086   : > { %1936 = vrot.lane.b32.xlu1 %v6099_v31, %s5785_s18 }
0x308e   : > { %2778 = vrot.lane.b32.xlu1 %v6298_v21, %s5786_s15 }
0x3096   : > { %3758 = vrot.lane.b32.xlu1 %v6480_v47, %s5786_s15 }
0x309e   : > { %4600 = vrot.lane.b32.xlu1 %v6590_v42, %s5785_s18 }
0x30a6   : > { %4606 = vrot.lane.b32.xlu1 %v6645_v62, %s5787_s10 }
0x30e0   : > { %v4692_v36 = vpop.xlane.xlu1 %4691 }
0x30e1   : > { %v4693_v8 = vmul.f32 %v4692_v36, %v6165_v5 }
0x30e3   : > { %v4694_v15 = vsub.f32 %v4685_v34, %v4693_v8 }
0x30e5   : > { %v4695_v39 = vmul.f32 %v4694_v15, %v4694_v15 }
0x30e7   : > { %v4696_v31 = vsel %vm1114_vm0, %v4695_v39, 0.0 }
0x30e8   : > { %4697 = vadd.xlane.f32.xlu2 %v4696_v31 }
0x30f8   : > { %v1937_v6 = vpop.permute.xlu1 %1936 }
0x3100   : > { %1939 = vrot.lane.b32.xlu2 %v6136_v16, %s5786_s15  ;;  %v5589_v16 = vld [vmem:[%s6889_s7 + $0x1] ss:$0 sm:$0xff]  ;;  %s4775_s7 = sshll.u32 %s1073_s6, 4  ;;  %s4776_s7 = int_to_ptr.vmem [resolvable:$true] %s4775_s7 }
0x3108   : > { %2775 = vrot.lane.b32.xlu2 %v6263_v29, %s5785_s18 }
0x3110   : > { %3755 = vrot.lane.b32.xlu2 %v6439_v44, %s5785_s18  ;;  %s6718_s18 = scalar_lea.vmem [#allocation4], %s5052_s22 }
0x315b   : > { %v4698_v21 = vpop.xlane.xlu2 %4697 }
0x315c   : > { %v4699_v47 = vmul.f32 %v4698_v21, %v6165_v5 }
0x315e   : > { %v4700_v42 = vadd.f32 1e-06, %v4699_v47 }
0x3160   : > { %5679 = vrsqrt.f32 %v4700_v42  ;;  %vm4707_vm3 = vweird.f32 %v4700_v42 }
0x3163   : > { %v1940_v56 = vpop.permute.xlu2 %1939 }
0x3166   : > { %v5680_v62 = vpop.eup %5679 }
0x3167   : > { %v4702_v40 = vmul.f32 %v5680_v62, %v4700_v42  ;;  %vm4708_vm5 = vweird.f32 %v5680_v62 }
0x3168   : > { %vm4709_vm4 = vmor %vm4707_vm3, %vm4708_vm5 }
0x3169   : > { %v4703_v0 = vmul.f32 %v5680_v62, %v4702_v40 }
0x316b   : > { %v4704_v43 = vmul.f32 0.5, %v4703_v0 }
0x316d   : > { %v4705_v41 = vsub.f32 1.5, %v4704_v43 }
0x316f   : > { %v4706_v9 = vmul.f32 %v5680_v62, %v4705_v41 }
0x3171   : > { %v4710_v45 = vsel %vm4709_vm4, %v5680_v62, %v4706_v9 }
0x3172   : > { %v4711_v29 = vmul.f32 %v4710_v45, %v4694_v15 }
0x3174   : > { %v4715_v44 = vmul.f32 %v5589_v16, %v4711_v29 }
0x3176   : > { %v4719_v48 = vadd.f32 %v5590_v46, %v4715_v44 }
0x3178   : > { %v4720_v50 = vadd.f32 %v4719_v48, %v4599_v17 }
0x317a   : > { %v4723_v37 = vsel %vm1114_vm0, %v4720_v50, 0.0 }
0x317b   : > { %4724 = vadd.xlane.f32.xlu0 %v4723_v37 }
0x318f   : > { %1942 = vrot.lane.b32.xlu0 %v6157_v54, %s5787_s10  ;;  %v2779_v54 = vpop.permute.xlu1 %2778 }
0x3197   : > { %2781 = vrot.lane.b32.xlu0 %v6318_v60, %s5787_s10  ;;  %v1945_v60 = vsel %vm1194_vm1, %v6077_v57, %v1937_v6  ;;  %v3759_v61 = vpop.permute.xlu1 %3758 }
0x319f   : > { %3761 = vrot.lane.b32.xlu0 %v6494_v23, %s5787_s10  ;;  %v1947_v23 = vsel %vm1946_vm6, %v1945_v60, %v1940_v56  ;;  %v4601_v7 = vpop.permute.xlu1 %4600  ;;  %s6895_s10 = sld [smem:[#allocation36_spill]] }
0x31a0   : > { %v4609_v12 = vsel %vm1194_vm1, %v6568_v32, %v4601_v7 }
0x31a5   : > { %s6745_s2 = sshll.u32 %s6895_s10, 3  ;;  %s4755_s10 = scalar_lea.sflag [#allocation3], %s6711_s28 }
0x31a7   : > { %4603 = vrot.lane.b32.xlu0 %v6625_v14, %s5786_s15  ;;  %v2776_v14 = vpop.permute.xlu2 %2775  ;;  %s6726_s15 = scalar_lea.vmem [#allocation5], %s5052_s22  ;;  %v4607_v17 = vpop.permute.xlu1 %4606  ;;  %s6896_s22 = sld [smem:[#allocation30_spill]] }
0x31a8   : > { %v2784_v63 = vsel %vm1194_vm1, %v6241_v49, %v2776_v14 }
0x31a9   : > { %v2785_v2 = vsel %vm1946_vm6, %v2784_v63, %v2779_v54 }
0x31ad   : > { %s6897_s0 = smov %s6896_s22  ;;  %s4773_s3 = scalar_lea.hbm %s6896_s22, %s6745_s2 }
0x31ae   : > { %s4777_s8 = sshll.u32 %s4773_s3, 4  ;;  %s5706_s22 = scalar_lea.hbm %s6897_s0, 16  ;;  %s4778_s8 = int_to_ptr.hbm [resolvable:$true] %s4777_s8 }
0x31af   : > { %v3756_v25 = vpop.permute.xlu2 %3755  ;;  %s5700_s9 = sshra.s32 %s4778_s8, 4  ;;  %s5701_s9 = int_to_ptr.hbm [resolvable:$true] %s5700_s9 }
0x31b0   : > { %v3764_v3 = vsel %vm1194_vm1, %v6418_v4, %v3756_v25  ;;  %s5702_s5 = scalar_lea.hbm %s5701_s9, 8  ;;  %p5707_p0 = scmp.lt.s32.totalorder %s5701_s9, %s6897_s0 }
0x31b1   : > { %v3765_v11 = vsel %vm1946_vm6, %v3764_v3, %v3759_v61  ;;  %p5703_p11 = scmp.ne.s32.totalorder %s5701_s9, %s5702_s5  ;;  %p5708_p1 = scmp.lt.s32.totalorder %s5706_s22, %s5702_s5 }
0x31b3   : > { %p5704_p12 = pnand %p5703_p11, %p6006_p5  ;;  %p5709_p2 = por %p5708_p1, %p5707_p0 }
0x31b5   : > { %p5705_p13 = pneg %p5704_p12 }
0x31b7   : > { %p5710_p3 = pnand %p5709_p2, %p5705_p13 }
0x31ee   : > { %v4725_v51 = vpop.xlane.xlu0 %4724 }
0x31ef   : > { %v4726_v38 = vmul.f32 %v4725_v51, %v6165_v5 }
0x31f1   : > { %v4727_v52 = vsub.f32 %v4720_v50, %v4726_v38 }
0x31f3   : > { %v4728_v53 = vmul.f32 %v4727_v52, %v4727_v52 }
0x31f5   : > { %v4729_v55 = vsel %vm1114_vm0, %v4728_v53, 0.0 }
0x31f6   : > { %4730 = vadd.xlane.f32.xlu2 %v4729_v55 }
0x3201   : > { %v1943_v58 = vpop.permute.xlu0 %1942 }
0x3202   : > { %v1949_v59 = vsel %vm1948_vm7, %v1947_v23, %v1943_v58 }
0x3203   : > { %1950 = vst.msk [vmem:[%s6718_s18] sm:$0xff] %vm1114_vm0, %v1949_v59 }
0x3209   : > { %v2782_v1 = vpop.permute.xlu0 %2781 }
0x320a   : > { %v2786_v57 = vsel %vm1948_vm7, %v2785_v2, %v2782_v1 }
0x320b   : > { %2787 = vst.msk [vmem:[%s6726_s15] sm:$0xff] %vm1114_vm0, %v2786_v57 }
0x3211   : > { %v3762_v10 = vpop.permute.xlu0 %3761 }
0x3212   : > { %v3766_v49 = vsel %vm1948_vm7, %v3765_v11, %v3762_v10 }
0x3213   : > { %5309 = vst.msk [vmem:[%s6718_s18 + $0x8] sm:$0xff] %vm1114_vm0, %v3766_v49 }
0x3219   : > { %v4604_v13 = vpop.permute.xlu0 %4603 }
0x321a   : > { %v4610_v18 = vsel %vm1946_vm6, %v4609_v12, %v4604_v13 }
0x321b   : > { %v4611_v19 = vsel %vm1948_vm7, %v4610_v18, %v4607_v17 }
0x321c   : > { %5407 = vst.msk [vmem:[%s6726_s15 + $0x8] sm:$0xff] %vm1114_vm0, %v4611_v19 }
0x3269   : > { %v4731_v4 = vpop.xlane.xlu2 %4730 }
0x326a   : > { %v4732_v20 = vmul.f32 %v4731_v4, %v6165_v5 }
0x326c   : > { %v4733_v22 = vadd.f32 1e-06, %v4732_v20 }
0x326e   : > { %5681 = vrsqrt.f32 %v4733_v22  ;;  %vm4740_vm8 = vweird.f32 %v4733_v22 }
0x3274   : > { %v5682_v24 = vpop.eup %5681 }
0x3275   : > { %v4735_v32 = vmul.f32 %v5682_v24, %v4733_v22  ;;  %vm4741_vm1 = vweird.f32 %v5682_v24 }
0x3276   : > { %vm4742_vm9 = vmor %vm4740_vm8, %vm4741_vm1 }
0x3277   : > { %v4736_v26 = vmul.f32 %v5682_v24, %v4735_v32 }
0x3279   : > { %v4737_v27 = vmul.f32 0.5, %v4736_v26 }
0x327b   : > { %v4738_v28 = vsub.f32 1.5, %v4737_v27 }
0x327d   : > { %v4739_v30 = vmul.f32 %v5682_v24, %v4738_v28 }
0x327f   : > { %v4743_v5 = vsel %vm4742_vm9, %v5682_v24, %v4739_v30 }
0x3280   : > { %v4744_v34 = vmul.f32 %v4743_v5, %v4727_v52 }
0x3282   : > { %v4748_v36 = vmul.f32 %v5591_v33, %v4744_v34 }
0x3284   : > { %v4752_v8 = vadd.f32 %v5592_v35, %v4748_v36 }
0x3286   : > { %4753 = vst.msk [vmem:[%s1073_s6] sm:$0xff] %vm1114_vm0, %v4752_v8 }
0x3287   : > { %5713 = shalt.err (!%p5710_p3)
}
0x3288   : > { %5436 = dma.vmem_to_hbm [thread:$0]  (%p6006_p5), %s4776_s7, 128, %s4778_s8, %s4755_s10   ;;  %v4816_v15 = vld [vmem:[%s6718_s18] sm:$0xff] (%p6006_p5)  ;;  %v4818_v39 = vld [vmem:[%s6718_s18 + $0x8] sm:$0xff] (%p6006_p5) }
0x3289   : > { %4783 = sbr.rel (!%p6006_p5) target bundleno = 12946 (0x3292), region = 156  ;;  %s6899_s3 = sld [smem:[#allocation31_spill]] (%p6006_p5) }
0x328f   : > { %s4785_s6 = scalar_lea.vmem %s6899_s3, %s6745_s2 }
0x3290   : > { %4817 = vst [vmem:[%s4785_s6] sm:$0xff] %v4816_v15 }
0x3291   : > { %4819 = vst [vmem:[%s4785_s6 + $0x10] sm:$0xff] %v4818_v39 }
0x3292 PF: > { %4825 = sbr.rel (!%p6006_p5) target bundleno = 12955 (0x329b), region = 194  ;;  %s6901_s9 = sld [smem:[#allocation32_spill]] (%p6006_p5)  ;;  %v4858_v31 = vld [vmem:[%s6726_s15] sm:$0xff] (%p6006_p5)  ;;  %v4860_v21 = vld [vmem:[%s6726_s15 + $0x8] sm:$0xff] (%p6006_p5) }
0x3298   : > { %s4827_s8 = scalar_lea.vmem %s6901_s9, %s6745_s2 }
0x3299   : > { %4859 = vst [vmem:[%s4827_s8] sm:$0xff] %v4858_v31 }
0x329a   : > { %4861 = vst [vmem:[%s4827_s8 + $0x10] sm:$0xff] %v4860_v21 }
0x329b PF: > { %s6902_s4 = sld [smem:[#allocation35_spill]] }
0x329c   : > { %s6903_s7 = sld [smem:[#allocation33_spill]] }
0x32a1   : > { %p5442_p4 = scmp.ge.s32.totalorder %s6902_s4, 2 }
0x32a2   : > { %s4873_s28 = sand.u32 1, %s6903_s7  }
0x32a3   : > { %p5439_p7 = pnand %p5442_p4, %p6010_p6  ;;  %s4874_s18 = scalar_lea.sflag [#allocation3], %s4873_s28 }
0x32a5   : > { %p5440_p8 = pneg %p5439_p7 }
0x32a7   : > { %5731 = dma.done.wait (%p5440_p8), %s4874_s18, 128  }
0x32a8   : > { %5733 = vsyncadd (%p5440_p8), %s4874_s18, 4294967168  ;;  %s6905_s22 = sld [smem:[#allocation37_spill]]  ;;  %s6908_s15 = smov %s5740_s16 }
0x32a9   : > { %s6906_s2 = sld [smem:[#allocation34_spill]] }
0x32aa   : > { %s6907_s18 = sld [smem:[#allocation38_spill]] }
0x32ae   : > { %p80_p5 = scmp.ge.s32.totalorder %s6905_s22, 4  }
0x32af   : > { %s6909_s16 = smov %s6906_s2 }
0x32b0   :  { %82 = sbr.rel (!%p80_p5) target bundleno = 71 (0x47), region = 440 }
0x32b5   :  { %4894 = vsyncpa [#allocation3], 1 }
0x32b6   :  { %4896 = vsyncpa [#allocation3 + $0x1], 1 }

</bundles_post_ra>
